<compile_context>
chip_gen: v6e
topology: v6e:2x2x1
jax: 0.10.0
libtpu: 0.0.40
codegen_flags: <defaults>
</compile_context>

<pallas_src>
import functools
import math

import jax
import jax.numpy as jnp
from jax.experimental import pallas as pl
from jax.experimental.pallas import tpu as pltpu


def _gru_kernel(n_shots, k_shot, q_ref, xg_ref, whh_ref, bhn_ref, out_ref):
    """One (batch, HW-tile) slab.

    q_ref   : (C, THW)        query pixels for this slab (initial hidden state)
    xg_ref  : (3C, N)         precomputed input gates  W_ih@x + b_ih (+ b_hr,b_hz folded)
    whh_ref : (3C, C)         recurrent weight (PyTorch weight_hh layout)
    bhn_ref : (C, 1)          recurrent bias of the 'new' gate (kept separate:
                              PyTorch applies it inside r * (W_hn h + b_hn))
    out_ref : (N_way, C, THW) K-averaged hidden state per way
    """
    C = q_ref.shape[0]
    h = q_ref[...].astype(jnp.float32)            # (C, THW)
    whh = whh_ref[...].astype(jnp.float32)        # (3C, C)
    bhn = bhn_ref[...].astype(jnp.float32)        # (C, 1)
    xg = xg_ref[...].astype(jnp.float32)          # (3C, N)

    inv_k = 1.0 / float(k_shot)                   # python scalar -> literal
    n_way = n_shots // k_shot

    for g in range(n_way):
        acc = jnp.zeros_like(h)
        for s in range(k_shot):
            t = g * k_shot + s
            # recurrent projection for all three gates in one MXU matmul
            hg = jnp.dot(whh, h, preferred_element_type=jnp.float32)   # (3C, THW)
            x_t = xg[:, t:t + 1]                                       # (3C, 1)
            r = jax.nn.sigmoid(x_t[0:C] + hg[0:C])
            z = jax.nn.sigmoid(x_t[C:2 * C] + hg[C:2 * C])
            n = jnp.tanh(x_t[2 * C:] + r * (hg[2 * C:] + bhn))
            h = n + z * (h - n)                   # == (1-z)*n + z*h
            acc = acc + h
        out_ref[g] = (acc * inv_k).astype(out_ref.dtype)   # fold 1/K into store


def _pick_hw_tile(hw, c, n_way, io_bytes):
    """Largest lane-dense tile of the H*W axis fitting a VMEM budget.

    Budget = double-buffered query + output blocks plus an estimate of the f32
    in-kernel working set (h, hg, acc, gate temporaries).
    """
    def footprint(t):
        io = 2 * io_bytes * t * c * (1 + n_way)   # 2x-buffered in + out blocks
        work = 4 * t * c * 10                     # f32 intermediates (h, 3xhg, acc, r, z, n, ...)
        return io + work

    if hw % 128 != 0:
        return hw, footprint(hw)
    budget = 24 * 1024 * 1024
    best = 128
    for t in (4096, 2048, 1024, 512, 256, 128):
        if hw % t == 0 and footprint(t) <= budget:
            best = t
            break
    return best, footprint(best)


def gru_attention_level(q_feat, s_feat, w_ih, w_hh, b_ih, b_hh, K):
    """q_feat: (B, C, H, W); s_feat: (N, C, Hs, Ws).

    Returns:
      query_att : (B, N//K, C, H, W)
      s_rep     : (N, B*H*W, C)   (== the module's support_pooled entry)
    """
    B, C, H, W = q_feat.shape
    N = s_feat.shape[0]
    N_way = N // K
    HW = H * W

    # Tiny O(N*C) prep on the pooled support; all large tensors stay put.
    s_pooled = jnp.max(s_feat.reshape(N, C, -1), axis=-1)       # (N, C)
    x_gates = s_pooled @ w_ih.T + b_ih                          # (N, 3C)
    # Fold the r/z recurrent biases into the input gates (b_hn must stay inside
    # the kernel because PyTorch applies it inside r * (W_hn h + b_hn)).
    x_gates = x_gates.at[:, : 2 * C].add(b_hh[: 2 * C])
    x_gates = x_gates.T                                         # (3C, N)
    b_hn_col = b_hh[2 * C:].reshape(C, 1)                       # (C, 1)

    q2 = q_feat.reshape(B, C, HW)                               # free reshape

    io_bytes = jnp.dtype(q_feat.dtype).itemsize
    thw, blk_bytes = _pick_hw_tile(HW, C, N_way, io_bytes)
    grid = (B, HW // thw)

    # Raise the scoped VMEM limit only when the working set would exceed the
    # conservative default (matters for production C / HW, not the unit test).
    resident_bytes = 4 * (3 * C * (N + C) + C)
    total_bytes = blk_bytes + resident_bytes
    vmem_limit = None
    if total_bytes > 12 * 1024 * 1024:
        vmem_limit = min(2 * total_bytes, 56 * 1024 * 1024)

    kernel = functools.partial(_gru_kernel, N, K)

    out = pl.pallas_call(
        kernel,
        out_shape=jax.ShapeDtypeStruct((B, N_way, C, HW), q_feat.dtype),
        grid_spec=pltpu.PrefetchScalarGridSpec(
            num_scalar_prefetch=0,
            grid=grid,
            in_specs=[
                # query slab in native (B, C, HW) layout
                pl.BlockSpec((None, C, thw), lambda b, i: (b, 0, i)),
                # small resident operands (same block every step -> no re-DMA)
                pl.BlockSpec((3 * C, N), lambda b, i: (0, 0)),
                pl.BlockSpec((3 * C, C), lambda b, i: (0, 0)),
                pl.BlockSpec((C, 1), lambda b, i: (0, 0)),
            ],
            out_specs=pl.BlockSpec((None, N_way, C, thw),
                                   lambda b, i: (b, 0, 0, i)),
        ),
        compiler_params=pltpu.CompilerParams(
            dimension_semantics=("parallel", "parallel"),
            vmem_limit_bytes=vmem_limit),
    )(q2, x_gates, w_hh, b_hn_col)

    query_att = out.reshape(B, N_way, C, H, W)
    s_rep = jnp.broadcast_to(s_pooled[:, None, :], (N, B * HW, C))
    return query_att, s_rep


def gru_attention_forward(features, K, gru_params, align_first=False):
    """Mirrors GRU.forward (align_first=False: '_features' -> '_p1')."""
    in_name = "_features" if not align_first else "_p1"
    out_name = "_p1" if not align_first else "_p2"
    query_features = features["query" + in_name]
    support_features = features["support" + in_name]
    w_ih, w_hh, b_ih, b_hh = gru_params       # single RelationGRU shared by levels

    query_pooled, support_pooled = [], []
    for level in range(len(support_features)):
        q_att, s_rep = gru_attention_level(query_features[level],
                                           support_features[level],
                                           w_ih, w_hh, b_ih, b_hh, K)
        query_pooled.append(q_att)
        support_pooled.append(s_rep)

    new_features = dict(features)
    new_features["query" + out_name] = query_pooled
    new_features["support" + out_name] = support_pooled
    return new_features


# ----------------------------- pure-JAX reference -----------------------------
def _ref_gru_cell(h, xg_t, w_hh, b_hh, C):
    hg = h @ w_hh.T + b_hh                       # (M, 3C)
    r = jax.nn.sigmoid(xg_t[:C] + hg[:, :C])
    z = jax.nn.sigmoid(xg_t[C:2 * C] + hg[:, C:2 * C])
    n = jnp.tanh(xg_t[2 * C:] + r * hg[:, 2 * C:])
    return (1.0 - z) * n + z * h


def _ref_level(q_feat, s_feat, params, K):
    B, C, H, W = q_feat.shape
    N = s_feat.shape[0]
    w_ih, w_hh, b_ih, b_hh = params
    qp = jnp.transpose(q_feat, (0, 2, 3, 1)).reshape(B * H * W, C)
    sp = jnp.max(jnp.max(s_feat, axis=-1), axis=-1)          # (N, C)
    x_gates = sp @ w_ih.T + b_ih                             # (N, 3C)
    h = qp
    outs = []
    for t in range(N):
        h = _ref_gru_cell(h, x_gates[t], w_hh, b_hh, C)
        outs.append(h)
    out = jnp.stack(outs, axis=0)                            # (N, M, C)
    out = out.reshape(N, B, H, W, C).transpose(1, 0, 4, 2, 3)
    out = out.reshape(B, N // K, K, C, H, W).mean(axis=2)
    s_rep = jnp.broadcast_to(sp[:, None, :], (N, B * H * W, C))
    return out, s_rep


if __name__ == "__main__":
    key = jax.random.PRNGKey(0)
    B, C, K, N_way = 2, 32, 2, 4
    N = K * N_way                                  # seq length = 8 support shots
    level_hw = [(16, 16), (8, 8)]                  # FEWSHOT.FEATURE_LEVEL = 2

    keys = jax.random.split(key, 4 + 2 * len(level_hw))
    scale = 1.0 / math.sqrt(C)
    w_ih = jax.random.uniform(keys[0], (3 * C, C), jnp.float32, -scale, scale)
    w_hh = jax.random.uniform(keys[1], (3 * C, C), jnp.float32, -scale, scale)
    b_ih = jax.random.uniform(keys[2], (3 * C,), jnp.float32, -scale, scale)
    b_hh = jax.random.uniform(keys[3], (3 * C,), jnp.float32, -scale, scale)
    gru_params = (w_ih, w_hh, b_ih, b_hh)

    query_features, support_features = [], []
    for li, (Hh, Ww) in enumerate(level_hw):
        kq, ks = keys[4 + 2 * li], keys[5 + 2 * li]
        query_features.append(jax.random.normal(kq, (B, C, Hh, Ww), jnp.float32))
        support_features.append(jax.random.normal(ks, (N, C, Hh, Ww), jnp.float32))

    features = {
        "query_features": query_features,
        "support_features": support_features,
        "support_targets": None,   # unused by the compute path
    }

    out_features = gru_attention_forward(features, K, gru_params)
    jax.block_until_ready(out_features["query_p1"])
    jax.block_until_ready(out_features["support_p1"])

    # verify against pure-JAX reference
    for li in range(len(level_hw)):
        ref_q, ref_s = _ref_level(query_features[li], support_features[li],
                                  gru_params, K)
        got_q = out_features["query_p1"][li]
        got_s = out_features["support_p1"][li]
        assert got_q.shape == ref_q.shape
        assert got_s.shape == ref_s.shape
        assert jnp.allclose(got_q, ref_q, atol=1e-4, rtol=1e-4)
        assert jnp.allclose(got_s, ref_s, atol=1e-6, rtol=1e-6)

    print("KERNEL_OK")
</pallas_src>

<mosaic_0001>
module attributes {stable_mosaic.version = 11 : i64} {
  func.func @_gru_kernel(%arg0: i32, %arg1: i32, %arg2: memref<1x32x256xf32, #tpu.memory_space<vmem>>, %arg3: memref<96x8xf32, #tpu.memory_space<vmem>>, %arg4: memref<96x32xf32, #tpu.memory_space<vmem>>, %arg5: memref<32x1xf32, #tpu.memory_space<vmem>>, %arg6: memref<1x4x32x256xf32, #tpu.memory_space<vmem>>) attributes {dimension_semantics = [#tpu.dimension_semantics<parallel>, #tpu.dimension_semantics<parallel>], iteration_bounds = array<i64: 2, 1>, scalar_prefetch = 0 : i64, scratch_operands = 0 : i64, tpu.core_type = #tpu.core_type<tc>, window_params = [{transform_indices = @transform_0, window_bounds = array<i64: 1, 32, 256>}, {pipeline_mode = #tpu.pipeline_mode<synchronous>, transform_indices = @transform_1, window_bounds = array<i64: 96, 8>}, {pipeline_mode = #tpu.pipeline_mode<synchronous>, transform_indices = @transform_2, window_bounds = array<i64: 96, 32>}, {pipeline_mode = #tpu.pipeline_mode<synchronous>, transform_indices = @transform_3, window_bounds = array<i64: 32, 1>}, {transform_indices = @transform_4, window_bounds = array<i64: 1, 4, 32, 256>}]} {
    %c0 = arith.constant 0 : index
    %c0_0 = arith.constant 0 : index
    %c0_1 = arith.constant 0 : index
    %0 = vector.load %arg2[%c0, %c0_0, %c0_1] : memref<1x32x256xf32, #tpu.memory_space<vmem>>, vector<1x32x256xf32>
    %1 = vector.shape_cast %0 : vector<1x32x256xf32> to vector<32x256xf32>
    %c0_2 = arith.constant 0 : index
    %c0_3 = arith.constant 0 : index
    %2 = vector.load %arg4[%c0_2, %c0_3] : memref<96x32xf32, #tpu.memory_space<vmem>>, vector<96x32xf32>
    %c0_4 = arith.constant 0 : index
    %c0_5 = arith.constant 0 : index
    %3 = vector.load %arg5[%c0_4, %c0_5] : memref<32x1xf32, #tpu.memory_space<vmem>>, vector<32x1xf32>
    %c0_6 = arith.constant 0 : index
    %c0_7 = arith.constant 0 : index
    %4 = vector.load %arg3[%c0_6, %c0_7] : memref<96x8xf32, #tpu.memory_space<vmem>>, vector<96x8xf32>
    %cst = arith.constant 0.000000e+00 : f32
    %5 = vector.broadcast %cst : f32 to vector<32x256xf32>
    %cst_8 = arith.constant dense<0.000000e+00> : vector<96x256xf32>
    %6 = tpu.matmul %2, %1, %cst_8 {dimension_numbers = #tpu.dot_dimension_numbers<[1], [0], [0], [1], [0, 0, 1, 1], [], []>} : vector<96x32xf32>, vector<32x256xf32>, vector<96x256xf32> -> vector<96x256xf32>
    %7 = vector.extract_strided_slice %4 {offsets = [0, 0], sizes = [96, 1], strides = [1, 1]} : vector<96x8xf32> to vector<96x1xf32>
    %8 = vector.extract_strided_slice %7 {offsets = [0, 0], sizes = [32, 1], strides = [1, 1]} : vector<96x1xf32> to vector<32x1xf32>
    %9 = vector.extract_strided_slice %6 {offsets = [0, 0], sizes = [32, 256], strides = [1, 1]} : vector<96x256xf32> to vector<32x256xf32>
    %10 = vector.broadcast %8 : vector<32x1xf32> to vector<32x256xf32>
    %11 = arith.addf %10, %9 : vector<32x256xf32>
    %12 = arith.negf %11 : vector<32x256xf32>
    %13 = math.exp %12 : vector<32x256xf32>
    %cst_9 = arith.constant 1.000000e+00 : f32
    %14 = vector.broadcast %cst_9 : f32 to vector<32x256xf32>
    %15 = arith.addf %14, %13 : vector<32x256xf32>
    %16 = arith.divf %14, %15 : vector<32x256xf32>
    %17 = vector.extract_strided_slice %7 {offsets = [32, 0], sizes = [32, 1], strides = [1, 1]} : vector<96x1xf32> to vector<32x1xf32>
    %18 = vector.extract_strided_slice %6 {offsets = [32, 0], sizes = [32, 256], strides = [1, 1]} : vector<96x256xf32> to vector<32x256xf32>
    %19 = vector.broadcast %17 : vector<32x1xf32> to vector<32x256xf32>
    %20 = arith.addf %19, %18 : vector<32x256xf32>
    %21 = arith.negf %20 : vector<32x256xf32>
    %22 = math.exp %21 : vector<32x256xf32>
    %cst_10 = arith.constant 1.000000e+00 : f32
    %23 = vector.broadcast %cst_10 : f32 to vector<32x256xf32>
    %24 = arith.addf %23, %22 : vector<32x256xf32>
    %25 = arith.divf %23, %24 : vector<32x256xf32>
    %26 = vector.extract_strided_slice %7 {offsets = [64, 0], sizes = [32, 1], strides = [1, 1]} : vector<96x1xf32> to vector<32x1xf32>
    %27 = vector.extract_strided_slice %6 {offsets = [64, 0], sizes = [32, 256], strides = [1, 1]} : vector<96x256xf32> to vector<32x256xf32>
    %28 = vector.broadcast %3 : vector<32x1xf32> to vector<32x256xf32>
    %29 = arith.addf %27, %28 : vector<32x256xf32>
    %30 = arith.mulf %16, %29 : vector<32x256xf32>
    %31 = vector.broadcast %26 : vector<32x1xf32> to vector<32x256xf32>
    %32 = arith.addf %31, %30 : vector<32x256xf32>
    %33 = math.tanh %32 : vector<32x256xf32>
    %34 = arith.subf %1, %33 : vector<32x256xf32>
    %35 = arith.mulf %25, %34 : vector<32x256xf32>
    %36 = arith.addf %33, %35 : vector<32x256xf32>
    %37 = arith.addf %5, %36 : vector<32x256xf32>
    %cst_11 = arith.constant dense<0.000000e+00> : vector<96x256xf32>
    %38 = tpu.matmul %2, %36, %cst_11 {dimension_numbers = #tpu.dot_dimension_numbers<[1], [0], [0], [1], [0, 0, 1, 1], [], []>} : vector<96x32xf32>, vector<32x256xf32>, vector<96x256xf32> -> vector<96x256xf32>
    %39 = vector.extract_strided_slice %4 {offsets = [0, 1], sizes = [96, 1], strides = [1, 1]} : vector<96x8xf32> to vector<96x1xf32>
    %40 = vector.extract_strided_slice %39 {offsets = [0, 0], sizes = [32, 1], strides = [1, 1]} : vector<96x1xf32> to vector<32x1xf32>
    %41 = vector.extract_strided_slice %38 {offsets = [0, 0], sizes = [32, 256], strides = [1, 1]} : vector<96x256xf32> to vector<32x256xf32>
    %42 = vector.broadcast %40 : vector<32x1xf32> to vector<32x256xf32>
    %43 = arith.addf %42, %41 : vector<32x256xf32>
    %44 = arith.negf %43 : vector<32x256xf32>
    %45 = math.exp %44 : vector<32x256xf32>
    %cst_12 = arith.constant 1.000000e+00 : f32
    %46 = vector.broadcast %cst_12 : f32 to vector<32x256xf32>
    %47 = arith.addf %46, %45 : vector<32x256xf32>
    %48 = arith.divf %46, %47 : vector<32x256xf32>
    %49 = vector.extract_strided_slice %39 {offsets = [32, 0], sizes = [32, 1], strides = [1, 1]} : vector<96x1xf32> to vector<32x1xf32>
    %50 = vector.extract_strided_slice %38 {offsets = [32, 0], sizes = [32, 256], strides = [1, 1]} : vector<96x256xf32> to vector<32x256xf32>
    %51 = vector.broadcast %49 : vector<32x1xf32> to vector<32x256xf32>
    %52 = arith.addf %51, %50 : vector<32x256xf32>
    %53 = arith.negf %52 : vector<32x256xf32>
    %54 = math.exp %53 : vector<32x256xf32>
    %cst_13 = arith.constant 1.000000e+00 : f32
    %55 = vector.broadcast %cst_13 : f32 to vector<32x256xf32>
    %56 = arith.addf %55, %54 : vector<32x256xf32>
    %57 = arith.divf %55, %56 : vector<32x256xf32>
    %58 = vector.extract_strided_slice %39 {offsets = [64, 0], sizes = [32, 1], strides = [1, 1]} : vector<96x1xf32> to vector<32x1xf32>
    %59 = vector.extract_strided_slice %38 {offsets = [64, 0], sizes = [32, 256], strides = [1, 1]} : vector<96x256xf32> to vector<32x256xf32>
    %60 = vector.broadcast %3 : vector<32x1xf32> to vector<32x256xf32>
    %61 = arith.addf %59, %60 : vector<32x256xf32>
    %62 = arith.mulf %48, %61 : vector<32x256xf32>
    %63 = vector.broadcast %58 : vector<32x1xf32> to vector<32x256xf32>
    %64 = arith.addf %63, %62 : vector<32x256xf32>
    %65 = math.tanh %64 : vector<32x256xf32>
    %66 = arith.subf %36, %65 : vector<32x256xf32>
    %67 = arith.mulf %57, %66 : vector<32x256xf32>
    %68 = arith.addf %65, %67 : vector<32x256xf32>
    %69 = arith.addf %37, %68 : vector<32x256xf32>
    %cst_14 = arith.constant 5.000000e-01 : f32
    %70 = vector.broadcast %cst_14 : f32 to vector<32x256xf32>
    %71 = arith.mulf %69, %70 : vector<32x256xf32>
    %c0_15 = arith.constant 0 : index
    %c0_16 = arith.constant 0 : index
    %c0_17 = arith.constant 0 : index
    %c0_18 = arith.constant 0 : index
    %72 = vector.load %arg6[%c0_15, %c0_16, %c0_17, %c0_18] : memref<1x4x32x256xf32, #tpu.memory_space<vmem>>, vector<1x1x32x256xf32>
    %73 = vector.shape_cast %72 : vector<1x1x32x256xf32> to vector<32x256xf32>
    %74 = vector.shape_cast %71 : vector<32x256xf32> to vector<1x1x32x256xf32>
    tpu.vector_store %arg6[%c0_15, %c0_16, %c0_17, %c0_18], %74 {strides = array<i32>} : memref<1x4x32x256xf32, #tpu.memory_space<vmem>>, vector<1x1x32x256xf32>,
    %cst_19 = arith.constant 0.000000e+00 : f32
    %75 = vector.broadcast %cst_19 : f32 to vector<32x256xf32>
    %cst_20 = arith.constant dense<0.000000e+00> : vector<96x256xf32>
    %76 = tpu.matmul %2, %68, %cst_20 {dimension_numbers = #tpu.dot_dimension_numbers<[1], [0], [0], [1], [0, 0, 1, 1], [], []>} : vector<96x32xf32>, vector<32x256xf32>, vector<96x256xf32> -> vector<96x256xf32>
    %77 = vector.extract_strided_slice %4 {offsets = [0, 2], sizes = [96, 1], strides = [1, 1]} : vector<96x8xf32> to vector<96x1xf32>
    %78 = vector.extract_strided_slice %77 {offsets = [0, 0], sizes = [32, 1], strides = [1, 1]} : vector<96x1xf32> to vector<32x1xf32>
    %79 = vector.extract_strided_slice %76 {offsets = [0, 0], sizes = [32, 256], strides = [1, 1]} : vector<96x256xf32> to vector<32x256xf32>
    %80 = vector.broadcast %78 : vector<32x1xf32> to vector<32x256xf32>
    %81 = arith.addf %80, %79 : vector<32x256xf32>
    %82 = arith.negf %81 : vector<32x256xf32>
    %83 = math.exp %82 : vector<32x256xf32>
    %cst_21 = arith.constant 1.000000e+00 : f32
    %84 = vector.broadcast %cst_21 : f32 to vector<32x256xf32>
    %85 = arith.addf %84, %83 : vector<32x256xf32>
    %86 = arith.divf %84, %85 : vector<32x256xf32>
    %87 = vector.extract_strided_slice %77 {offsets = [32, 0], sizes = [32, 1], strides = [1, 1]} : vector<96x1xf32> to vector<32x1xf32>
    %88 = vector.extract_strided_slice %76 {offsets = [32, 0], sizes = [32, 256], strides = [1, 1]} : vector<96x256xf32> to vector<32x256xf32>
    %89 = vector.broadcast %87 : vector<32x1xf32> to vector<32x256xf32>
    %90 = arith.addf %89, %88 : vector<32x256xf32>
    %91 = arith.negf %90 : vector<32x256xf32>
    %92 = math.exp %91 : vector<32x256xf32>
    %cst_22 = arith.constant 1.000000e+00 : f32
    %93 = vector.broadcast %cst_22 : f32 to vector<32x256xf32>
    %94 = arith.addf %93, %92 : vector<32x256xf32>
    %95 = arith.divf %93, %94 : vector<32x256xf32>
    %96 = vector.extract_strided_slice %77 {offsets = [64, 0], sizes = [32, 1], strides = [1, 1]} : vector<96x1xf32> to vector<32x1xf32>
    %97 = vector.extract_strided_slice %76 {offsets = [64, 0], sizes = [32, 256], strides = [1, 1]} : vector<96x256xf32> to vector<32x256xf32>
    %98 = vector.broadcast %3 : vector<32x1xf32> to vector<32x256xf32>
    %99 = arith.addf %97, %98 : vector<32x256xf32>
    %100 = arith.mulf %86, %99 : vector<32x256xf32>
    %101 = vector.broadcast %96 : vector<32x1xf32> to vector<32x256xf32>
    %102 = arith.addf %101, %100 : vector<32x256xf32>
    %103 = math.tanh %102 : vector<32x256xf32>
    %104 = arith.subf %68, %103 : vector<32x256xf32>
    %105 = arith.mulf %95, %104 : vector<32x256xf32>
    %106 = arith.addf %103, %105 : vector<32x256xf32>
    %107 = arith.addf %75, %106 : vector<32x256xf32>
    %cst_23 = arith.constant dense<0.000000e+00> : vector<96x256xf32>
    %108 = tpu.matmul %2, %106, %cst_23 {dimension_numbers = #tpu.dot_dimension_numbers<[1], [0], [0], [1], [0, 0, 1, 1], [], []>} : vector<96x32xf32>, vector<32x256xf32>, vector<96x256xf32> -> vector<96x256xf32>
    %109 = vector.extract_strided_slice %4 {offsets = [0, 3], sizes = [96, 1], strides = [1, 1]} : vector<96x8xf32> to vector<96x1xf32>
    %110 = vector.extract_strided_slice %109 {offsets = [0, 0], sizes = [32, 1], strides = [1, 1]} : vector<96x1xf32> to vector<32x1xf32>
    %111 = vector.extract_strided_slice %108 {offsets = [0, 0], sizes = [32, 256], strides = [1, 1]} : vector<96x256xf32> to vector<32x256xf32>
    %112 = vector.broadcast %110 : vector<32x1xf32> to vector<32x256xf32>
    %113 = arith.addf %112, %111 : vector<32x256xf32>
    %114 = arith.negf %113 : vector<32x256xf32>
    %115 = math.exp %114 : vector<32x256xf32>
    %cst_24 = arith.constant 1.000000e+00 : f32
    %116 = vector.broadcast %cst_24 : f32 to vector<32x256xf32>
    %117 = arith.addf %116, %115 : vector<32x256xf32>
    %118 = arith.divf %116, %117 : vector<32x256xf32>
    %119 = vector.extract_strided_slice %109 {offsets = [32, 0], sizes = [32, 1], strides = [1, 1]} : vector<96x1xf32> to vector<32x1xf32>
    %120 = vector.extract_strided_slice %108 {offsets = [32, 0], sizes = [32, 256], strides = [1, 1]} : vector<96x256xf32> to vector<32x256xf32>
    %121 = vector.broadcast %119 : vector<32x1xf32> to vector<32x256xf32>
    %122 = arith.addf %121, %120 : vector<32x256xf32>
    %123 = arith.negf %122 : vector<32x256xf32>
    %124 = math.exp %123 : vector<32x256xf32>
    %cst_25 = arith.constant 1.000000e+00 : f32
    %125 = vector.broadcast %cst_25 : f32 to vector<32x256xf32>
    %126 = arith.addf %125, %124 : vector<32x256xf32>
    %127 = arith.divf %125, %126 : vector<32x256xf32>
    %128 = vector.extract_strided_slice %109 {offsets = [64, 0], sizes = [32, 1], strides = [1, 1]} : vector<96x1xf32> to vector<32x1xf32>
    %129 = vector.extract_strided_slice %108 {offsets = [64, 0], sizes = [32, 256], strides = [1, 1]} : vector<96x256xf32> to vector<32x256xf32>
    %130 = vector.broadcast %3 : vector<32x1xf32> to vector<32x256xf32>
    %131 = arith.addf %129, %130 : vector<32x256xf32>
    %132 = arith.mulf %118, %131 : vector<32x256xf32>
    %133 = vector.broadcast %128 : vector<32x1xf32> to vector<32x256xf32>
    %134 = arith.addf %133, %132 : vector<32x256xf32>
    %135 = math.tanh %134 : vector<32x256xf32>
    %136 = arith.subf %106, %135 : vector<32x256xf32>
    %137 = arith.mulf %127, %136 : vector<32x256xf32>
    %138 = arith.addf %135, %137 : vector<32x256xf32>
    %139 = arith.addf %107, %138 : vector<32x256xf32>
    %cst_26 = arith.constant 5.000000e-01 : f32
    %140 = vector.broadcast %cst_26 : f32 to vector<32x256xf32>
    %141 = arith.mulf %139, %140 : vector<32x256xf32>
    %c0_27 = arith.constant 0 : index
    %c1 = arith.constant 1 : index
    %c0_28 = arith.constant 0 : index
    %c0_29 = arith.constant 0 : index
    %142 = vector.load %arg6[%c0_27, %c1, %c0_28, %c0_29] : memref<1x4x32x256xf32, #tpu.memory_space<vmem>>, vector<1x1x32x256xf32>
    %143 = vector.shape_cast %142 : vector<1x1x32x256xf32> to vector<32x256xf32>
    %144 = vector.shape_cast %141 : vector<32x256xf32> to vector<1x1x32x256xf32>
    tpu.vector_store %arg6[%c0_27, %c1, %c0_28, %c0_29], %144 {strides = array<i32>} : memref<1x4x32x256xf32, #tpu.memory_space<vmem>>, vector<1x1x32x256xf32>,
    %cst_30 = arith.constant 0.000000e+00 : f32
    %145 = vector.broadcast %cst_30 : f32 to vector<32x256xf32>
    %cst_31 = arith.constant dense<0.000000e+00> : vector<96x256xf32>
    %146 = tpu.matmul %2, %138, %cst_31 {dimension_numbers = #tpu.dot_dimension_numbers<[1], [0], [0], [1], [0, 0, 1, 1], [], []>} : vector<96x32xf32>, vector<32x256xf32>, vector<96x256xf32> -> vector<96x256xf32>
    %147 = vector.extract_strided_slice %4 {offsets = [0, 4], sizes = [96, 1], strides = [1, 1]} : vector<96x8xf32> to vector<96x1xf32>
    %148 = vector.extract_strided_slice %147 {offsets = [0, 0], sizes = [32, 1], strides = [1, 1]} : vector<96x1xf32> to vector<32x1xf32>
    %149 = vector.extract_strided_slice %146 {offsets = [0, 0], sizes = [32, 256], strides = [1, 1]} : vector<96x256xf32> to vector<32x256xf32>
    %150 = vector.broadcast %148 : vector<32x1xf32> to vector<32x256xf32>
    %151 = arith.addf %150, %149 : vector<32x256xf32>
    %152 = arith.negf %151 : vector<32x256xf32>
    %153 = math.exp %152 : vector<32x256xf32>
    %cst_32 = arith.constant 1.000000e+00 : f32
    %154 = vector.broadcast %cst_32 : f32 to vector<32x256xf32>
    %155 = arith.addf %154, %153 : vector<32x256xf32>
    %156 = arith.divf %154, %155 : vector<32x256xf32>
    %157 = vector.extract_strided_slice %147 {offsets = [32, 0], sizes = [32, 1], strides = [1, 1]} : vector<96x1xf32> to vector<32x1xf32>
    %158 = vector.extract_strided_slice %146 {offsets = [32, 0], sizes = [32, 256], strides = [1, 1]} : vector<96x256xf32> to vector<32x256xf32>
    %159 = vector.broadcast %157 : vector<32x1xf32> to vector<32x256xf32>
    %160 = arith.addf %159, %158 : vector<32x256xf32>
    %161 = arith.negf %160 : vector<32x256xf32>
    %162 = math.exp %161 : vector<32x256xf32>
    %cst_33 = arith.constant 1.000000e+00 : f32
    %163 = vector.broadcast %cst_33 : f32 to vector<32x256xf32>
    %164 = arith.addf %163, %162 : vector<32x256xf32>
    %165 = arith.divf %163, %164 : vector<32x256xf32>
    %166 = vector.extract_strided_slice %147 {offsets = [64, 0], sizes = [32, 1], strides = [1, 1]} : vector<96x1xf32> to vector<32x1xf32>
    %167 = vector.extract_strided_slice %146 {offsets = [64, 0], sizes = [32, 256], strides = [1, 1]} : vector<96x256xf32> to vector<32x256xf32>
    %168 = vector.broadcast %3 : vector<32x1xf32> to vector<32x256xf32>
    %169 = arith.addf %167, %168 : vector<32x256xf32>
    %170 = arith.mulf %156, %169 : vector<32x256xf32>
    %171 = vector.broadcast %166 : vector<32x1xf32> to vector<32x256xf32>
    %172 = arith.addf %171, %170 : vector<32x256xf32>
    %173 = math.tanh %172 : vector<32x256xf32>
    %174 = arith.subf %138, %173 : vector<32x256xf32>
    %175 = arith.mulf %165, %174 : vector<32x256xf32>
    %176 = arith.addf %173, %175 : vector<32x256xf32>
    %177 = arith.addf %145, %176 : vector<32x256xf32>
    %cst_34 = arith.constant dense<0.000000e+00> : vector<96x256xf32>
    %178 = tpu.matmul %2, %176, %cst_34 {dimension_numbers = #tpu.dot_dimension_numbers<[1], [0], [0], [1], [0, 0, 1, 1], [], []>} : vector<96x32xf32>, vector<32x256xf32>, vector<96x256xf32> -> vector<96x256xf32>
    %179 = vector.extract_strided_slice %4 {offsets = [0, 5], sizes = [96, 1], strides = [1, 1]} : vector<96x8xf32> to vector<96x1xf32>
    %180 = vector.extract_strided_slice %179 {offsets = [0, 0], sizes = [32, 1], strides = [1, 1]} : vector<96x1xf32> to vector<32x1xf32>
    %181 = vector.extract_strided_slice %178 {offsets = [0, 0], sizes = [32, 256], strides = [1, 1]} : vector<96x256xf32> to vector<32x256xf32>
    %182 = vector.broadcast %180 : vector<32x1xf32> to vector<32x256xf32>
    %183 = arith.addf %182, %181 : vector<32x256xf32>
    %184 = arith.negf %183 : vector<32x256xf32>
    %185 = math.exp %184 : vector<32x256xf32>
    %cst_35 = arith.constant 1.000000e+00 : f32
    %186 = vector.broadcast %cst_35 : f32 to vector<32x256xf32>
    %187 = arith.addf %186, %185 : vector<32x256xf32>
    %188 = arith.divf %186, %187 : vector<32x256xf32>
    %189 = vector.extract_strided_slice %179 {offsets = [32, 0], sizes = [32, 1], strides = [1, 1]} : vector<96x1xf32> to vector<32x1xf32>
    %190 = vector.extract_strided_slice %178 {offsets = [32, 0], sizes = [32, 256], strides = [1, 1]} : vector<96x256xf32> to vector<32x256xf32>
    %191 = vector.broadcast %189 : vector<32x1xf32> to vector<32x256xf32>
    %192 = arith.addf %191, %190 : vector<32x256xf32>
    %193 = arith.negf %192 : vector<32x256xf32>
    %194 = math.exp %193 : vector<32x256xf32>
    %cst_36 = arith.constant 1.000000e+00 : f32
    %195 = vector.broadcast %cst_36 : f32 to vector<32x256xf32>
    %196 = arith.addf %195, %194 : vector<32x256xf32>
    %197 = arith.divf %195, %196 : vector<32x256xf32>
    %198 = vector.extract_strided_slice %179 {offsets = [64, 0], sizes = [32, 1], strides = [1, 1]} : vector<96x1xf32> to vector<32x1xf32>
    %199 = vector.extract_strided_slice %178 {offsets = [64, 0], sizes = [32, 256], strides = [1, 1]} : vector<96x256xf32> to vector<32x256xf32>
    %200 = vector.broadcast %3 : vector<32x1xf32> to vector<32x256xf32>
    %201 = arith.addf %199, %200 : vector<32x256xf32>
    %202 = arith.mulf %188, %201 : vector<32x256xf32>
    %203 = vector.broadcast %198 : vector<32x1xf32> to vector<32x256xf32>
    %204 = arith.addf %203, %202 : vector<32x256xf32>
    %205 = math.tanh %204 : vector<32x256xf32>
    %206 = arith.subf %176, %205 : vector<32x256xf32>
    %207 = arith.mulf %197, %206 : vector<32x256xf32>
    %208 = arith.addf %205, %207 : vector<32x256xf32>
    %209 = arith.addf %177, %208 : vector<32x256xf32>
    %cst_37 = arith.constant 5.000000e-01 : f32
    %210 = vector.broadcast %cst_37 : f32 to vector<32x256xf32>
    %211 = arith.mulf %209, %210 : vector<32x256xf32>
    %c0_38 = arith.constant 0 : index
    %c2 = arith.constant 2 : index
    %c0_39 = arith.constant 0 : index
    %c0_40 = arith.constant 0 : index
    %212 = vector.load %arg6[%c0_38, %c2, %c0_39, %c0_40] : memref<1x4x32x256xf32, #tpu.memory_space<vmem>>, vector<1x1x32x256xf32>
    %213 = vector.shape_cast %212 : vector<1x1x32x256xf32> to vector<32x256xf32>
    %214 = vector.shape_cast %211 : vector<32x256xf32> to vector<1x1x32x256xf32>
    tpu.vector_store %arg6[%c0_38, %c2, %c0_39, %c0_40], %214 {strides = array<i32>} : memref<1x4x32x256xf32, #tpu.memory_space<vmem>>, vector<1x1x32x256xf32>,
    %cst_41 = arith.constant 0.000000e+00 : f32
    %215 = vector.broadcast %cst_41 : f32 to vector<32x256xf32>
    %cst_42 = arith.constant dense<0.000000e+00> : vector<96x256xf32>
    %216 = tpu.matmul %2, %208, %cst_42 {dimension_numbers = #tpu.dot_dimension_numbers<[1], [0], [0], [1], [0, 0, 1, 1], [], []>} : vector<96x32xf32>, vector<32x256xf32>, vector<96x256xf32> -> vector<96x256xf32>
    %217 = vector.extract_strided_slice %4 {offsets = [0, 6], sizes = [96, 1], strides = [1, 1]} : vector<96x8xf32> to vector<96x1xf32>
    %218 = vector.extract_strided_slice %217 {offsets = [0, 0], sizes = [32, 1], strides = [1, 1]} : vector<96x1xf32> to vector<32x1xf32>
    %219 = vector.extract_strided_slice %216 {offsets = [0, 0], sizes = [32, 256], strides = [1, 1]} : vector<96x256xf32> to vector<32x256xf32>
    %220 = vector.broadcast %218 : vector<32x1xf32> to vector<32x256xf32>
    %221 = arith.addf %220, %219 : vector<32x256xf32>
    %222 = arith.negf %221 : vector<32x256xf32>
    %223 = math.exp %222 : vector<32x256xf32>
    %cst_43 = arith.constant 1.000000e+00 : f32
    %224 = vector.broadcast %cst_43 : f32 to vector<32x256xf32>
    %225 = arith.addf %224, %223 : vector<32x256xf32>
    %226 = arith.divf %224, %225 : vector<32x256xf32>
    %227 = vector.extract_strided_slice %217 {offsets = [32, 0], sizes = [32, 1], strides = [1, 1]} : vector<96x1xf32> to vector<32x1xf32>
    %228 = vector.extract_strided_slice %216 {offsets = [32, 0], sizes = [32, 256], strides = [1, 1]} : vector<96x256xf32> to vector<32x256xf32>
    %229 = vector.broadcast %227 : vector<32x1xf32> to vector<32x256xf32>
    %230 = arith.addf %229, %228 : vector<32x256xf32>
    %231 = arith.negf %230 : vector<32x256xf32>
    %232 = math.exp %231 : vector<32x256xf32>
    %cst_44 = arith.constant 1.000000e+00 : f32
    %233 = vector.broadcast %cst_44 : f32 to vector<32x256xf32>
    %234 = arith.addf %233, %232 : vector<32x256xf32>
    %235 = arith.divf %233, %234 : vector<32x256xf32>
    %236 = vector.extract_strided_slice %217 {offsets = [64, 0], sizes = [32, 1], strides = [1, 1]} : vector<96x1xf32> to vector<32x1xf32>
    %237 = vector.extract_strided_slice %216 {offsets = [64, 0], sizes = [32, 256], strides = [1, 1]} : vector<96x256xf32> to vector<32x256xf32>
    %238 = vector.broadcast %3 : vector<32x1xf32> to vector<32x256xf32>
    %239 = arith.addf %237, %238 : vector<32x256xf32>
    %240 = arith.mulf %226, %239 : vector<32x256xf32>
    %241 = vector.broadcast %236 : vector<32x1xf32> to vector<32x256xf32>
    %242 = arith.addf %241, %240 : vector<32x256xf32>
    %243 = math.tanh %242 : vector<32x256xf32>
    %244 = arith.subf %208, %243 : vector<32x256xf32>
    %245 = arith.mulf %235, %244 : vector<32x256xf32>
    %246 = arith.addf %243, %245 : vector<32x256xf32>
    %247 = arith.addf %215, %246 : vector<32x256xf32>
    %cst_45 = arith.constant dense<0.000000e+00> : vector<96x256xf32>
    %248 = tpu.matmul %2, %246, %cst_45 {dimension_numbers = #tpu.dot_dimension_numbers<[1], [0], [0], [1], [0, 0, 1, 1], [], []>} : vector<96x32xf32>, vector<32x256xf32>, vector<96x256xf32> -> vector<96x256xf32>
    %249 = vector.extract_strided_slice %4 {offsets = [0, 7], sizes = [96, 1], strides = [1, 1]} : vector<96x8xf32> to vector<96x1xf32>
    %250 = vector.extract_strided_slice %249 {offsets = [0, 0], sizes = [32, 1], strides = [1, 1]} : vector<96x1xf32> to vector<32x1xf32>
    %251 = vector.extract_strided_slice %248 {offsets = [0, 0], sizes = [32, 256], strides = [1, 1]} : vector<96x256xf32> to vector<32x256xf32>
    %252 = vector.broadcast %250 : vector<32x1xf32> to vector<32x256xf32>
    %253 = arith.addf %252, %251 : vector<32x256xf32>
    %254 = arith.negf %253 : vector<32x256xf32>
    %255 = math.exp %254 : vector<32x256xf32>
    %cst_46 = arith.constant 1.000000e+00 : f32
    %256 = vector.broadcast %cst_46 : f32 to vector<32x256xf32>
    %257 = arith.addf %256, %255 : vector<32x256xf32>
    %258 = arith.divf %256, %257 : vector<32x256xf32>
    %259 = vector.extract_strided_slice %249 {offsets = [32, 0], sizes = [32, 1], strides = [1, 1]} : vector<96x1xf32> to vector<32x1xf32>
    %260 = vector.extract_strided_slice %248 {offsets = [32, 0], sizes = [32, 256], strides = [1, 1]} : vector<96x256xf32> to vector<32x256xf32>
    %261 = vector.broadcast %259 : vector<32x1xf32> to vector<32x256xf32>
    %262 = arith.addf %261, %260 : vector<32x256xf32>
    %263 = arith.negf %262 : vector<32x256xf32>
    %264 = math.exp %263 : vector<32x256xf32>
    %cst_47 = arith.constant 1.000000e+00 : f32
    %265 = vector.broadcast %cst_47 : f32 to vector<32x256xf32>
    %266 = arith.addf %265, %264 : vector<32x256xf32>
    %267 = arith.divf %265, %266 : vector<32x256xf32>
    %268 = vector.extract_strided_slice %249 {offsets = [64, 0], sizes = [32, 1], strides = [1, 1]} : vector<96x1xf32> to vector<32x1xf32>
    %269 = vector.extract_strided_slice %248 {offsets = [64, 0], sizes = [32, 256], strides = [1, 1]} : vector<96x256xf32> to vector<32x256xf32>
    %270 = vector.broadcast %3 : vector<32x1xf32> to vector<32x256xf32>
    %271 = arith.addf %269, %270 : vector<32x256xf32>
    %272 = arith.mulf %258, %271 : vector<32x256xf32>
    %273 = vector.broadcast %268 : vector<32x1xf32> to vector<32x256xf32>
    %274 = arith.addf %273, %272 : vector<32x256xf32>
    %275 = math.tanh %274 : vector<32x256xf32>
    %276 = arith.subf %246, %275 : vector<32x256xf32>
    %277 = arith.mulf %267, %276 : vector<32x256xf32>
    %278 = arith.addf %275, %277 : vector<32x256xf32>
    %279 = arith.addf %247, %278 : vector<32x256xf32>
    %cst_48 = arith.constant 5.000000e-01 : f32
    %280 = vector.broadcast %cst_48 : f32 to vector<32x256xf32>
    %281 = arith.mulf %279, %280 : vector<32x256xf32>
    %c0_49 = arith.constant 0 : index
    %c3 = arith.constant 3 : index
    %c0_50 = arith.constant 0 : index
    %c0_51 = arith.constant 0 : index
    %282 = vector.load %arg6[%c0_49, %c3, %c0_50, %c0_51] : memref<1x4x32x256xf32, #tpu.memory_space<vmem>>, vector<1x1x32x256xf32>
    %283 = vector.shape_cast %282 : vector<1x1x32x256xf32> to vector<32x256xf32>
    %284 = vector.shape_cast %281 : vector<32x256xf32> to vector<1x1x32x256xf32>
    tpu.vector_store %arg6[%c0_49, %c3, %c0_50, %c0_51], %284 {strides = array<i32>} : memref<1x4x32x256xf32, #tpu.memory_space<vmem>>, vector<1x1x32x256xf32>,
    return
  }
  func.func @transform_0(%arg0: i32, %arg1: i32) -> (i32, i32, i32) {
    %c0_i32 = arith.constant 0 : i32
    %c0_i32_0 = arith.constant 0 : i32
    return %arg0, %c0_i32, %arg1 : i32, i32, i32
  }
  func.func @transform_1(%arg0: i32, %arg1: i32) -> (i32, i32) {
    %c0_i32 = arith.constant 0 : i32
    %c0_i32_0 = arith.constant 0 : i32
    %c0_i32_1 = arith.constant 0 : i32
    return %c0_i32, %c0_i32_0 : i32, i32
  }
  func.func @transform_2(%arg0: i32, %arg1: i32) -> (i32, i32) {
    %c0_i32 = arith.constant 0 : i32
    %c0_i32_0 = arith.constant 0 : i32
    %c0_i32_1 = arith.constant 0 : i32
    return %c0_i32, %c0_i32_0 : i32, i32
  }
  func.func @transform_3(%arg0: i32, %arg1: i32) -> (i32, i32) {
    %c0_i32 = arith.constant 0 : i32
    %c0_i32_0 = arith.constant 0 : i32
    %c0_i32_1 = arith.constant 0 : i32
    return %c0_i32, %c0_i32_0 : i32, i32
  }
  func.func @transform_4(%arg0: i32, %arg1: i32) -> (i32, i32, i32, i32) {
    %c0_i32 = arith.constant 0 : i32
    %c0_i32_0 = arith.constant 0 : i32
    %c0_i32_1 = arith.constant 0 : i32
    return %arg0, %c0_i32, %c0_i32_0, %arg1 : i32, i32, i32, i32
  }
}

</mosaic_0001>

<bundles_post_ra>
// kernel: tpu_custom_call.1
= control target key start
LH: loop header
LB: loop body
LE: loop exit
PB: predicated region body
PF: predicated region fallthrough
CT: control target
= control target key end

     0   :  { %9 = vsyncpa [#allocation3], 0  ;;  %s5963_s0 = inlined_call_operand.vmem [shape: f32[2,32,256], index: 0, kind: input, shape index: {}]   ;;  %s5964_s1 = inlined_call_operand.vmem [shape: f32[96,8], index: 1, kind: input, shape index: {}]   ;;  %s5965_s2 = inlined_call_operand.vmem [shape: f32[96,32], index: 2, kind: input, shape index: {}]   ;;  %s5966_s3 = inlined_call_operand.vmem [shape: f32[32,1], index: 3, kind: input, shape index: {}]   ;;  %s5967_s4 = inlined_call_operand.hbm [shape: f32[2,4,32,256], index: 4, kind: output, shape index: {}]  }
   0x1   :  { %11 = vsyncpa [#allocation3 + $0x1], 0  ;;  %s4554_s15 = smov 0   ;;  %s4556_s16 = smov 0  }
   0x2   :  { %s4558_s17 = smov 0   ;;  %s4560_s18 = smov 0  }
   0x3   :  { %s4562_s19 = smov 0   ;;  %s4564_s20 = smov 0  }
   0x4 LB: > { %s3382_s21 = sadd.s32 4294967295, %s4515_s20   ;;  %s3383_s22 = sadd.s32 4294967294, %s4515_s20   ;;  %s4515_s20 = sphi %s4564_s20, %s17_s20   ;;  %s4511_s19 = sphi %s4562_s19, %s5974_s19   ;;  %s4507_s18 = sphi %s4560_s18, %s5973_s18   ;;  %s4503_s17 = sphi %s4558_s17, %s5972_s17   ;;  %s4499_s16 = sphi %s4556_s16, %s5971_s16   ;;  %s4495_s15 = sphi %s4554_s15, %s5970_s15  }
   0x5   : > { %s29_s23 = sadd.s32 1, %s4511_s19  ;;  %s129_s24 = sadd.s32 1, %s4503_s17 }
   0x6   : > { %p31_p0 = scmp.ge.s32.totalorder %s29_s23, 2  ;;  %p139_p1 = scmp.ne.s32.totalorder %s4503_s17, %s4499_s16 }
   0x7   : > { %p140_p2 = scmp.eq.s32.totalorder %s3382_s21, 1  ;;  %p145_p3 = scmp.ne.s32.totalorder %s4499_s16, %s4495_s15 }
   0x8   : > { %s5976_s23 = smov (%p31_p0, %s29_s23), 0  ;;  %p146_p5 = scmp.eq.s32.totalorder %s3383_s22, 1 }
   0x9   : > { %p4594_p4 = por %p140_p2, %p139_p1  ;;  %s124_s26 = ssub.s32 %s4511_s19, %s5976_s23 }
   0xa   : > { %p3386_p6 = scmp.ge.s32.totalorder %s4515_s20, 1  ;;  %p127_p7 = scmp.eq.s32.totalorder %s124_s26, 0 }
   0xb   : > { %p4601_p8 = por %p146_p5, %p145_p3  ;;  %p186_p9 = scmp.lt.s32.totalorder %s4515_s20, 3 }
   0xc   : > { %s4607_s28 = scalar_select %p127_p7, %s4503_s17, %s129_s24  }
   0xd   : > { %p187_p10 = pnand %p3386_p6, %p186_p9 }
   0xe   : > { %p217_p11 = scmp.lt.s32.totalorder (!%p187_p10), %s4507_s18, 1  ;;  %s213_s22 = sand.u32 (!%p187_p10), 1, %s4499_s16  }
   0xf   : > { %190 = sbr.rel (%p187_p10) target bundleno = 2227 (0x8b3), region = 36  ;;  %s3387_s24 = sshll.u32 (!%p187_p10), %s213_s22, 8 }
  0x10   : > { %s4975_s26 = scalar_lea.vmem (!%p187_p10), [#allocation2], %s3387_s24  ;;  %s3644_s7 = sshll.u32 (!%p187_p10), %s4507_s18, 12 }
  0x11   : > { %s3303_s8 = sshll.u32 (!%p187_p10), %s4975_s26, 4  ;;  %s4526_s13 = smov (!%p187_p10), [#allocation2]   ;;  %s5912_s8 = int_to_ptr.vmem [resolvable:$true] %s3303_s8 }
  0x12   : > { %s4439_s12 = scalar_lea.vmem (!%p187_p10), %s5912_s8, 4096  ;;  %s4443_s14 = sshll.u32 (!%p187_p10), %s4526_s13, 4  ;;  %s4444_s14 = int_to_ptr.vmem [resolvable:$false] %s4443_s14 }
  0x13   : > { %p4440_p12 = scmp.ne.s32.totalorder (!%p187_p10), %s5912_s8, %s4439_s12  ;;  %s4445_s21 = scalar_lea.vmem (!%p187_p10), %s4444_s14, 8192 }
  0x14   : > { %v4517_v0 = vmov 0.0   ;;  %s218_s29 = scalar_select %p217_p11, %s4507_s18, 1  ;;  %v4518_v1 = vmov 0   ;;  %v4616_v2 = vld [vmem:[%s5964_s1 + $0x18] sm:$0xff]  ;;  %v4621_v3 = vld [vmem:[%s5964_s1 + $0x8] sm:$0xff]  ;;  %v4630_v4 = vld [vmem:[%s5964_s1 + $0x10] sm:$0xff] }
  0x15   : > { %364 = vmatprep.mubr.f32.mxu0 %v4517_v0  ;;  %757 = vmatprep.mubr.f32.mxu1 %v4517_v0  ;;  %v4645_v9 = vld [vmem:[%s5964_s1] sm:$0xff]  ;;  %v4660_v13 = vld [vmem:[%s5964_s1 + $0x38] sm:$0xff]  ;;  %v4669_v15 = vld [vmem:[%s5964_s1 + $0x30] sm:$0xff]  ;;  %vm263_vm0 = vcmask 261120   ;;  %v4519_v40 = vmov 1   ;;  %s5918_s18 = scalar_lea.sflag [#allocation3], %s213_s22  ;;  %p4441_p13 = pnand %p4440_p12, %p4594_p4 }
  0x16   : > { %3711 = vset.pattern.permute.xlu0 %v4518_v1  ;;  %3712 = vset.pattern.permute.xlu1 %v4518_v1  ;;  %s3643_s30 = sshll.u32 %s218_s29, 6  ;;  %v4675_v16 = vld [vmem:[%s5965_s2] sm:$0xff]  ;;  %v4683_v17 = vld [vmem:[%s5964_s1 + $0x28] sm:$0xff]  ;;  %v250_v20 = vld [vmem:[%s5966_s3 + $0x18] sm:$0xff]  ;;  %p4446_p1 = scmp.lt.s32.totalorder %s5912_s8, %s4444_s14 }
  0x17   : > { %s224_s11 = scalar_lea.vmem %s5963_s0, %s3643_s30  ;;  %454 = vperm.xlu0 %3711, %v4616_v2   ;;  %444 = vperm.xlu1 %3712, %v4621_v3   ;;  %v4691_v18 = vld [vmem:[%s5964_s1 + $0x20] sm:$0xff]  ;;  %v4697_v19 = vld [vmem:[%s5965_s2 + $0x8] sm:$0xff]  ;;  %v249_v21 = vld [vmem:[%s5966_s3 + $0x10] sm:$0xff]  ;;  %p4442_p0 = pneg %p4441_p13 }
  0x18   : > { %v4633_v5 = vld [vmem:[%s224_s11 + $0x38] sm:$0xff]  ;;  %v4635_v6 = vld [vmem:[%s224_s11 + $0x30] sm:$0xff]  ;;  %v4637_v7 = vld [vmem:[%s224_s11 + $0x28] sm:$0xff]  ;;  %p4447_p2 = scmp.lt.s32.totalorder %s4445_s21, %s4439_s12 }
  0x19   : > { %324 = vmatprep.subr.mxu0 %v4633_v5  ;;  %v4640_v8 = vld [vmem:[%s224_s11 + $0x20] sm:$0xff]  ;;  %v4648_v10 = vld [vmem:[%s224_s11 + $0x18] sm:$0xff]  ;;  %v4651_v11 = vld [vmem:[%s224_s11 + $0x10] sm:$0xff] }
  0x1a   : > { %325 = vmatpush1.msra.mxu0 %v4635_v6  ;;  %v4655_v12 = vld [vmem:[%s224_s11 + $0x8] sm:$0xff]  ;;  %v4664_v14 = vld [vmem:[%s224_s11] sm:$0xff]  ;;  %v4713_v22 = vld [vmem:[%s5965_s2 + $0x10] sm:$0xff]  ;;  %s5910_s11 = scalar_lea.hbm %s5967_s4, %s3644_s7  ;;  %p4448_p3 = por %p4447_p2, %p4446_p1 }
  0x1b   : > { %326 = vmatprep.subr.mxu0 %v4637_v7  ;;  %449 = vperm.xlu0 %3711, %v4630_v4   ;;  %v248_v23 = vld [vmem:[%s5966_s3 + $0x8] sm:$0xff]  ;;  %v4723_v24 = vld [vmem:[%s5964_s1 + $0x58] sm:$0xff]  ;;  %v247_v26 = vld [vmem:[%s5966_s3] sm:$0xff] }
  0x1c   : > { %327 = vmatpush1.msra.mxu0 %v4640_v8  ;;  %439 = vperm.xlu1 %3712, %v4645_v9   ;;  %v4729_v25 = vld [vmem:[%s5965_s2 + $0x18] sm:$0xff]  ;;  %v4740_v27 = vld [vmem:[%s5964_s1 + $0x50] sm:$0xff]  ;;  %v4746_v28 = vld [vmem:[%s5965_s2 + $0x20] sm:$0xff]  ;;  %p4449_p5 = pnand %p4448_p3, %p4442_p0 }
  0x1d   : > { %328 = vmatprep.subr.mxu0 %v4648_v10  ;;  %v4752_v29 = vld [vmem:[%s5964_s1 + $0x48] sm:$0xff]  ;;  %v4759_v30 = vld [vmem:[%s5964_s1 + $0x40] sm:$0xff]  ;;  %v4775_v32 = vld [vmem:[%s5965_s2 + $0x30] sm:$0xff] }
  0x1e   : > { %329 = vmatpush1.msra.mxu0 %v4651_v11  ;;  %v4765_v31 = vld [vmem:[%s5965_s2 + $0x28] sm:$0xff]  ;;  %v4783_v33 = vld [vmem:[%s5965_s2 + $0x38] sm:$0xff]  ;;  %v4791_v34 = vld [vmem:[%s5965_s2 + $0x40] sm:$0xff] }
  0x1f   : > { %330 = vmatprep.subr.mxu0 %v4655_v12  ;;  %530 = vperm.xlu0 %3711, %v4660_v13   ;;  %v4799_v35 = vld [vmem:[%s5965_s2 + $0x48] sm:$0xff]  ;;  %v4807_v36 = vld [vmem:[%s5965_s2 + $0x50] sm:$0xff]  ;;  %v4815_v37 = vld [vmem:[%s5965_s2 + $0x58] sm:$0xff] }
  0x20   : > { %331 = vmatpush1.msra.mxu0 %v4664_v14  ;;  %525 = vperm.xlu1 %3712, %v4669_v15  }
  0x21   : > { %3390 = vmatmul.mubr.msk.f32.vlgmr.msra.gmra.mxu0 %vm263_vm0, %v4675_v16 }
  0x22   : > { %370 = vmatprep.mubr.f32.mxu0 %v4517_v0 }
  0x23   : > { %520 = vperm.xlu0 %3711, %v4683_v17  }
  0x24   : > { %515 = vperm.xlu1 %3712, %v4691_v18  }
  0x25   : > { %3391 = vmatmul.mubr.msk.f32.gmra.mxu0 %vm263_vm0, %v4697_v19 }
  0x26   : > { %376 = vmatprep.mubr.f32.mxu0 %v4517_v0 }
  0x27   : > { %606 = vperm.xlu0 %3711, %v250_v20  }
  0x28   : > { %601 = vperm.xlu1 %3712, %v249_v21  }
  0x29   : > { %3392 = vmatmul.mubr.msk.f32.gmra.mxu0 %vm263_vm0, %v4713_v22 }
  0x2a   : > { %382 = vmatprep.mubr.f32.mxu0 %v4517_v0 }
  0x2b   : > { %596 = vperm.xlu0 %3711, %v248_v23  }
  0x2c   : > { %642 = vperm.xlu1 %3712, %v4723_v24  }
  0x2d   : > { %3393 = vmatmul.mubr.msk.f32.gmra.mxu0 %vm263_vm0, %v4729_v25 }
  0x2e   : > { %388 = vmatprep.mubr.f32.mxu0 %v4517_v0 }
  0x2f   : > { %591 = vperm.xlu0 %3711, %v247_v26  }
  0x30   : > { %637 = vperm.xlu1 %3712, %v4740_v27  }
  0x31   : > { %3394 = vmatmul.mubr.msk.f32.gmra.mxu0 %vm263_vm0, %v4746_v28 }
  0x32   : > { %394 = vmatprep.mubr.f32.mxu0 %v4517_v0 }
  0x33   : > { %632 = vperm.xlu0 %3711, %v4752_v29  }
  0x34   : > { %627 = vperm.xlu1 %3712, %v4759_v30  }
  0x35   : > { %3395 = vmatmul.mubr.msk.f32.gmra.mxu0 %vm263_vm0, %v4765_v31 }
  0x36   : > { %400 = vmatprep.mubr.f32.mxu0 %v4517_v0 }
  0x37   : > { %3713 = vset.pattern.permute.xlu0 %v4519_v40 }
  0x38   : > { %3714 = vset.pattern.permute.xlu1 %v4519_v40  ;;  %843 = vperm.xlu0 %3713, %v4616_v2  }
  0x39   : > { %3396 = vmatmul.mubr.msk.f32.gmra.mxu0 %vm263_vm0, %v4775_v32  ;;  %839 = vperm.xlu1 %3714, %v4630_v4  }
  0x3a   : > { %406 = vmatprep.mubr.f32.mxu0 %v4517_v0 }
  0x3c   : > { %831 = vperm.xlu0 %3713, %v4645_v9  }
  0x3d   : > { %3397 = vmatmul.mubr.msk.f32.gmra.mxu0 %vm263_vm0, %v4783_v33  ;;  %835 = vperm.xlu1 %3714, %v4621_v3  }
  0x3e   : > { %412 = vmatprep.mubr.f32.mxu0 %v4517_v0 }
  0x40   : > { %911 = vperm.xlu0 %3713, %v4669_v15  }
  0x41   : > { %3398 = vmatmul.mubr.msk.f32.gmra.mxu0 %vm263_vm0, %v4791_v34  ;;  %915 = vperm.xlu1 %3714, %v4660_v13  }
  0x42   : > { %418 = vmatprep.mubr.f32.mxu0 %v4517_v0 }
  0x44   : > { %903 = vperm.xlu0 %3713, %v4691_v18  }
  0x45   : > { %3399 = vmatmul.mubr.msk.f32.gmra.mxu0 %vm263_vm0, %v4799_v35  ;;  %907 = vperm.xlu1 %3714, %v4683_v17  }
  0x46   : > { %424 = vmatprep.mubr.f32.mxu0 %v4517_v0 }
  0x48   : > { %999 = vperm.xlu0 %3713, %v4740_v27  }
  0x49   : > { %3400 = vmatmul.mubr.msk.f32.gmra.mxu0 %vm263_vm0, %v4807_v36  ;;  %1003 = vperm.xlu1 %3714, %v4723_v24  }
  0x4a   : > { %430 = vmatprep.mubr.f32.mxu0 %v4517_v0 }
  0x4c   : > { %991 = vperm.xlu0 %3713, %v4759_v30  }
  0x4d   : > { %3401 = vmatmul.mubr.msk.f32.gmra.mxu0 %vm263_vm0, %v4815_v37  ;;  %995 = vperm.xlu1 %3714, %v4752_v29  }
  0x4e   : > { %1134 = vmatprep.mubr.f32.mxu0 %v4517_v0 }
  0x92   : > { %v445_v38 = vpop.permute.xlu1 %444  ;;  %v455_v39 = vpop.permute.xlu0 %454 }
  0x96   : > { %v450_v44 = vpop.permute.xlu0 %449 }
  0x97   : > { %v440_v41 = vpop.permute.xlu1 %439 }
  0x9a   : > { %v4826_v54 = vpop.permute.xlu0 %530 }
  0x9b   : > { %v526_v58 = vpop.permute.xlu1 %525 }
  0x9e   : > { %v521_v20 = vpop.permute.xlu0 %520 }
  0xe1   : > { %v366_v42 = vpop.f32.mrf.mxu0 }
  0xe2   : > { %v457_v43 = vadd.f32 %v440_v41, %v366_v42 }
  0xe3   : > { %v368_v45 = vpop.f32.mrf.mxu0 }
  0xe4   : > { %v3402_v46 = vmul.f32 -1.442695, %v457_v43  ;;  %v458_v47 = vadd.f32 %v440_v41, %v368_v45 }
  0xe5   : > { %v372_v48 = vpop.f32.mrf.mxu0 }
  0xe6   : > { %3727 = vpow2.f32 %v3402_v46  ;;  %v3403_v49 = vmul.f32 -1.442695, %v458_v47  ;;  %v459_v50 = vadd.f32 %v445_v38, %v372_v48  ;;  %v4834_v46 = vpop.permute.xlu0 %606 }
  0xe7   : > { %v374_v51 = vpop.f32.mrf.mxu0 }
  0xe8   : > { %3729 = vpow2.f32 %v3403_v49  ;;  %v3404_v52 = vmul.f32 -1.442695, %v459_v50  ;;  %v460_v53 = vadd.f32 %v445_v38, %v374_v51  ;;  %v516_v38 = vpop.permute.xlu1 %515 }
  0xe9   : > { %v378_v55 = vpop.f32.mrf.mxu0 }
  0xea   : > { %3731 = vpow2.f32 %v3404_v52  ;;  %v3405_v56 = vmul.f32 -1.442695, %v460_v53  ;;  %v461_v57 = vadd.f32 %v450_v44, %v378_v55 }
  0xeb   : > { %v380_v59 = vpop.f32.mrf.mxu0 }
  0xec   : > { %3733 = vpow2.f32 %v3405_v56  ;;  %v3406_v60 = vmul.f32 -1.442695, %v461_v57  ;;  %v462_v61 = vadd.f32 %v450_v44, %v380_v59  ;;  %v4836_v49 = vpop.permute.xlu1 %601  ;;  %v4838_v59 = vpop.permute.xlu0 %596 }
  0xed   : > { %v384_v62 = vpop.f32.mrf.mxu0 }
  0xee   : > { %3735 = vpow2.f32 %v3406_v60  ;;  %v3407_v63 = vmul.f32 -1.442695, %v462_v61  ;;  %v463_v1 = vadd.f32 %v455_v39, %v384_v62 }
  0xef   : > { %v386_v21 = vpop.f32.mrf.mxu0 }
  0xf0   : > { %3737 = vpow2.f32 %v3407_v63  ;;  %v3408_v23 = vmul.f32 -1.442695, %v463_v1  ;;  %v464_v26 = vadd.f32 %v455_v39, %v386_v21  ;;  %v4840_v21 = vpop.permute.xlu1 %642 }
  0xf1   : > { %v390_v40 = vpop.f32.mrf.mxu0 }
  0xf2   : > { %3739 = vpow2.f32 %v3408_v23  ;;  %v3409_v41 = vmul.f32 -1.442695, %v464_v26 }
  0xf3   : > { %v3728_v42 = vpop.eup %3727  ;;  %v392_v43 = vpop.f32.mrf.mxu0 }
  0xf4   : > { %v489_v44 = vadd.f32 1.0, %v3728_v42  ;;  %3741 = vpow2.f32 %v3409_v41 }
  0xf5   : > { %v3730_v45 = vpop.eup %3729  ;;  %v396_v39 = vpop.f32.mrf.mxu0 }
  0xf6   : > { %3743 = vrcp.f32 %v489_v44  ;;  %v490_v47 = vadd.f32 1.0, %v3730_v45 }
  0xf7   : > { %v3732_v48 = vpop.eup %3731  ;;  %v398_v50 = vpop.f32.mrf.mxu0 }
  0xf8   : > { %3745 = vrcp.f32 %v490_v47  ;;  %v491_v51 = vadd.f32 1.0, %v3732_v48  ;;  %v536_v23 = vadd.f32 %v521_v20, %v398_v50  ;;  %v534_v47 = vadd.f32 %v516_v38, %v392_v43 }
  0xf9   : > { %v3734_v52 = vpop.eup %3733  ;;  %v402_v53 = vpop.f32.mrf.mxu0  ;;  %v535_v48 = vadd.f32 %v521_v20, %v396_v39  ;;  %v533_v50 = vadd.f32 %v516_v38, %v390_v40 }
  0xfa   : > { %3747 = vrcp.f32 %v491_v51  ;;  %v492_v55 = vadd.f32 1.0, %v3734_v52  ;;  %v537_v56 = vadd.f32 %v526_v58, %v402_v53  ;;  %v638_v39 = vpop.permute.xlu1 %637 }
  0xfb   : > { %v3736_v57 = vpop.eup %3735  ;;  %v404_v60 = vpop.f32.mrf.mxu0 }
  0xfc   : > { %3749 = vrcp.f32 %v492_v55  ;;  %v493_v61 = vadd.f32 1.0, %v3736_v57  ;;  %v3414_v62 = vmul.f32 -1.442695, %v537_v56  ;;  %v538_v63 = vadd.f32 %v526_v58, %v404_v60  ;;  %v4844_v56 = vpop.permute.xlu0 %591 }
  0xfd   : > { %v3738_v1 = vpop.eup %3737  ;;  %v408_v26 = vpop.f32.mrf.mxu0  ;;  %v3413_v57 = vmul.f32 -1.442695, %v536_v23 }
  0xfe   : > { %3751 = vrcp.f32 %v493_v61  ;;  %v494_v41 = vadd.f32 1.0, %v3738_v1  ;;  %v3415_v42 = vmul.f32 -1.442695, %v538_v63  ;;  %v539_v44 = vadd.f32 %v4826_v54, %v408_v26 }
  0xff   : > { %v3740_v45 = vpop.eup %3739  ;;  %3753 = vpow2.f32 %v3414_v62  ;;  %v410_v51 = vpop.f32.mrf.mxu0  ;;  %v3412_v62 = vmul.f32 -1.442695, %v535_v48  ;;  %v3411_v26 = vmul.f32 -1.442695, %v534_v47 }
 0x100   : > { %3755 = vrcp.f32 %v494_v41  ;;  %v495_v52 = vadd.f32 1.0, %v3740_v45  ;;  %v3416_v53 = vmul.f32 -1.442695, %v539_v44  ;;  %v540_v58 = vadd.f32 %v4826_v54, %v410_v51  ;;  %v628_v47 = vpop.permute.xlu1 %627 }
 0x101   : > { %v3742_v55 = vpop.eup %3741  ;;  %3757 = vpow2.f32 %v3415_v42  ;;  %v414_v60 = vpop.f32.mrf.mxu0  ;;  %v3410_v44 = vmul.f32 -1.442695, %v533_v50 }
 0x102   : > { %3759 = vrcp.f32 %v495_v52  ;;  %v496_v61 = vadd.f32 1.0, %v3742_v55  ;;  %v3417_v63 = vmul.f32 -1.442695, %v540_v58  ;;  %v609_v43 = vadd.f32 %v4844_v56, %v414_v60 }
 0x103   : > { %v3744_v20 = vpop.eup %3743  ;;  %3761 = vpow2.f32 %v3416_v53  ;;  %v416_v1 = vpop.f32.mrf.mxu0 }
 0x104   : > { %3763 = vrcp.f32 %v496_v61  ;;  %v610_v54 = vadd.f32 %v4844_v56, %v416_v1  ;;  %v617_v40 = vmul.f32 %v3744_v20, %v609_v43  ;;  %v633_v61 = vpop.permute.xlu0 %632 }
 0x105   : > { %v3746_v41 = vpop.eup %3745  ;;  %3765 = vpow2.f32 %v3417_v63  ;;  %v420_v38 = vpop.f32.mrf.mxu0 }
 0x106   : > { %3767 = vpow2.f32 %v3413_v57  ;;  %v611_v23 = vadd.f32 %v4838_v59, %v420_v38  ;;  %v618_v45 = vmul.f32 %v3746_v41, %v610_v54  ;;  %v645_v55 = vadd.f32 %v628_v47, %v617_v40 }
 0x107   : > { %v3748_v42 = vpop.eup %3747  ;;  %3769 = vpow2.f32 %v3412_v62  ;;  %v422_v51 = vpop.f32.mrf.mxu0 }
 0x108   : > { %3771 = vpow2.f32 %v3411_v26  ;;  %v619_v48 = vmul.f32 %v3748_v42, %v611_v23  ;;  %v612_v52 = vadd.f32 %v4838_v59, %v422_v51  ;;  %v646_v63 = vadd.f32 %v628_v47, %v618_v45 }
 0x109   : > { %v3750_v53 = vpop.eup %3749  ;;  %3773 = vpow2.f32 %v3410_v44  ;;  %v426_v58 = vpop.f32.mrf.mxu0 }
 0x10a   : > { %v620_v50 = vmul.f32 %v3750_v53, %v612_v52  ;;  %v613_v60 = vadd.f32 %v4836_v49, %v426_v58  ;;  %v647_v62 = vadd.f32 %v633_v61, %v619_v48  ;;  %3775 = vtanh.f32 %v645_v55 }
 0x10b   : > { %v3752_v57 = vpop.eup %3751  ;;  %v428_v43 = vpop.f32.mrf.mxu0  ;;  %3777 = vtanh.f32 %v646_v63 }
 0x10c   : > { %v3754_v20 = vpop.eup %3753  ;;  %v621_v1 = vmul.f32 %v3752_v57, %v613_v60  ;;  %v614_v26 = vadd.f32 %v4836_v49, %v428_v43  ;;  %v648_v41 = vadd.f32 %v633_v61, %v620_v50  ;;  %3779 = vtanh.f32 %v647_v62 }
 0x10d   : > { %v3756_v54 = vpop.eup %3755  ;;  %v432_v38 = vpop.f32.mrf.mxu0 }
 0x10e   : > { %v3758_v23 = vpop.eup %3757  ;;  %v622_v44 = vmul.f32 %v3756_v54, %v614_v26  ;;  %v615_v40 = vadd.f32 %v4834_v46, %v432_v38  ;;  %v649_v51 = vadd.f32 %v638_v39, %v621_v1  ;;  %3781 = vtanh.f32 %v648_v41 }
 0x10f   : > { %v3760_v42 = vpop.eup %3759  ;;  %v434_v52 = vpop.f32.mrf.mxu0  ;;  %v570_v60 = vadd.f32 1.0, %v3758_v23  ;;  %v569_v26 = vadd.f32 1.0, %v3754_v20 }
 0x110   : > { %v3762_v53 = vpop.eup %3761  ;;  %v650_v45 = vadd.f32 %v638_v39, %v622_v44  ;;  %v623_v47 = vmul.f32 %v3760_v42, %v615_v40  ;;  %v616_v48 = vadd.f32 %v4834_v46, %v434_v52 }
 0x111   : > { %v3764_v58 = vpop.eup %3763  ;;  %v571_v43 = vadd.f32 1.0, %v3762_v53 }
 0x112   : > { %v3766_v50 = vpop.eup %3765  ;;  %3783 = vtanh.f32 %v650_v45  ;;  %v651_v55 = vadd.f32 %v4840_v21, %v623_v47  ;;  %v624_v57 = vmul.f32 %v3764_v58, %v616_v48 }
 0x113   : > { %v3768_v61 = vpop.eup %3767  ;;  %3785 = vtanh.f32 %v649_v51  ;;  %v572_v1 = vadd.f32 1.0, %v3766_v50 }
 0x114   : > { %v3770_v63 = vpop.eup %3769  ;;  %3787 = vtanh.f32 %v651_v55  ;;  %v652_v62 = vadd.f32 %v4840_v21, %v624_v57  ;;  %v568_v38 = vadd.f32 1.0, %v3768_v61 }
 0x115   : > { %v3772_v39 = vpop.eup %3771  ;;  %3789 = vrcp.f32 %v570_v60  ;;  %v567_v41 = vadd.f32 1.0, %v3770_v63 }
 0x116   : > { %v3774_v54 = vpop.eup %3773  ;;  %3791 = vtanh.f32 %v652_v62  ;;  %v566_v23 = vadd.f32 1.0, %v3772_v39 }
 0x117   : > { %3793 = vrcp.f32 %v571_v43  ;;  %v565_v44 = vadd.f32 1.0, %v3774_v54  ;;  %v3776_v40 = vpop.eup %3775 }
 0x118   : > { %3795 = vrcp.f32 %v572_v1  ;;  %v3778_v42 = vpop.eup %3777 }
 0x119   : > { %3797 = vrcp.f32 %v569_v26  ;;  %v3780_v51 = vpop.eup %3779  ;;  %v662_v26 = vsub.f32 %v4655_v12, %v3778_v42 }
 0x11a   : > { %3799 = vrcp.f32 %v568_v38  ;;  %v663_v63 = vsub.f32 %v4651_v11, %v3780_v51 }
 0x11b   : > { %3801 = vrcp.f32 %v567_v41  ;;  %v3782_v21 = vpop.eup %3781 }
 0x11c   : > { %3803 = vrcp.f32 %v566_v23  ;;  %v664_v57 = vsub.f32 %v4648_v10, %v3782_v21 }
 0x11d   : > { %3805 = vrcp.f32 %v565_v44 }
 0x11f   : > { %v3784_v52 = vpop.eup %3783 }
 0x120   : > { %v3786_v20 = vpop.eup %3785  ;;  %v666_v48 = vsub.f32 %v4637_v7, %v3784_v52  ;;  %v661_v7 = vsub.f32 %v4664_v14, %v3776_v40 }
 0x121   : > { %v3788_v53 = vpop.eup %3787  ;;  %v665_v60 = vsub.f32 %v4640_v8, %v3786_v20 }
 0x122   : > { %v3790_v45 = vpop.eup %3789  ;;  %v667_v47 = vsub.f32 %v4635_v6, %v3788_v53 }
 0x123   : > { %v3792_v58 = vpop.eup %3791  ;;  %v674_v39 = vmul.f32 %v3790_v45, %v666_v48 }
 0x124   : > { %v3794_v50 = vpop.eup %3793  ;;  %v668_v55 = vsub.f32 %v4633_v5, %v3792_v58 }
 0x125   : > { %v3796_v61 = vpop.eup %3795  ;;  %v675_v43 = vmul.f32 %v3794_v50, %v667_v47  ;;  %v4869_v11 = vadd.f32 %v3784_v52, %v674_v39 }
 0x126   : > { %v3798_v1 = vpop.eup %3797  ;;  %v676_v62 = vmul.f32 %v3796_v61, %v668_v55 }
 0x127   : > { %v3800_v6 = vpop.eup %3799  ;;  %v673_v54 = vmul.f32 %v3798_v1, %v665_v60  ;;  %v4866_v23 = vadd.f32 %v3788_v53, %v675_v43 }
 0x128   : > { %v3802_v38 = vpop.eup %3801  ;;  %v4864_v8 = vadd.f32 %v3792_v58, %v676_v62  ;;  %v672_v41 = vmul.f32 %v3800_v6, %v664_v57 }
 0x129   : > { %v3804_v5 = vpop.eup %3803  ;;  %v671_v10 = vmul.f32 %v3802_v38, %v663_v63  ;;  %v4872_v12 = vadd.f32 %v3786_v20, %v673_v54 }
 0x12a   : > { %v3806_v44 = vpop.eup %3805  ;;  %717 = vmatprep.subr.mxu1 %v4864_v8  ;;  %v670_v45 = vmul.f32 %v3804_v5, %v662_v26  ;;  %v4875_v14 = vadd.f32 %v3782_v21, %v672_v41 }
 0x12b   : > { %718 = vmatpush1.msra.mxu1 %v4866_v23  ;;  %v669_v47 = vmul.f32 %v3806_v44, %v661_v7  ;;  %v4878_v53 = vadd.f32 %v3780_v51, %v671_v10 }
 0x12c   : > { %719 = vmatprep.subr.mxu1 %v4869_v11  ;;  %v4881_v48 = vadd.f32 %v3778_v42, %v670_v45 }
 0x12d   : > { %720 = vmatpush1.msra.mxu1 %v4872_v12  ;;  %v4884_v52 = vadd.f32 %v3776_v40, %v669_v47 }
 0x12e   : > { %721 = vmatprep.subr.mxu1 %v4875_v14 }
 0x12f   : > { %722 = vmatpush1.msra.mxu1 %v4878_v53 }
 0x130   : > { %723 = vmatprep.subr.mxu1 %v4881_v48 }
 0x131   : > { %724 = vmatpush1.msra.mxu1 %v4884_v52 }
 0x132   : > { %3418 = vmatmul.mubr.msk.f32.vlgmr.msra.gmra.mxu1 %vm263_vm0, %v4675_v16  ;;  %v844_v16 = vpop.permute.xlu0 %843 }
 0x133   : > { %763 = vmatprep.mubr.f32.mxu1 %v4517_v0 }
 0x136   : > { %3419 = vmatmul.mubr.msk.f32.gmra.mxu1 %vm263_vm0, %v4697_v19  ;;  %v840_v19 = vpop.permute.xlu1 %839 }
 0x137   : > { %769 = vmatprep.mubr.f32.mxu1 %v4517_v0 }
 0x13a   : > { %3420 = vmatmul.mubr.msk.f32.gmra.mxu1 %vm263_vm0, %v4713_v22  ;;  %v4520_v22 = vmov 2  }
 0x13b   : > { %775 = vmatprep.mubr.f32.mxu1 %v4517_v0  ;;  %3715 = vset.pattern.permute.xlu1 %v4520_v22 }
 0x13c   : > { %3716 = vset.pattern.permute.xlu0 %v4520_v22  ;;  %1220 = vperm.xlu1 %3715, %v4616_v2  }
 0x13d   : > { %1216 = vperm.xlu0 %3716, %v4630_v4  }
 0x13e   : > { %3421 = vmatmul.mubr.msk.f32.gmra.mxu1 %vm263_vm0, %v4729_v25  ;;  %v832_v25 = vpop.permute.xlu0 %831 }
 0x13f   : > { %781 = vmatprep.mubr.f32.mxu1 %v4517_v0 }
 0x140   : > { %1212 = vperm.xlu1 %3715, %v4621_v3  }
 0x141   : > { %1292 = vperm.xlu0 %3716, %v4660_v13  }
 0x142   : > { %3422 = vmatmul.mubr.msk.f32.gmra.mxu1 %vm263_vm0, %v4746_v28  ;;  %v912_v3 = vpop.permute.xlu0 %911 }
 0x143   : > { %787 = vmatprep.mubr.f32.mxu1 %v4517_v0 }
 0x144   : > { %1208 = vperm.xlu1 %3715, %v4645_v9  }
 0x145   : > { %1284 = vperm.xlu0 %3716, %v4683_v17  }
 0x146   : > { %3423 = vmatmul.mubr.msk.f32.gmra.mxu1 %vm263_vm0, %v4765_v31  ;;  %v904_v63 = vpop.permute.xlu0 %903 }
 0x147   : > { %793 = vmatprep.mubr.f32.mxu1 %v4517_v0 }
 0x148   : > { %1288 = vperm.xlu1 %3715, %v4669_v15  }
 0x149   : > { %1380 = vperm.xlu0 %3716, %v4723_v24  }
 0x14a   : > { %3424 = vmatmul.mubr.msk.f32.gmra.mxu1 %vm263_vm0, %v4775_v32 }
 0x14b   : > { %799 = vmatprep.mubr.f32.mxu1 %v4517_v0 }
 0x14c   : > { %1280 = vperm.xlu1 %3715, %v4691_v18  }
 0x14d   : > { %1372 = vperm.xlu0 %3716, %v4752_v29  }
 0x14e   : > { %3425 = vmatmul.mubr.msk.f32.gmra.mxu1 %vm263_vm0, %v4783_v33 }
 0x14f   : > { %805 = vmatprep.mubr.f32.mxu1 %v4517_v0 }
 0x150   : > { %1376 = vperm.xlu1 %3715, %v4740_v27  }
 0x152   : > { %3426 = vmatmul.mubr.msk.f32.gmra.mxu1 %vm263_vm0, %v4791_v34 }
 0x153   : > { %811 = vmatprep.mubr.f32.mxu1 %v4517_v0 }
 0x154   : > { %1368 = vperm.xlu1 %3715, %v4759_v30  }
 0x156   : > { %3427 = vmatmul.mubr.msk.f32.gmra.mxu1 %vm263_vm0, %v4799_v35  ;;  %v836_v35 = vpop.permute.xlu1 %835 }
 0x157   : > { %817 = vmatprep.mubr.f32.mxu1 %v4517_v0 }
 0x15a   : > { %3428 = vmatmul.mubr.msk.f32.gmra.mxu1 %vm263_vm0, %v4807_v36  ;;  %v916_v9 = vpop.permute.xlu1 %915 }
 0x15b   : > { %823 = vmatprep.mubr.f32.mxu1 %v4517_v0 }
 0x15e   : > { %3429 = vmatmul.mubr.msk.f32.gmra.mxu1 %vm263_vm0, %v4815_v37  ;;  %v908_v38 = vpop.permute.xlu1 %907 }
 0x15f   : > { %1495 = vmatprep.mubr.f32.mxu1 %v4517_v0 }
 0x1f2   : > { %v759_v28 = vpop.f32.mrf.mxu1 }
 0x1f3   : > { %v846_v31 = vadd.f32 %v832_v25, %v759_v28 }
 0x1f4   : > { %v761_v32 = vpop.f32.mrf.mxu1 }
 0x1f5   : > { %v3430_v33 = vmul.f32 -1.442695, %v846_v31  ;;  %v847_v34 = vadd.f32 %v832_v25, %v761_v32 }
 0x1f6   : > { %v765_v36 = vpop.f32.mrf.mxu1 }
 0x1f7   : > { %3807 = vpow2.f32 %v3430_v33  ;;  %v3431_v37 = vmul.f32 -1.442695, %v847_v34  ;;  %v848_v40 = vadd.f32 %v836_v35, %v765_v36 }
 0x1f8   : > { %v767_v42 = vpop.f32.mrf.mxu1 }
 0x1f9   : > { %3809 = vpow2.f32 %v3431_v37  ;;  %v3432_v2 = vmul.f32 -1.442695, %v848_v40  ;;  %v849_v51 = vadd.f32 %v836_v35, %v767_v42 }
 0x1fa   : > { %v771_v4 = vpop.f32.mrf.mxu1 }
 0x1fb   : > { %3811 = vpow2.f32 %v3432_v2  ;;  %v3433_v21 = vmul.f32 -1.442695, %v849_v51  ;;  %v850_v20 = vadd.f32 %v840_v19, %v771_v4  ;;  %v4936_v51 = vpop.permute.xlu0 %999 }
 0x1fc   : > { %v773_v58 = vpop.f32.mrf.mxu1 }
 0x1fd   : > { %3813 = vpow2.f32 %v3433_v21  ;;  %v3434_v13 = vmul.f32 -1.442695, %v850_v20  ;;  %v851_v60 = vadd.f32 %v840_v19, %v773_v58 }
 0x1fe   : > { %v777_v50 = vpop.f32.mrf.mxu1 }
 0x1ff   : > { %3815 = vpow2.f32 %v3434_v13  ;;  %v3435_v55 = vmul.f32 -1.442695, %v851_v60  ;;  %v852_v57 = vadd.f32 %v844_v16, %v777_v50 }
 0x200   : > { %v779_v61 = vpop.f32.mrf.mxu1 }
 0x201   : > { %3817 = vpow2.f32 %v3435_v55  ;;  %v3436_v17 = vmul.f32 -1.442695, %v852_v57  ;;  %v853_v43 = vadd.f32 %v844_v16, %v779_v61  ;;  %v4939_v61 = vpop.permute.xlu1 %1003 }
 0x202   : > { %v783_v1 = vpop.f32.mrf.mxu1 }
 0x203   : > { %3819 = vpow2.f32 %v3436_v17  ;;  %v3437_v62 = vmul.f32 -1.442695, %v853_v43  ;;  %v918_v15 = vadd.f32 %v904_v63, %v783_v1 }
 0x204   : > { %v3808_v39 = vpop.eup %3807  ;;  %v785_v24 = vpop.f32.mrf.mxu1 }
 0x205   : > { %v878_v26 = vadd.f32 1.0, %v3808_v39  ;;  %3821 = vpow2.f32 %v3437_v62  ;;  %v3438_v6 = vmul.f32 -1.442695, %v918_v15  ;;  %v919_v54 = vadd.f32 %v904_v63, %v785_v24 }
 0x206   : > { %v3810_v7 = vpop.eup %3809  ;;  %v789_v41 = vpop.f32.mrf.mxu1 }
 0x207   : > { %3823 = vrcp.f32 %v878_v26  ;;  %v879_v18 = vadd.f32 1.0, %v3810_v7  ;;  %v3439_v5 = vmul.f32 -1.442695, %v919_v54  ;;  %v920_v29 = vadd.f32 %v908_v38, %v789_v41 }
 0x208   : > { %v3812_v10 = vpop.eup %3811  ;;  %3825 = vpow2.f32 %v3438_v6  ;;  %v791_v44 = vpop.f32.mrf.mxu1 }
 0x209   : > { %3827 = vrcp.f32 %v879_v18  ;;  %v880_v45 = vadd.f32 1.0, %v3812_v10  ;;  %v3440_v47 = vmul.f32 -1.442695, %v920_v29  ;;  %v921_v16 = vadd.f32 %v908_v38, %v791_v44 }
 0x20a   : > { %v3814_v19 = vpop.eup %3813  ;;  %3829 = vpow2.f32 %v3439_v5  ;;  %v795_v22 = vpop.f32.mrf.mxu1 }
 0x20b   : > { %3831 = vrcp.f32 %v880_v45  ;;  %v881_v27 = vadd.f32 1.0, %v3814_v19  ;;  %v3441_v25 = vmul.f32 -1.442695, %v921_v16  ;;  %v922_v28 = vadd.f32 %v912_v3, %v795_v22  ;;  %v996_v45 = vpop.permute.xlu1 %995 }
 0x20c   : > { %v3816_v31 = vpop.eup %3815  ;;  %3833 = vpow2.f32 %v3440_v47  ;;  %v797_v32 = vpop.f32.mrf.mxu1 }
 0x20d   : > { %3835 = vrcp.f32 %v881_v27  ;;  %v882_v33 = vadd.f32 1.0, %v3816_v31  ;;  %v3442_v34 = vmul.f32 -1.442695, %v922_v28  ;;  %v923_v35 = vadd.f32 %v912_v3, %v797_v32 }
 0x20e   : > { %v3818_v36 = vpop.eup %3817  ;;  %3837 = vpow2.f32 %v3441_v25  ;;  %v801_v37 = vpop.f32.mrf.mxu1 }
 0x20f   : > { %3839 = vrcp.f32 %v882_v33  ;;  %v883_v40 = vadd.f32 1.0, %v3818_v36  ;;  %v3443_v30 = vmul.f32 -1.442695, %v923_v35  ;;  %v924_v42 = vadd.f32 %v916_v9, %v801_v37 }
 0x210   : > { %v3820_v2 = vpop.eup %3819  ;;  %3841 = vpow2.f32 %v3442_v34  ;;  %v803_v4 = vpop.f32.mrf.mxu1 }
 0x211   : > { %3843 = vrcp.f32 %v883_v40  ;;  %v884_v21 = vadd.f32 1.0, %v3820_v2  ;;  %v3444_v20 = vmul.f32 -1.442695, %v924_v42  ;;  %v925_v58 = vadd.f32 %v916_v9, %v803_v4  ;;  %v992_v9 = vpop.permute.xlu0 %991 }
 0x212   : > { %v3822_v13 = vpop.eup %3821  ;;  %3845 = vpow2.f32 %v3443_v30  ;;  %v807_v60 = vpop.f32.mrf.mxu1 }
 0x213   : > { %3847 = vrcp.f32 %v884_v21  ;;  %v885_v3 = vadd.f32 1.0, %v3822_v13  ;;  %v3445_v50 = vmul.f32 -1.442695, %v925_v58  ;;  %v974_v55 = vadd.f32 %v807_v60, %v4844_v56 }
 0x214   : > { %v3824_v57 = vpop.eup %3823  ;;  %3849 = vpow2.f32 %v3444_v20  ;;  %v809_v17 = vpop.f32.mrf.mxu1 }
 0x215   : > { %v3826_v43 = vpop.eup %3825  ;;  %3851 = vrcp.f32 %v885_v3  ;;  %v982_v63 = vmul.f32 %v3824_v57, %v974_v55  ;;  %v975_v1 = vadd.f32 %v809_v17, %v4844_v56 }
 0x216   : > { %v3828_v62 = vpop.eup %3827  ;;  %v950_v15 = vadd.f32 1.0, %v3826_v43  ;;  %3853 = vpow2.f32 %v3445_v50  ;;  %v813_v39 = vpop.f32.mrf.mxu1 }
 0x217   : > { %v3830_v24 = vpop.eup %3829  ;;  %v1006_v26 = vadd.f32 %v992_v9, %v982_v63  ;;  %v983_v6 = vmul.f32 %v3828_v62, %v975_v1  ;;  %v976_v54 = vadd.f32 %v813_v39, %v4838_v59 }
 0x218   : > { %v3832_v7 = vpop.eup %3831  ;;  %v951_v38 = vadd.f32 1.0, %v3830_v24  ;;  %v815_v41 = vpop.f32.mrf.mxu1 }
 0x219   : > { %v3834_v18 = vpop.eup %3833  ;;  %3855 = vtanh.f32 %v1006_v26  ;;  %v1007_v5 = vadd.f32 %v992_v9, %v983_v6  ;;  %v984_v29 = vmul.f32 %v3832_v7, %v976_v54  ;;  %v977_v10 = vadd.f32 %v815_v41, %v4838_v59 }
 0x21a   : > { %v3836_v44 = vpop.eup %3835  ;;  %3857 = vrcp.f32 %v950_v15  ;;  %v952_v47 = vadd.f32 1.0, %v3834_v18  ;;  %v819_v16 = vpop.f32.mrf.mxu1 }
 0x21b   : > { %v3838_v19 = vpop.eup %3837  ;;  %3859 = vtanh.f32 %v1007_v5  ;;  %v1008_v22 = vadd.f32 %v996_v45, %v984_v29  ;;  %v985_v27 = vmul.f32 %v3836_v44, %v977_v10  ;;  %v978_v25 = vadd.f32 %v819_v16, %v4836_v49 }
 0x21c   : > { %v3840_v28 = vpop.eup %3839  ;;  %3861 = vrcp.f32 %v951_v38  ;;  %v953_v31 = vadd.f32 1.0, %v3838_v19  ;;  %v821_v32 = vpop.f32.mrf.mxu1 }
 0x21d   : > { %v3842_v33 = vpop.eup %3841  ;;  %3863 = vtanh.f32 %v1008_v22  ;;  %v1009_v34 = vadd.f32 %v996_v45, %v985_v27  ;;  %v986_v35 = vmul.f32 %v3840_v28, %v978_v25  ;;  %v979_v36 = vadd.f32 %v821_v32, %v4836_v49 }
 0x21e   : > { %v3844_v37 = vpop.eup %3843  ;;  %3865 = vrcp.f32 %v952_v47  ;;  %v954_v40 = vadd.f32 1.0, %v3842_v33  ;;  %v825_v30 = vpop.f32.mrf.mxu1 }
 0x21f   : > { %v3846_v42 = vpop.eup %3845  ;;  %3867 = vtanh.f32 %v1009_v34  ;;  %v1010_v2 = vadd.f32 %v4936_v51, %v986_v35  ;;  %v987_v4 = vmul.f32 %v3844_v37, %v979_v36  ;;  %v980_v21 = vadd.f32 %v825_v30, %v4834_v46 }
 0x220   : > { %v3848_v20 = vpop.eup %3847  ;;  %3869 = vrcp.f32 %v953_v31  ;;  %v955_v58 = vadd.f32 1.0, %v3846_v42  ;;  %v827_v13 = vpop.f32.mrf.mxu1 }
 0x221   : > { %v3850_v60 = vpop.eup %3849  ;;  %3871 = vtanh.f32 %v1010_v2  ;;  %v1011_v3 = vadd.f32 %v4936_v51, %v987_v4  ;;  %v988_v50 = vmul.f32 %v3848_v20, %v980_v21  ;;  %v981_v55 = vadd.f32 %v827_v13, %v4834_v46 }
 0x222   : > { %v3852_v57 = vpop.eup %3851  ;;  %3873 = vrcp.f32 %v954_v40  ;;  %v956_v17 = vadd.f32 1.0, %v3850_v60 }
 0x223   : > { %v3854_v43 = vpop.eup %3853  ;;  %3875 = vtanh.f32 %v1011_v3  ;;  %v1012_v63 = vadd.f32 %v4939_v61, %v988_v50  ;;  %v989_v1 = vmul.f32 %v3852_v57, %v981_v55 }
 0x224   : > { %3877 = vrcp.f32 %v955_v58  ;;  %v957_v62 = vadd.f32 1.0, %v3854_v43 }
 0x225   : > { %3879 = vtanh.f32 %v1012_v63  ;;  %v1013_v9 = vadd.f32 %v4939_v61, %v989_v1 }
 0x226   : > { %v3856_v15 = vpop.eup %3855  ;;  %3881 = vrcp.f32 %v956_v17 }
 0x227   : > { %v3858_v51 = vpop.eup %3857  ;;  %3883 = vtanh.f32 %v1013_v9  ;;  %v1022_v39 = vsub.f32 %v4884_v52, %v3856_v15  ;;  %v5032_v9 = vld [vmem:[%s5965_s2 + $0x10] sm:$0xff] }
 0x228   : > { %v3860_v24 = vpop.eup %3859  ;;  %3885 = vrcp.f32 %v957_v62 }
 0x229   : > { %v3862_v26 = vpop.eup %3861  ;;  %v1023_v6 = vsub.f32 %v4881_v48, %v3860_v24  ;;  %v1030_v54 = vmul.f32 %v3858_v51, %v1022_v39  ;;  %v5048_v51 = vld [vmem:[%s5965_s2 + $0x20] sm:$0xff]  ;;  %v5056_v39 = vld [vmem:[%s5965_s2 + $0x28] sm:$0xff] }
 0x22a   : > { %v3864_v7 = vpop.eup %3863 }
 0x22b   : > { %v3866_v38 = vpop.eup %3865  ;;  %v1024_v41 = vsub.f32 %v4878_v53, %v3864_v7  ;;  %v1031_v18 = vmul.f32 %v3862_v26, %v1023_v6  ;;  %v4956_v61 = vadd.f32 %v3856_v15, %v1030_v54  ;;  %v5040_v15 = vld [vmem:[%s5965_s2 + $0x18] sm:$0xff]  ;;  %v5080_v6 = vld [vmem:[%s5965_s2 + $0x40] sm:$0xff]  ;;  %v5088_v54 = vld [vmem:[%s5965_s2 + $0x48] sm:$0xff] }
 0x22c   : > { %v3868_v5 = vpop.eup %3867  ;;  %v5072_v26 = vld [vmem:[%s5965_s2 + $0x38] sm:$0xff] }
 0x22d   : > { %v3870_v29 = vpop.eup %3869  ;;  %v1025_v10 = vsub.f32 %v4875_v14, %v3868_v5  ;;  %v1032_v44 = vmul.f32 %v3866_v38, %v1024_v41  ;;  %v4961_v45 = vadd.f32 %v3860_v24, %v1031_v18  ;;  %v1046_v47 = vadd.f32 %v4956_v61, %v4884_v52  ;;  %v5064_v24 = vld [vmem:[%s5965_s2 + $0x30] sm:$0xff]  ;;  %v5104_v38 = vld [vmem:[%s5965_s2 + $0x58] sm:$0xff]  ;;  %v1221_v41 = vpop.permute.xlu1 %1220 }
 0x22e   : > { %v3872_v16 = vpop.eup %3871 }
 0x22f   : > { %v3874_v19 = vpop.eup %3873  ;;  %v1026_v22 = vsub.f32 %v4872_v12, %v3872_v16  ;;  %v1033_v27 = vmul.f32 %v3870_v29, %v1025_v10  ;;  %v4966_v25 = vadd.f32 %v3864_v7, %v1032_v44  ;;  %v1047_v28 = vadd.f32 %v4961_v45, %v4881_v48  ;;  %v5096_v7 = vld [vmem:[%s5965_s2 + $0x50] sm:$0xff]  ;;  %v5118_v10 = vld [vmem:[%s5964_s1 + $0x18] sm:$0xff] }
 0x230   : > { %v3876_v31 = vpop.eup %3875  ;;  %v1054_v32 = vmul.f32 0.5, %v1046_v47  ;;  %v5112_v29 = vld [vmem:[%s5964_s1 + $0x10] sm:$0xff] }
 0x231   : > { %v3878_v33 = vpop.eup %3877  ;;  %v1027_v34 = vsub.f32 %v4869_v11, %v3876_v31  ;;  %v1034_v35 = vmul.f32 %v3874_v19, %v1026_v22  ;;  %v4971_v36 = vadd.f32 %v3868_v5, %v1033_v27  ;;  %v1048_v52 = vadd.f32 %v4966_v25, %v4878_v53  ;;  %v1213_v18 = vpop.permute.xlu1 %1212 }
 0x232   : > { %v3880_v37 = vpop.eup %3879  ;;  %v1055_v40 = vmul.f32 0.5, %v1047_v28  ;;  %1062 = vst [vmem:[%s4975_s26] sm:$0xff] %v1054_v32  ;;  %v4521_v5 = vmov 3   ;;  %v5124_v28 = vld [vmem:[%s5964_s1 + $0x8] sm:$0xff] }
 0x233   : > { %v3882_v48 = vpop.eup %3881  ;;  %v1028_v30 = vsub.f32 %v4866_v23, %v3880_v37  ;;  %v1035_v42 = vmul.f32 %v3878_v33, %v1027_v34  ;;  %v4979_v2 = vadd.f32 %v3872_v16, %v1034_v35  ;;  %v1049_v4 = vadd.f32 %v4971_v36, %v4875_v14  ;;  %3718 = vset.pattern.permute.xlu1 %v4521_v5 }
 0x234   : > { %v3884_v21 = vpop.eup %3883  ;;  %v1056_v53 = vmul.f32 0.5, %v1048_v52  ;;  %1063 = vst [vmem:[%s4975_s26 + $0x8] sm:$0xff] %v1055_v40  ;;  %3717 = vset.pattern.permute.xlu0 %v4521_v5  ;;  %1577 = vperm.xlu1 %3718, %v5112_v29   ;;  %v5136_v40 = vld [vmem:[%s5964_s1 + $0x38] sm:$0xff] }
 0x235   : > { %v1029_v20 = vsub.f32 %v4864_v8, %v3884_v21  ;;  %v1036_v58 = vmul.f32 %v3882_v48, %v1028_v30  ;;  %v4985_v13 = vadd.f32 %v3876_v31, %v1035_v42  ;;  %v1050_v60 = vadd.f32 %v4979_v2, %v4872_v12  ;;  %v3886_v3 = vpop.eup %3885  ;;  %1581 = vperm.xlu0 %3717, %v5118_v10   ;;  %v1209_v44 = vpop.permute.xlu1 %1208  ;;  %v5130_v31 = vld [vmem:[%s5964_s1] sm:$0xff]  ;;  %v5142_v48 = vld [vmem:[%s5964_s1 + $0x30] sm:$0xff] }
 0x236   : > { %v1057_v50 = vmul.f32 0.5, %v1049_v4  ;;  %1064 = vst [vmem:[%s4975_s26 + $0x10] sm:$0xff] %v1056_v53  ;;  %v1217_v30 = vpop.permute.xlu0 %1216 }
 0x237   : > { %v1037_v55 = vmul.f32 %v3886_v3, %v1029_v20  ;;  %v4990_v57 = vadd.f32 %v3880_v37, %v1036_v58  ;;  %v1051_v14 = vadd.f32 %v4985_v13, %v4869_v11  ;;  %v1058_v17 = vmul.f32 0.5, %v1050_v60  ;;  %v5148_v60 = vld [vmem:[%s5964_s1 + $0x28] sm:$0xff]  ;;  %v5154_v3 = vld [vmem:[%s5964_s1 + $0x20] sm:$0xff] }
 0x238   : > { %1065 = vst [vmem:[%s4975_s26 + $0x18] sm:$0xff] %v1057_v50  ;;  %1573 = vperm.xlu1 %3718, %v5124_v28  }
 0x239   : > { %v4995_v43 = vadd.f32 %v3884_v21, %v1037_v55  ;;  %v1052_v63 = vadd.f32 %v4990_v57, %v4866_v23  ;;  %v1059_v12 = vmul.f32 0.5, %v1051_v14  ;;  %1066 = vst [vmem:[%s4975_s26 + $0x20] sm:$0xff] %v1058_v17  ;;  %v5024_v23 = vld [vmem:[%s5965_s2 + $0x8] sm:$0xff]  ;;  %1569 = vperm.xlu0 %3717, %v5130_v31  }
 0x23b   : > { %v1053_v1 = vadd.f32 %v4995_v43, %v4864_v8  ;;  %1094 = vmatprep.subr.mxu0 %v4995_v43  ;;  %v1060_v62 = vmul.f32 0.5, %v1052_v63  ;;  %1067 = vst [vmem:[%s4975_s26 + $0x28] sm:$0xff] %v1059_v12  ;;  %v5016_v8 = vld [vmem:[%s5965_s2] sm:$0xff] }
 0x23c   : > { %1095 = vmatpush1.msra.mxu0 %v4990_v57  ;;  %1653 = vperm.xlu1 %3718, %v5136_v40  }
 0x23d   : > { %v1061_v11 = vmul.f32 0.5, %v1053_v1  ;;  %1068 = vst [vmem:[%s4975_s26 + $0x30] sm:$0xff] %v1060_v62  ;;  %1096 = vmatprep.subr.mxu0 %v4985_v13  ;;  %1649 = vperm.xlu0 %3717, %v5142_v48   ;;  %v5160_v1 = vld [vmem:[%s5964_s1 + $0x58] sm:$0xff]  ;;  %v5166_v62 = vld [vmem:[%s5964_s1 + $0x50] sm:$0xff] }
 0x23e   : > { %1097 = vmatpush1.msra.mxu0 %v4979_v2 }
 0x23f   : > { %1069 = vst [vmem:[%s4975_s26 + $0x38] sm:$0xff] %v1061_v11  ;;  %1098 = vmatprep.subr.mxu0 %v4971_v36 }
 0x240   : > { %1099 = vmatpush1.msra.mxu0 %v4966_v25  ;;  %1645 = vperm.xlu1 %3718, %v5148_v60  }
 0x241   : > { %1100 = vmatprep.subr.mxu0 %v4961_v45  ;;  %1641 = vperm.xlu0 %3717, %v5154_v3  }
 0x242   : > { %1101 = vmatpush1.msra.mxu0 %v4956_v61 }
 0x243   : > { %3446 = vmatmul.mubr.msk.f32.vlgmr.msra.gmra.mxu0 %vm263_vm0, %v5016_v8 }
 0x244   : > { %1140 = vmatprep.mubr.f32.mxu0 %v4517_v0  ;;  %1741 = vperm.xlu1 %3718, %v5160_v1  }
 0x245   : > { %1737 = vperm.xlu0 %3717, %v5166_v62  }
 0x247   : > { %3447 = vmatmul.mubr.msk.f32.gmra.mxu0 %vm263_vm0, %v5024_v23 }
 0x248   : > { %1146 = vmatprep.mubr.f32.mxu0 %v4517_v0 }
 0x24b   : > { %3448 = vmatmul.mubr.msk.f32.gmra.mxu0 %vm263_vm0, %v5032_v9 }
 0x24c   : > { %1152 = vmatprep.mubr.f32.mxu0 %v4517_v0 }
 0x24f   : > { %3449 = vmatmul.mubr.msk.f32.gmra.mxu0 %vm263_vm0, %v5040_v15 }
 0x250   : > { %1158 = vmatprep.mubr.f32.mxu0 %v4517_v0 }
 0x253   : > { %3450 = vmatmul.mubr.msk.f32.gmra.mxu0 %vm263_vm0, %v5048_v51 }
 0x254   : > { %1164 = vmatprep.mubr.f32.mxu0 %v4517_v0 }
 0x257   : > { %3451 = vmatmul.mubr.msk.f32.gmra.mxu0 %vm263_vm0, %v5056_v39 }
 0x258   : > { %1170 = vmatprep.mubr.f32.mxu0 %v4517_v0 }
 0x25b   : > { %3452 = vmatmul.mubr.msk.f32.gmra.mxu0 %vm263_vm0, %v5064_v24 }
 0x25c   : > { %1176 = vmatprep.mubr.f32.mxu0 %v4517_v0 }
 0x25f   : > { %3453 = vmatmul.mubr.msk.f32.gmra.mxu0 %vm263_vm0, %v5072_v26 }
 0x260   : > { %1182 = vmatprep.mubr.f32.mxu0 %v4517_v0 }
 0x263   : > { %3454 = vmatmul.mubr.msk.f32.gmra.mxu0 %vm263_vm0, %v5080_v6 }
 0x264   : > { %1188 = vmatprep.mubr.f32.mxu0 %v4517_v0 }
 0x267   : > { %3455 = vmatmul.mubr.msk.f32.gmra.mxu0 %vm263_vm0, %v5088_v54 }
 0x268   : > { %1194 = vmatprep.mubr.f32.mxu0 %v4517_v0 }
 0x26b   : > { %3456 = vmatmul.mubr.msk.f32.gmra.mxu0 %vm263_vm0, %v5096_v7 }
 0x26c   : > { %1200 = vmatprep.mubr.f32.mxu0 %v4517_v0 }
 0x26f   : > { %3457 = vmatmul.mubr.msk.f32.gmra.mxu0 %vm263_vm0, %v5104_v38 }
 0x270   : > { %1873 = vmatprep.mubr.f32.mxu0 %v4517_v0 }
 0x303   : > { %v1136_v47 = vpop.f32.mrf.mxu0 }
 0x304   : > { %v1223_v16 = vadd.f32 %v1209_v44, %v1136_v47  ;;  %v5172_v47 = vld [vmem:[%s5964_s1 + $0x48] sm:$0xff] }
 0x305   : > { %v1138_v19 = vpop.f32.mrf.mxu0  ;;  %1733 = vperm.xlu1 %3718, %v5172_v47  }
 0x306   : > { %v3458_v22 = vmul.f32 -1.442695, %v1223_v16  ;;  %v1224_v27 = vadd.f32 %v1209_v44, %v1138_v19  ;;  %v5178_v16 = vld [vmem:[%s5964_s1 + $0x40] sm:$0xff] }
 0x307   : > { %v1142_v32 = vpop.f32.mrf.mxu0  ;;  %1729 = vperm.xlu0 %3717, %v5178_v16  }
 0x308   : > { %3887 = vpow2.f32 %v3458_v22  ;;  %v3459_v33 = vmul.f32 -1.442695, %v1224_v27  ;;  %v1225_v34 = vadd.f32 %v1213_v18, %v1142_v32  ;;  %v1293_v32 = vpop.permute.xlu0 %1292 }
 0x309   : > { %v1144_v35 = vpop.f32.mrf.mxu0 }
 0x30a   : > { %3889 = vpow2.f32 %v3459_v33  ;;  %v3460_v52 = vmul.f32 -1.442695, %v1225_v34  ;;  %v1226_v37 = vadd.f32 %v1213_v18, %v1144_v35  ;;  %v1289_v34 = vpop.permute.xlu1 %1288 }
 0x30b   : > { %v1148_v42 = vpop.f32.mrf.mxu0 }
 0x30c   : > { %3891 = vpow2.f32 %v3460_v52  ;;  %v3461_v4 = vmul.f32 -1.442695, %v1226_v37  ;;  %v1227_v21 = vadd.f32 %v1217_v30, %v1148_v42 }
 0x30d   : > { %v1150_v53 = vpop.f32.mrf.mxu0 }
 0x30e   : > { %3893 = vpow2.f32 %v3461_v4  ;;  %v3462_v20 = vmul.f32 -1.442695, %v1227_v21  ;;  %v1228_v58 = vadd.f32 %v1217_v30, %v1150_v53 }
 0x30f   : > { %v1154_v50 = vpop.f32.mrf.mxu0 }
 0x310   : > { %3895 = vpow2.f32 %v3462_v20  ;;  %v3463_v55 = vmul.f32 -1.442695, %v1228_v58  ;;  %v1229_v14 = vadd.f32 %v1221_v41, %v1154_v50  ;;  %v1285_v20 = vpop.permute.xlu0 %1284 }
 0x311   : > { %v1156_v17 = vpop.f32.mrf.mxu0 }
 0x312   : > { %3897 = vpow2.f32 %v3463_v55  ;;  %v3464_v63 = vmul.f32 -1.442695, %v1229_v14  ;;  %v1230_v12 = vadd.f32 %v1221_v41, %v1156_v17  ;;  %v1281_v17 = vpop.permute.xlu1 %1280 }
 0x313   : > { %v1160_v11 = vpop.f32.mrf.mxu0 }
 0x314   : > { %3899 = vpow2.f32 %v3464_v63  ;;  %v3465_v18 = vmul.f32 -1.442695, %v1230_v12 }
 0x315   : > { %v3888_v5 = vpop.eup %3887  ;;  %v1162_v44 = vpop.f32.mrf.mxu0 }
 0x316   : > { %v1255_v41 = vadd.f32 1.0, %v3888_v5  ;;  %3901 = vpow2.f32 %v3465_v18 }
 0x317   : > { %v3890_v19 = vpop.eup %3889  ;;  %v1166_v22 = vpop.f32.mrf.mxu0 }
 0x318   : > { %3903 = vrcp.f32 %v1255_v41  ;;  %v1256_v27 = vadd.f32 1.0, %v3890_v19 }
 0x319   : > { %v3892_v33 = vpop.eup %3891  ;;  %v1168_v35 = vpop.f32.mrf.mxu0 }
 0x31a   : > { %3905 = vrcp.f32 %v1256_v27  ;;  %v1257_v52 = vadd.f32 1.0, %v3892_v33  ;;  %v1298_v63 = vadd.f32 %v1285_v20, %v1168_v35  ;;  %v1296_v27 = vadd.f32 %v1281_v17, %v1162_v44 }
 0x31b   : > { %v3894_v37 = vpop.eup %3893  ;;  %v1172_v30 = vpop.f32.mrf.mxu0  ;;  %v1297_v33 = vadd.f32 %v1285_v20, %v1166_v22 }
 0x31c   : > { %3907 = vrcp.f32 %v1257_v52  ;;  %v1258_v42 = vadd.f32 1.0, %v3894_v37  ;;  %v1299_v4 = vadd.f32 %v1289_v34, %v1172_v30  ;;  %v3467_v20 = vmul.f32 -1.442695, %v1296_v27 }
 0x31d   : > { %v3896_v21 = vpop.eup %3895  ;;  %v1174_v53 = vpop.f32.mrf.mxu0  ;;  %v3468_v44 = vmul.f32 -1.442695, %v1297_v33 }
 0x31e   : > { %3909 = vrcp.f32 %v1258_v42  ;;  %v1259_v58 = vadd.f32 1.0, %v3896_v21  ;;  %v3470_v50 = vmul.f32 -1.442695, %v1299_v4  ;;  %v1300_v55 = vadd.f32 %v1289_v34, %v1174_v53 }
 0x31f   : > { %v3898_v14 = vpop.eup %3897  ;;  %v1178_v12 = vpop.f32.mrf.mxu0  ;;  %v1295_v4 = vadd.f32 %v1281_v17, %v1160_v11  ;;  %v3469_v34 = vmul.f32 -1.442695, %v1298_v63 }
 0x320   : > { %3911 = vrcp.f32 %v1259_v58  ;;  %v1260_v18 = vadd.f32 1.0, %v3898_v14  ;;  %v3471_v5 = vmul.f32 -1.442695, %v1300_v55  ;;  %v1301_v41 = vadd.f32 %v1293_v32, %v1178_v12  ;;  %v1377_v12 = vpop.permute.xlu1 %1376 }
 0x321   : > { %v3900_v19 = vpop.eup %3899  ;;  %3913 = vpow2.f32 %v3470_v50  ;;  %v1180_v52 = vpop.f32.mrf.mxu0  ;;  %v3466_v11 = vmul.f32 -1.442695, %v1295_v4 }
 0x322   : > { %3915 = vrcp.f32 %v1260_v18  ;;  %v1261_v37 = vadd.f32 1.0, %v3900_v19  ;;  %v3472_v30 = vmul.f32 -1.442695, %v1301_v41  ;;  %v1302_v42 = vadd.f32 %v1293_v32, %v1180_v52  ;;  %v1381_v18 = vpop.permute.xlu0 %1380 }
 0x323   : > { %v3902_v21 = vpop.eup %3901  ;;  %3917 = vpow2.f32 %v3471_v5  ;;  %v1184_v53 = vpop.f32.mrf.mxu0 }
 0x324   : > { %3919 = vrcp.f32 %v1261_v37  ;;  %v1262_v35 = vadd.f32 1.0, %v3902_v21  ;;  %v3473_v58 = vmul.f32 -1.442695, %v1302_v42  ;;  %v1351_v55 = vadd.f32 %v1184_v53, %v4844_v56 }
 0x325   : > { %v3904_v14 = vpop.eup %3903  ;;  %3921 = vpow2.f32 %v3472_v30  ;;  %v1186_v22 = vpop.f32.mrf.mxu0 }
 0x326   : > { %3923 = vrcp.f32 %v1262_v35  ;;  %v1352_v50 = vadd.f32 %v1186_v22, %v4844_v56  ;;  %v1359_v63 = vmul.f32 %v3904_v14, %v1351_v55  ;;  %v1369_v30 = vpop.permute.xlu1 %1368  ;;  %v1373_v35 = vpop.permute.xlu0 %1372 }
 0x327   : > { %v3906_v32 = vpop.eup %3905  ;;  %3925 = vpow2.f32 %v3473_v58  ;;  %v1190_v17 = vpop.f32.mrf.mxu0 }
 0x328   : > { %3927 = vpow2.f32 %v3469_v34  ;;  %v1353_v5 = vadd.f32 %v1190_v17, %v4838_v59  ;;  %v1360_v19 = vmul.f32 %v3906_v32, %v1352_v50  ;;  %v1383_v21 = vadd.f32 %v1369_v30, %v1359_v63 }
 0x329   : > { %v3908_v41 = vpop.eup %3907  ;;  %3929 = vpow2.f32 %v3468_v44  ;;  %v1192_v52 = vpop.f32.mrf.mxu0 }
 0x32a   : > { %3931 = vpow2.f32 %v3467_v20  ;;  %v1361_v33 = vmul.f32 %v3908_v41, %v1353_v5  ;;  %v1354_v37 = vadd.f32 %v1192_v52, %v4838_v59  ;;  %v1384_v58 = vadd.f32 %v1369_v30, %v1360_v19 }
 0x32b   : > { %v3910_v27 = vpop.eup %3909  ;;  %3933 = vpow2.f32 %v3466_v11  ;;  %v1196_v42 = vpop.f32.mrf.mxu0 }
 0x32c   : > { %v1362_v4 = vmul.f32 %v3910_v27, %v1354_v37  ;;  %v1355_v53 = vadd.f32 %v1196_v42, %v4836_v49  ;;  %v1385_v44 = vadd.f32 %v1373_v35, %v1361_v33  ;;  %3935 = vtanh.f32 %v1383_v21 }
 0x32d   : > { %v3912_v34 = vpop.eup %3911  ;;  %v1198_v55 = vpop.f32.mrf.mxu0  ;;  %3937 = vtanh.f32 %v1384_v58 }
 0x32e   : > { %v3914_v14 = vpop.eup %3913  ;;  %v1363_v22 = vmul.f32 %v3912_v34, %v1355_v53  ;;  %v1356_v20 = vadd.f32 %v1198_v55, %v4836_v49  ;;  %v1386_v32 = vadd.f32 %v1373_v35, %v1362_v4  ;;  %3939 = vtanh.f32 %v1385_v44 }
 0x32f   : > { %v3916_v50 = vpop.eup %3915  ;;  %v1202_v17 = vpop.f32.mrf.mxu0  ;;  %v1331_v44 = vadd.f32 1.0, %v3914_v14 }
 0x330   : > { %v3918_v5 = vpop.eup %3917  ;;  %v1364_v11 = vmul.f32 %v3916_v50, %v1356_v20  ;;  %v1357_v63 = vadd.f32 %v1202_v17, %v4834_v46  ;;  %v1387_v52 = vadd.f32 %v1377_v12, %v1363_v22  ;;  %3941 = vtanh.f32 %v1386_v32 }
 0x331   : > { %v3920_v41 = vpop.eup %3919  ;;  %v1204_v37 = vpop.f32.mrf.mxu0  ;;  %v1332_v53 = vadd.f32 1.0, %v3918_v5 }
 0x332   : > { %v3922_v27 = vpop.eup %3921  ;;  %v1388_v19 = vadd.f32 %v1377_v12, %v1364_v11  ;;  %v1365_v30 = vmul.f32 %v3920_v41, %v1357_v63  ;;  %v1358_v33 = vadd.f32 %v1204_v37, %v4834_v46 }
 0x333   : > { %v3924_v42 = vpop.eup %3923  ;;  %v1333_v55 = vadd.f32 1.0, %v3922_v27 }
 0x334   : > { %v3926_v4 = vpop.eup %3925  ;;  %3943 = vtanh.f32 %v1388_v19  ;;  %v1389_v34 = vadd.f32 %v1381_v18, %v1365_v30  ;;  %v1366_v21 = vmul.f32 %v3924_v42, %v1358_v33 }
 0x335   : > { %v3928_v35 = vpop.eup %3927  ;;  %3945 = vtanh.f32 %v1387_v52  ;;  %v1334_v58 = vadd.f32 1.0, %v3926_v4 }
 0x336   : > { %v3930_v20 = vpop.eup %3929  ;;  %3947 = vtanh.f32 %v1389_v34  ;;  %v1390_v22 = vadd.f32 %v1381_v18, %v1366_v21  ;;  %v1330_v17 = vadd.f32 1.0, %v3928_v35 }
 0x337   : > { %v3932_v50 = vpop.eup %3931  ;;  %3949 = vrcp.f32 %v1332_v53  ;;  %v1329_v11 = vadd.f32 1.0, %v3930_v20 }
 0x338   : > { %v3934_v12 = vpop.eup %3933  ;;  %3951 = vtanh.f32 %v1390_v22  ;;  %v1328_v32 = vadd.f32 1.0, %v3932_v50 }
 0x339   : > { %3953 = vrcp.f32 %v1333_v55  ;;  %v1327_v5 = vadd.f32 1.0, %v3934_v12  ;;  %v3936_v63 = vpop.eup %3935 }
 0x33a   : > { %3955 = vrcp.f32 %v1334_v58  ;;  %v3938_v41 = vpop.eup %3937 }
 0x33b   : > { %3957 = vrcp.f32 %v1331_v44  ;;  %v3940_v52 = vpop.eup %3939  ;;  %v1400_v44 = vsub.f32 %v4961_v45, %v3938_v41 }
 0x33c   : > { %3959 = vrcp.f32 %v1330_v17  ;;  %v1401_v20 = vsub.f32 %v4966_v25, %v3940_v52 }
 0x33d   : > { %3961 = vrcp.f32 %v1329_v11  ;;  %v3942_v18 = vpop.eup %3941 }
 0x33e   : > { %3963 = vrcp.f32 %v1328_v32  ;;  %v1402_v21 = vsub.f32 %v4971_v36, %v3942_v18 }
 0x33f   : > { %3965 = vrcp.f32 %v1327_v5 }
 0x341   : > { %v3944_v37 = vpop.eup %3943 }
 0x342   : > { %v3946_v14 = vpop.eup %3945  ;;  %v1404_v33 = vsub.f32 %v4985_v13, %v3944_v37  ;;  %v1399_v13 = vsub.f32 %v4956_v61, %v3936_v63 }
 0x343   : > { %v3948_v27 = vpop.eup %3947  ;;  %v1403_v53 = vsub.f32 %v4979_v2, %v3946_v14 }
 0x344   : > { %v3950_v19 = vpop.eup %3949  ;;  %v1405_v30 = vsub.f32 %v4990_v57, %v3948_v27 }
 0x345   : > { %v3952_v42 = vpop.eup %3951  ;;  %v1412_v50 = vmul.f32 %v3950_v19, %v1404_v33 }
 0x346   : > { %v3954_v4 = vpop.eup %3953  ;;  %v1406_v34 = vsub.f32 %v4995_v43, %v3952_v42 }
 0x347   : > { %v3956_v35 = vpop.eup %3955  ;;  %v1413_v55 = vmul.f32 %v3954_v4, %v1405_v30  ;;  %v5202_v25 = vadd.f32 %v3944_v37, %v1412_v50 }
 0x348   : > { %v3958_v58 = vpop.eup %3957  ;;  %v1414_v22 = vmul.f32 %v3956_v35, %v1406_v34 }
 0x349   : > { %v3960_v57 = vpop.eup %3959  ;;  %v1411_v12 = vmul.f32 %v3958_v58, %v1403_v53  ;;  %v5199_v32 = vadd.f32 %v3948_v27, %v1413_v55 }
 0x34a   : > { %v3962_v17 = vpop.eup %3961  ;;  %v5197_v2 = vadd.f32 %v3952_v42, %v1414_v22  ;;  %v1410_v11 = vmul.f32 %v3960_v57, %v1402_v21 }
 0x34b   : > { %v3964_v43 = vpop.eup %3963  ;;  %v1409_v36 = vmul.f32 %v3962_v17, %v1401_v20  ;;  %v5205_v45 = vadd.f32 %v3946_v14, %v1411_v12 }
 0x34c   : > { %v3966_v5 = vpop.eup %3965  ;;  %1455 = vmatprep.subr.mxu1 %v5197_v2  ;;  %v1408_v19 = vmul.f32 %v3964_v43, %v1400_v44  ;;  %v5208_v61 = vadd.f32 %v3942_v18, %v1410_v11 }
 0x34d   : > { %1456 = vmatpush1.msra.mxu1 %v5199_v32  ;;  %v1407_v30 = vmul.f32 %v3966_v5, %v1399_v13  ;;  %v5211_v27 = vadd.f32 %v3940_v52, %v1409_v36 }
 0x34e   : > { %1457 = vmatprep.subr.mxu1 %v5202_v25  ;;  %v5214_v33 = vadd.f32 %v3938_v41, %v1408_v19 }
 0x34f   : > { %1458 = vmatpush1.msra.mxu1 %v5205_v45  ;;  %v5217_v37 = vadd.f32 %v3936_v63, %v1407_v30 }
 0x350   : > { %1459 = vmatprep.subr.mxu1 %v5208_v61 }
 0x351   : > { %1460 = vmatpush1.msra.mxu1 %v5211_v27 }
 0x352   : > { %1461 = vmatprep.subr.mxu1 %v5214_v33 }
 0x353   : > { %1462 = vmatpush1.msra.mxu1 %v5217_v37 }
 0x354   : > { %3474 = vmatmul.mubr.msk.f32.vlgmr.msra.gmra.mxu1 %vm263_vm0, %v5016_v8  ;;  %v1582_v8 = vpop.permute.xlu0 %1581 }
 0x355   : > { %1501 = vmatprep.mubr.f32.mxu1 %v4517_v0 }
 0x358   : > { %3475 = vmatmul.mubr.msk.f32.gmra.mxu1 %vm263_vm0, %v5024_v23  ;;  %v1578_v23 = vpop.permute.xlu1 %1577 }
 0x359   : > { %1507 = vmatprep.mubr.f32.mxu1 %v4517_v0 }
 0x35c   : > { %3476 = vmatmul.mubr.msk.f32.gmra.mxu1 %vm263_vm0, %v5032_v9  ;;  %v4522_v9 = vmov 4  }
 0x35d   : > { %1513 = vmatprep.mubr.f32.mxu1 %v4517_v0  ;;  %3719 = vset.pattern.permute.xlu1 %v4522_v9 }
 0x35e   : > { %3720 = vset.pattern.permute.xlu0 %v4522_v9  ;;  %1959 = vperm.xlu1 %3719, %v5118_v10  }
 0x35f   : > { %1955 = vperm.xlu0 %3720, %v5112_v29  }
 0x360   : > { %3477 = vmatmul.mubr.msk.f32.gmra.mxu1 %vm263_vm0, %v5040_v15  ;;  %v1570_v15 = vpop.permute.xlu0 %1569 }
 0x361   : > { %1519 = vmatprep.mubr.f32.mxu1 %v4517_v0 }
 0x362   : > { %1951 = vperm.xlu1 %3719, %v5124_v28  }
 0x363   : > { %2031 = vperm.xlu0 %3720, %v5136_v40  }
 0x364   : > { %3478 = vmatmul.mubr.msk.f32.gmra.mxu1 %vm263_vm0, %v5048_v51  ;;  %v1650_v28 = vpop.permute.xlu0 %1649 }
 0x365   : > { %1525 = vmatprep.mubr.f32.mxu1 %v4517_v0 }
 0x366   : > { %1947 = vperm.xlu1 %3719, %v5130_v31  }
 0x367   : > { %2023 = vperm.xlu0 %3720, %v5148_v60  }
 0x368   : > { %3479 = vmatmul.mubr.msk.f32.gmra.mxu1 %vm263_vm0, %v5056_v39  ;;  %v1642_v20 = vpop.permute.xlu0 %1641 }
 0x369   : > { %1531 = vmatprep.mubr.f32.mxu1 %v4517_v0 }
 0x36a   : > { %2027 = vperm.xlu1 %3719, %v5142_v48  }
 0x36b   : > { %2119 = vperm.xlu0 %3720, %v5160_v1  }
 0x36c   : > { %3480 = vmatmul.mubr.msk.f32.gmra.mxu1 %vm263_vm0, %v5064_v24 }
 0x36d   : > { %1537 = vmatprep.mubr.f32.mxu1 %v4517_v0 }
 0x36e   : > { %2019 = vperm.xlu1 %3719, %v5154_v3  }
 0x36f   : > { %2111 = vperm.xlu0 %3720, %v5172_v47  }
 0x370   : > { %3481 = vmatmul.mubr.msk.f32.gmra.mxu1 %vm263_vm0, %v5072_v26 }
 0x371   : > { %1543 = vmatprep.mubr.f32.mxu1 %v4517_v0 }
 0x372   : > { %2115 = vperm.xlu1 %3719, %v5166_v62  }
 0x374   : > { %3482 = vmatmul.mubr.msk.f32.gmra.mxu1 %vm263_vm0, %v5080_v6 }
 0x375   : > { %1549 = vmatprep.mubr.f32.mxu1 %v4517_v0 }
 0x376   : > { %2107 = vperm.xlu1 %3719, %v5178_v16  }
 0x378   : > { %3483 = vmatmul.mubr.msk.f32.gmra.mxu1 %vm263_vm0, %v5088_v54  ;;  %v1574_v54 = vpop.permute.xlu1 %1573 }
 0x379   : > { %1555 = vmatprep.mubr.f32.mxu1 %v4517_v0 }
 0x37c   : > { %3484 = vmatmul.mubr.msk.f32.gmra.mxu1 %vm263_vm0, %v5096_v7  ;;  %v1654_v31 = vpop.permute.xlu1 %1653 }
 0x37d   : > { %1561 = vmatprep.mubr.f32.mxu1 %v4517_v0 }
 0x380   : > { %3485 = vmatmul.mubr.msk.f32.gmra.mxu1 %vm263_vm0, %v5104_v38  ;;  %v1646_v17 = vpop.permute.xlu1 %1645 }
 0x381   : > { %2234 = vmatprep.mubr.f32.mxu1 %v4517_v0 }
 0x414   : > { %v1497_v51 = vpop.f32.mrf.mxu1 }
 0x415   : > { %v1584_v39 = vadd.f32 %v1570_v15, %v1497_v51 }
 0x416   : > { %v1499_v24 = vpop.f32.mrf.mxu1 }
 0x417   : > { %v3486_v26 = vmul.f32 -1.442695, %v1584_v39  ;;  %v1585_v6 = vadd.f32 %v1570_v15, %v1499_v24 }
 0x418   : > { %v1503_v7 = vpop.f32.mrf.mxu1 }
 0x419   : > { %3967 = vpow2.f32 %v3486_v26  ;;  %v3487_v38 = vmul.f32 -1.442695, %v1585_v6  ;;  %v1586_v63 = vadd.f32 %v1574_v54, %v1503_v7 }
 0x41a   : > { %v1505_v41 = vpop.f32.mrf.mxu1 }
 0x41b   : > { %3969 = vpow2.f32 %v3487_v38  ;;  %v3488_v10 = vmul.f32 -1.442695, %v1586_v63  ;;  %v1587_v52 = vadd.f32 %v1574_v54, %v1505_v41 }
 0x41c   : > { %v1509_v29 = vpop.f32.mrf.mxu1 }
 0x41d   : > { %3971 = vpow2.f32 %v3488_v10  ;;  %v3489_v18 = vmul.f32 -1.442695, %v1587_v52  ;;  %v1588_v14 = vadd.f32 %v1578_v23, %v1509_v29  ;;  %v5269_v52 = vpop.permute.xlu0 %1737 }
 0x41e   : > { %v1511_v42 = vpop.f32.mrf.mxu1 }
 0x41f   : > { %3973 = vpow2.f32 %v3489_v18  ;;  %v3490_v40 = vmul.f32 -1.442695, %v1588_v14  ;;  %v1589_v53 = vadd.f32 %v1578_v23, %v1511_v42 }
 0x420   : > { %v1515_v4 = vpop.f32.mrf.mxu1 }
 0x421   : > { %3975 = vpow2.f32 %v3490_v40  ;;  %v3491_v34 = vmul.f32 -1.442695, %v1589_v53  ;;  %v1590_v21 = vadd.f32 %v1582_v8, %v1515_v4 }
 0x422   : > { %v1517_v35 = vpop.f32.mrf.mxu1 }
 0x423   : > { %3977 = vpow2.f32 %v3491_v34  ;;  %v3492_v60 = vmul.f32 -1.442695, %v1590_v21  ;;  %v1591_v55 = vadd.f32 %v1582_v8, %v1517_v35  ;;  %v5272_v35 = vpop.permute.xlu1 %1741 }
 0x424   : > { %v1521_v58 = vpop.f32.mrf.mxu1 }
 0x425   : > { %3979 = vpow2.f32 %v3492_v60  ;;  %v3493_v22 = vmul.f32 -1.442695, %v1591_v55  ;;  %v1656_v48 = vadd.f32 %v1642_v20, %v1521_v58 }
 0x426   : > { %v3968_v50 = vpop.eup %3967  ;;  %v1523_v1 = vpop.f32.mrf.mxu1 }
 0x427   : > { %v1616_v44 = vadd.f32 1.0, %v3968_v50  ;;  %3981 = vpow2.f32 %v3493_v22  ;;  %v3494_v57 = vmul.f32 -1.442695, %v1656_v48  ;;  %v1657_v12 = vadd.f32 %v1642_v20, %v1523_v1 }
 0x428   : > { %v3970_v13 = vpop.eup %3969  ;;  %v1527_v11 = vpop.f32.mrf.mxu1 }
 0x429   : > { %3983 = vrcp.f32 %v1616_v44  ;;  %v1617_v3 = vadd.f32 1.0, %v3970_v13  ;;  %v3495_v43 = vmul.f32 -1.442695, %v1657_v12  ;;  %v1658_v47 = vadd.f32 %v1646_v17, %v1527_v11 }
 0x42a   : > { %v3972_v36 = vpop.eup %3971  ;;  %3985 = vpow2.f32 %v3494_v57  ;;  %v1529_v5 = vpop.f32.mrf.mxu1 }
 0x42b   : > { %3987 = vrcp.f32 %v1617_v3  ;;  %v1618_v19 = vadd.f32 1.0, %v3972_v36  ;;  %v3496_v30 = vmul.f32 -1.442695, %v1658_v47  ;;  %v1659_v8 = vadd.f32 %v1646_v17, %v1529_v5 }
 0x42c   : > { %v3974_v23 = vpop.eup %3973  ;;  %3989 = vpow2.f32 %v3495_v43  ;;  %v1533_v9 = vpop.f32.mrf.mxu1 }
 0x42d   : > { %3991 = vrcp.f32 %v1618_v19  ;;  %v1619_v62 = vadd.f32 1.0, %v3974_v23  ;;  %v3497_v15 = vmul.f32 -1.442695, %v1659_v8  ;;  %v1660_v51 = vadd.f32 %v1650_v28, %v1533_v9  ;;  %v1734_v19 = vpop.permute.xlu1 %1733 }
 0x42e   : > { %v3976_v39 = vpop.eup %3975  ;;  %3993 = vpow2.f32 %v3496_v30  ;;  %v1535_v24 = vpop.f32.mrf.mxu1 }
 0x42f   : > { %3995 = vrcp.f32 %v1619_v62  ;;  %v1620_v26 = vadd.f32 1.0, %v3976_v39  ;;  %v3498_v6 = vmul.f32 -1.442695, %v1660_v51  ;;  %v1661_v54 = vadd.f32 %v1650_v28, %v1535_v24 }
 0x430   : > { %v3978_v7 = vpop.eup %3977  ;;  %3997 = vpow2.f32 %v3497_v15  ;;  %v1539_v38 = vpop.f32.mrf.mxu1 }
 0x431   : > { %3999 = vrcp.f32 %v1620_v26  ;;  %v1621_v63 = vadd.f32 1.0, %v3978_v7  ;;  %v3499_v16 = vmul.f32 -1.442695, %v1661_v54  ;;  %v1662_v41 = vadd.f32 %v1654_v31, %v1539_v38 }
 0x432   : > { %v3980_v10 = vpop.eup %3979  ;;  %4001 = vpow2.f32 %v3498_v6  ;;  %v1541_v29 = vpop.f32.mrf.mxu1 }
 0x433   : > { %4003 = vrcp.f32 %v1621_v63  ;;  %v1622_v18 = vadd.f32 1.0, %v3980_v10  ;;  %v3500_v14 = vmul.f32 -1.442695, %v1662_v41  ;;  %v1663_v42 = vadd.f32 %v1654_v31, %v1541_v29  ;;  %v1730_v31 = vpop.permute.xlu0 %1729 }
 0x434   : > { %v3982_v40 = vpop.eup %3981  ;;  %4005 = vpow2.f32 %v3499_v16  ;;  %v1545_v53 = vpop.f32.mrf.mxu1 }
 0x435   : > { %4007 = vrcp.f32 %v1622_v18  ;;  %v1623_v28 = vadd.f32 1.0, %v3982_v40  ;;  %v3501_v4 = vmul.f32 -1.442695, %v1663_v42  ;;  %v1712_v34 = vadd.f32 %v1545_v53, %v4844_v56 }
 0x436   : > { %v3984_v21 = vpop.eup %3983  ;;  %4009 = vpow2.f32 %v3500_v14  ;;  %v1547_v60 = vpop.f32.mrf.mxu1 }
 0x437   : > { %v3986_v55 = vpop.eup %3985  ;;  %4011 = vrcp.f32 %v1623_v28  ;;  %v1720_v20 = vmul.f32 %v3984_v21, %v1712_v34  ;;  %v1713_v58 = vadd.f32 %v1547_v60, %v4844_v56 }
 0x438   : > { %v3988_v22 = vpop.eup %3987  ;;  %v1688_v48 = vadd.f32 1.0, %v3986_v55  ;;  %4013 = vpow2.f32 %v3501_v4  ;;  %v1551_v50 = vpop.f32.mrf.mxu1 }
 0x439   : > { %v3990_v1 = vpop.eup %3989  ;;  %v1744_v44 = vadd.f32 %v1730_v31, %v1720_v20  ;;  %v1721_v57 = vmul.f32 %v3988_v22, %v1713_v58  ;;  %v1714_v12 = vadd.f32 %v1551_v50, %v4838_v59 }
 0x43a   : > { %v3992_v13 = vpop.eup %3991  ;;  %v1689_v17 = vadd.f32 1.0, %v3990_v1  ;;  %v1553_v11 = vpop.f32.mrf.mxu1 }
 0x43b   : > { %v3994_v3 = vpop.eup %3993  ;;  %4015 = vtanh.f32 %v1744_v44  ;;  %v1745_v43 = vadd.f32 %v1730_v31, %v1721_v57  ;;  %v1722_v47 = vmul.f32 %v3992_v13, %v1714_v12  ;;  %v1715_v36 = vadd.f32 %v1553_v11, %v4838_v59 }
 0x43c   : > { %v3996_v5 = vpop.eup %3995  ;;  %4017 = vrcp.f32 %v1688_v48  ;;  %v1690_v30 = vadd.f32 1.0, %v3994_v3  ;;  %v1557_v8 = vpop.f32.mrf.mxu1 }
 0x43d   : > { %v3998_v23 = vpop.eup %3997  ;;  %4019 = vtanh.f32 %v1745_v43  ;;  %v1746_v9 = vadd.f32 %v1734_v19, %v1722_v47  ;;  %v1723_v62 = vmul.f32 %v3996_v5, %v1715_v36  ;;  %v1716_v15 = vadd.f32 %v1557_v8, %v4836_v49 }
 0x43e   : > { %v4000_v51 = vpop.eup %3999  ;;  %4021 = vrcp.f32 %v1689_v17  ;;  %v1691_v39 = vadd.f32 1.0, %v3998_v23  ;;  %v1559_v24 = vpop.f32.mrf.mxu1 }
 0x43f   : > { %v4002_v26 = vpop.eup %4001  ;;  %4023 = vtanh.f32 %v1746_v9  ;;  %v1747_v6 = vadd.f32 %v1734_v19, %v1723_v62  ;;  %v1724_v54 = vmul.f32 %v4000_v51, %v1716_v15  ;;  %v1717_v7 = vadd.f32 %v1559_v24, %v4836_v49 }
 0x440   : > { %v4004_v38 = vpop.eup %4003  ;;  %4025 = vrcp.f32 %v1690_v30  ;;  %v1692_v63 = vadd.f32 1.0, %v4002_v26  ;;  %v1563_v16 = vpop.f32.mrf.mxu1 }
 0x441   : > { %v4006_v41 = vpop.eup %4005  ;;  %4027 = vtanh.f32 %v1747_v6  ;;  %v1748_v10 = vadd.f32 %v5269_v52, %v1724_v54  ;;  %v1725_v29 = vmul.f32 %v4004_v38, %v1717_v7  ;;  %v1718_v18 = vadd.f32 %v1563_v16, %v4834_v46 }
 0x442   : > { %v4008_v14 = vpop.eup %4007  ;;  %4029 = vrcp.f32 %v1691_v39  ;;  %v1693_v42 = vadd.f32 1.0, %v4006_v41  ;;  %v1565_v40 = vpop.f32.mrf.mxu1 }
 0x443   : > { %v4010_v53 = vpop.eup %4009  ;;  %4031 = vtanh.f32 %v1748_v10  ;;  %v1749_v28 = vadd.f32 %v5269_v52, %v1725_v29  ;;  %v1726_v4 = vmul.f32 %v4008_v14, %v1718_v18  ;;  %v1719_v34 = vadd.f32 %v1565_v40, %v4834_v46 }
 0x444   : > { %v4012_v21 = vpop.eup %4011  ;;  %4033 = vrcp.f32 %v1692_v63  ;;  %v1694_v60 = vadd.f32 1.0, %v4010_v53 }
 0x445   : > { %v4014_v55 = vpop.eup %4013  ;;  %4035 = vtanh.f32 %v1749_v28  ;;  %v1750_v20 = vadd.f32 %v5272_v35, %v1726_v4  ;;  %v1727_v58 = vmul.f32 %v4012_v21, %v1719_v34 }
 0x446   : > { %4037 = vrcp.f32 %v1693_v42  ;;  %v1695_v22 = vadd.f32 1.0, %v4014_v55 }
 0x447   : > { %4039 = vtanh.f32 %v1750_v20  ;;  %v1751_v31 = vadd.f32 %v5272_v35, %v1727_v58 }
 0x448   : > { %v4016_v48 = vpop.eup %4015  ;;  %4041 = vrcp.f32 %v1694_v60 }
 0x449   : > { %v4018_v50 = vpop.eup %4017  ;;  %4043 = vtanh.f32 %v1751_v31  ;;  %v1760_v52 = vsub.f32 %v5217_v37, %v4016_v48  ;;  %v5360_v31 = vld [vmem:[%s5965_s2 + $0x10] sm:$0xff] }
 0x44a   : > { %v4020_v1 = vpop.eup %4019  ;;  %4045 = vrcp.f32 %v1695_v22 }
 0x44b   : > { %v4022_v44 = vpop.eup %4021  ;;  %v1761_v57 = vsub.f32 %v5214_v33, %v4020_v1  ;;  %v1768_v12 = vmul.f32 %v4018_v50, %v1760_v52  ;;  %v5376_v50 = vld [vmem:[%s5965_s2 + $0x20] sm:$0xff]  ;;  %v5384_v52 = vld [vmem:[%s5965_s2 + $0x28] sm:$0xff] }
 0x44c   : > { %v4024_v13 = vpop.eup %4023 }
 0x44d   : > { %v4026_v17 = vpop.eup %4025  ;;  %v1762_v11 = vsub.f32 %v5211_v27, %v4024_v13  ;;  %v1769_v3 = vmul.f32 %v4022_v44, %v1761_v57  ;;  %v5288_v43 = vadd.f32 %v4016_v48, %v1768_v12  ;;  %v5368_v48 = vld [vmem:[%s5965_s2 + $0x18] sm:$0xff]  ;;  %v5408_v57 = vld [vmem:[%s5965_s2 + $0x40] sm:$0xff]  ;;  %v5416_v12 = vld [vmem:[%s5965_s2 + $0x48] sm:$0xff] }
 0x44e   : > { %v4028_v35 = vpop.eup %4027  ;;  %v5400_v44 = vld [vmem:[%s5965_s2 + $0x38] sm:$0xff] }
 0x44f   : > { %v4030_v47 = vpop.eup %4029  ;;  %v1763_v36 = vsub.f32 %v5208_v61, %v4028_v35  ;;  %v1770_v5 = vmul.f32 %v4026_v17, %v1762_v11  ;;  %v5291_v19 = vadd.f32 %v4020_v1, %v1769_v3  ;;  %v1784_v30 = vadd.f32 %v5288_v43, %v5217_v37  ;;  %v5392_v1 = vld [vmem:[%s5965_s2 + $0x30] sm:$0xff]  ;;  %v5432_v17 = vld [vmem:[%s5965_s2 + $0x58] sm:$0xff]  ;;  %v1960_v11 = vpop.permute.xlu1 %1959 }
 0x450   : > { %v4032_v8 = vpop.eup %4031 }
 0x451   : > { %v4034_v23 = vpop.eup %4033  ;;  %v1764_v9 = vsub.f32 %v5205_v45, %v4032_v8  ;;  %v1771_v62 = vmul.f32 %v4030_v47, %v1763_v36  ;;  %v5296_v15 = vadd.f32 %v4024_v13, %v1770_v5  ;;  %v1785_v51 = vadd.f32 %v5291_v19, %v5214_v33  ;;  %v5424_v13 = vld [vmem:[%s5965_s2 + $0x50] sm:$0xff]  ;;  %v5446_v36 = vld [vmem:[%s5964_s1 + $0x18] sm:$0xff] }
 0x452   : > { %v4036_v39 = vpop.eup %4035  ;;  %v1792_v24 = vmul.f32 0.5, %v1784_v30  ;;  %v5440_v47 = vld [vmem:[%s5964_s1 + $0x10] sm:$0xff] }
 0x453   : > { %v4038_v26 = vpop.eup %4037  ;;  %v1765_v6 = vsub.f32 %v5202_v25, %v4036_v39  ;;  %v1772_v54 = vmul.f32 %v4034_v23, %v1764_v9  ;;  %v5301_v7 = vadd.f32 %v4028_v35, %v1771_v62  ;;  %v1786_v37 = vadd.f32 %v5296_v15, %v5211_v27  ;;  %v1952_v3 = vpop.permute.xlu1 %1951 }
 0x454   : > { %v4040_v38 = vpop.eup %4039  ;;  %v1793_v63 = vmul.f32 0.5, %v1785_v51  ;;  %3502 = vst [vmem:[%s4975_s26 + $0x40] sm:$0xff] %v1792_v24  ;;  %v4523_v35 = vmov 5   ;;  %v5452_v51 = vld [vmem:[%s5964_s1 + $0x8] sm:$0xff] }
 0x455   : > { %v4042_v16 = vpop.eup %4041  ;;  %v1766_v41 = vsub.f32 %v5199_v32, %v4040_v38  ;;  %v1773_v33 = vmul.f32 %v4038_v26, %v1765_v6  ;;  %v5307_v10 = vadd.f32 %v4032_v8, %v1772_v54  ;;  %v1787_v29 = vadd.f32 %v5301_v7, %v5208_v61  ;;  %3722 = vset.pattern.permute.xlu1 %v4523_v35 }
 0x456   : > { %v4044_v18 = vpop.eup %4043  ;;  %v1794_v14 = vmul.f32 0.5, %v1786_v37  ;;  %3503 = vst [vmem:[%s4975_s26 + $0x48] sm:$0xff] %v1793_v63  ;;  %3721 = vset.pattern.permute.xlu0 %v4523_v35  ;;  %2316 = vperm.xlu1 %3722, %v5440_v47   ;;  %v5464_v63 = vld [vmem:[%s5964_s1 + $0x38] sm:$0xff] }
 0x457   : > { %v1767_v27 = vsub.f32 %v5197_v2, %v4044_v18  ;;  %v1774_v42 = vmul.f32 %v4042_v16, %v1766_v41  ;;  %v5313_v40 = vadd.f32 %v4036_v39, %v1773_v33  ;;  %v1788_v53 = vadd.f32 %v5307_v10, %v5205_v45  ;;  %v4046_v28 = vpop.eup %4045  ;;  %2320 = vperm.xlu0 %3721, %v5446_v36   ;;  %v1948_v5 = vpop.permute.xlu1 %1947  ;;  %v5458_v39 = vld [vmem:[%s5964_s1] sm:$0xff]  ;;  %v5470_v16 = vld [vmem:[%s5964_s1 + $0x30] sm:$0xff] }
 0x458   : > { %v1795_v4 = vmul.f32 0.5, %v1787_v29  ;;  %3504 = vst [vmem:[%s4975_s26 + $0x50] sm:$0xff] %v1794_v14  ;;  %v1956_v41 = vpop.permute.xlu0 %1955 }
 0x459   : > { %v1775_v34 = vmul.f32 %v4046_v28, %v1767_v27  ;;  %v5318_v21 = vadd.f32 %v4040_v38, %v1774_v42  ;;  %v1789_v61 = vadd.f32 %v5313_v40, %v5202_v25  ;;  %v1796_v60 = vmul.f32 0.5, %v1788_v53  ;;  %v5476_v53 = vld [vmem:[%s5964_s1 + $0x28] sm:$0xff]  ;;  %v5482_v28 = vld [vmem:[%s5964_s1 + $0x20] sm:$0xff] }
 0x45a   : > { %3505 = vst [vmem:[%s4975_s26 + $0x58] sm:$0xff] %v1795_v4  ;;  %2312 = vperm.xlu1 %3722, %v5452_v51  }
 0x45b   : > { %v5323_v55 = vadd.f32 %v4044_v18, %v1775_v34  ;;  %v1790_v20 = vadd.f32 %v5318_v21, %v5199_v32  ;;  %v1797_v45 = vmul.f32 0.5, %v1789_v61  ;;  %3506 = vst [vmem:[%s4975_s26 + $0x60] sm:$0xff] %v1796_v60  ;;  %v5352_v32 = vld [vmem:[%s5965_s2 + $0x8] sm:$0xff]  ;;  %2308 = vperm.xlu0 %3721, %v5458_v39  }
 0x45d   : > { %v1791_v58 = vadd.f32 %v5323_v55, %v5197_v2  ;;  %1833 = vmatprep.subr.mxu0 %v5323_v55  ;;  %v1798_v22 = vmul.f32 0.5, %v1790_v20  ;;  %3507 = vst [vmem:[%s4975_s26 + $0x68] sm:$0xff] %v1797_v45  ;;  %v5344_v2 = vld [vmem:[%s5965_s2] sm:$0xff] }
 0x45e   : > { %1834 = vmatpush1.msra.mxu0 %v5318_v21  ;;  %2392 = vperm.xlu1 %3722, %v5464_v63  }
 0x45f   : > { %v1799_v25 = vmul.f32 0.5, %v1791_v58  ;;  %3508 = vst [vmem:[%s4975_s26 + $0x70] sm:$0xff] %v1798_v22  ;;  %1835 = vmatprep.subr.mxu0 %v5313_v40  ;;  %2388 = vperm.xlu0 %3721, %v5470_v16   ;;  %v5488_v58 = vld [vmem:[%s5964_s1 + $0x58] sm:$0xff]  ;;  %v5494_v22 = vld [vmem:[%s5964_s1 + $0x50] sm:$0xff] }
 0x460   : > { %1836 = vmatpush1.msra.mxu0 %v5307_v10 }
 0x461   : > { %3509 = vst [vmem:[%s4975_s26 + $0x78] sm:$0xff] %v1799_v25  ;;  %1837 = vmatprep.subr.mxu0 %v5301_v7 }
 0x462   : > { %1838 = vmatpush1.msra.mxu0 %v5296_v15  ;;  %2384 = vperm.xlu1 %3722, %v5476_v53  }
 0x463   : > { %1839 = vmatprep.subr.mxu0 %v5291_v19  ;;  %2380 = vperm.xlu0 %3721, %v5482_v28  }
 0x464   : > { %1840 = vmatpush1.msra.mxu0 %v5288_v43 }
 0x465   : > { %3510 = vmatmul.mubr.msk.f32.vlgmr.msra.gmra.mxu0 %vm263_vm0, %v5344_v2 }
 0x466   : > { %1879 = vmatprep.mubr.f32.mxu0 %v4517_v0  ;;  %2480 = vperm.xlu1 %3722, %v5488_v58  }
 0x467   : > { %2476 = vperm.xlu0 %3721, %v5494_v22  }
 0x469   : > { %3511 = vmatmul.mubr.msk.f32.gmra.mxu0 %vm263_vm0, %v5352_v32 }
 0x46a   : > { %1885 = vmatprep.mubr.f32.mxu0 %v4517_v0 }
 0x46d   : > { %3512 = vmatmul.mubr.msk.f32.gmra.mxu0 %vm263_vm0, %v5360_v31 }
 0x46e   : > { %1891 = vmatprep.mubr.f32.mxu0 %v4517_v0 }
 0x471   : > { %3513 = vmatmul.mubr.msk.f32.gmra.mxu0 %vm263_vm0, %v5368_v48 }
 0x472   : > { %1897 = vmatprep.mubr.f32.mxu0 %v4517_v0 }
 0x475   : > { %3514 = vmatmul.mubr.msk.f32.gmra.mxu0 %vm263_vm0, %v5376_v50 }
 0x476   : > { %1903 = vmatprep.mubr.f32.mxu0 %v4517_v0 }
 0x479   : > { %3515 = vmatmul.mubr.msk.f32.gmra.mxu0 %vm263_vm0, %v5384_v52 }
 0x47a   : > { %1909 = vmatprep.mubr.f32.mxu0 %v4517_v0 }
 0x47d   : > { %3516 = vmatmul.mubr.msk.f32.gmra.mxu0 %vm263_vm0, %v5392_v1 }
 0x47e   : > { %1915 = vmatprep.mubr.f32.mxu0 %v4517_v0 }
 0x481   : > { %3517 = vmatmul.mubr.msk.f32.gmra.mxu0 %vm263_vm0, %v5400_v44 }
 0x482   : > { %1921 = vmatprep.mubr.f32.mxu0 %v4517_v0 }
 0x485   : > { %3518 = vmatmul.mubr.msk.f32.gmra.mxu0 %vm263_vm0, %v5408_v57 }
 0x486   : > { %1927 = vmatprep.mubr.f32.mxu0 %v4517_v0 }
 0x489   : > { %3519 = vmatmul.mubr.msk.f32.gmra.mxu0 %vm263_vm0, %v5416_v12 }
 0x48a   : > { %1933 = vmatprep.mubr.f32.mxu0 %v4517_v0 }
 0x48d   : > { %3520 = vmatmul.mubr.msk.f32.gmra.mxu0 %vm263_vm0, %v5424_v13 }
 0x48e   : > { %1939 = vmatprep.mubr.f32.mxu0 %v4517_v0 }
 0x491   : > { %3521 = vmatmul.mubr.msk.f32.gmra.mxu0 %vm263_vm0, %v5432_v17 }
 0x492   : > { %2612 = vmatprep.mubr.f32.mxu0 %v4517_v0 }
 0x525   : > { %v1875_v30 = vpop.f32.mrf.mxu0 }
 0x526   : > { %v1962_v8 = vadd.f32 %v1948_v5, %v1875_v30  ;;  %v5500_v30 = vld [vmem:[%s5964_s1 + $0x48] sm:$0xff] }
 0x527   : > { %v1877_v23 = vpop.f32.mrf.mxu0  ;;  %2472 = vperm.xlu1 %3722, %v5500_v30  }
 0x528   : > { %v3522_v9 = vmul.f32 -1.442695, %v1962_v8  ;;  %v1963_v62 = vadd.f32 %v1948_v5, %v1877_v23  ;;  %v5506_v8 = vld [vmem:[%s5964_s1 + $0x40] sm:$0xff] }
 0x529   : > { %v1881_v24 = vpop.f32.mrf.mxu0  ;;  %2468 = vperm.xlu0 %3721, %v5506_v8  }
 0x52a   : > { %4047 = vpow2.f32 %v3522_v9  ;;  %v3523_v26 = vmul.f32 -1.442695, %v1963_v62  ;;  %v1964_v6 = vadd.f32 %v1952_v3, %v1881_v24  ;;  %v2032_v24 = vpop.permute.xlu0 %2031 }
 0x52b   : > { %v1883_v54 = vpop.f32.mrf.mxu0 }
 0x52c   : > { %4049 = vpow2.f32 %v3523_v26  ;;  %v3524_v37 = vmul.f32 -1.442695, %v1964_v6  ;;  %v1965_v38 = vadd.f32 %v1952_v3, %v1883_v54  ;;  %v2028_v6 = vpop.permute.xlu1 %2027 }
 0x52d   : > { %v1887_v33 = vpop.f32.mrf.mxu0 }
 0x52e   : > { %4051 = vpow2.f32 %v3524_v37  ;;  %v3525_v29 = vmul.f32 -1.442695, %v1965_v38  ;;  %v1966_v18 = vadd.f32 %v1956_v41, %v1887_v33 }
 0x52f   : > { %v1889_v14 = vpop.f32.mrf.mxu0 }
 0x530   : > { %4053 = vpow2.f32 %v3525_v29  ;;  %v3526_v27 = vmul.f32 -1.442695, %v1966_v18  ;;  %v1967_v42 = vadd.f32 %v1956_v41, %v1889_v14 }
 0x531   : > { %v1893_v4 = vpop.f32.mrf.mxu0 }
 0x532   : > { %4055 = vpow2.f32 %v3526_v27  ;;  %v3527_v34 = vmul.f32 -1.442695, %v1967_v42  ;;  %v1968_v61 = vadd.f32 %v1960_v11, %v1893_v4  ;;  %v2024_v27 = vpop.permute.xlu0 %2023 }
 0x533   : > { %v1895_v60 = vpop.f32.mrf.mxu0 }
 0x534   : > { %4057 = vpow2.f32 %v3527_v34  ;;  %v3528_v20 = vmul.f32 -1.442695, %v1968_v61  ;;  %v1969_v45 = vadd.f32 %v1960_v11, %v1895_v60  ;;  %v2020_v60 = vpop.permute.xlu1 %2019 }
 0x535   : > { %v1899_v25 = vpop.f32.mrf.mxu0 }
 0x536   : > { %4059 = vpow2.f32 %v3528_v20  ;;  %v3529_v3 = vmul.f32 -1.442695, %v1969_v45 }
 0x537   : > { %v4048_v35 = vpop.eup %4047  ;;  %v1901_v5 = vpop.f32.mrf.mxu0 }
 0x538   : > { %v1994_v11 = vadd.f32 1.0, %v4048_v35  ;;  %4061 = vpow2.f32 %v3529_v3 }
 0x539   : > { %v4050_v23 = vpop.eup %4049  ;;  %v1905_v9 = vpop.f32.mrf.mxu0 }
 0x53a   : > { %4063 = vrcp.f32 %v1994_v11  ;;  %v1995_v62 = vadd.f32 1.0, %v4050_v23 }
 0x53b   : > { %v4052_v26 = vpop.eup %4051  ;;  %v1907_v54 = vpop.f32.mrf.mxu0 }
 0x53c   : > { %4065 = vrcp.f32 %v1995_v62  ;;  %v1996_v37 = vadd.f32 1.0, %v4052_v26  ;;  %v2037_v20 = vadd.f32 %v2024_v27, %v1907_v54  ;;  %v2035_v62 = vadd.f32 %v2020_v60, %v1901_v5 }
 0x53d   : > { %v4054_v38 = vpop.eup %4053  ;;  %v1911_v41 = vpop.f32.mrf.mxu0  ;;  %v2036_v26 = vadd.f32 %v2024_v27, %v1905_v9 }
 0x53e   : > { %4067 = vrcp.f32 %v1996_v37  ;;  %v1997_v33 = vadd.f32 1.0, %v4054_v38  ;;  %v2038_v29 = vadd.f32 %v2028_v6, %v1911_v41  ;;  %v3531_v27 = vmul.f32 -1.442695, %v2035_v62 }
 0x53f   : > { %v4056_v18 = vpop.eup %4055  ;;  %v1913_v14 = vpop.f32.mrf.mxu0  ;;  %v3532_v5 = vmul.f32 -1.442695, %v2036_v26 }
 0x540   : > { %4069 = vrcp.f32 %v1997_v33  ;;  %v1998_v42 = vadd.f32 1.0, %v4056_v18  ;;  %v3534_v4 = vmul.f32 -1.442695, %v2038_v29  ;;  %v2039_v34 = vadd.f32 %v2028_v6, %v1913_v14 }
 0x541   : > { %v4058_v61 = vpop.eup %4057  ;;  %v1917_v45 = vpop.f32.mrf.mxu0  ;;  %v2034_v29 = vadd.f32 %v2020_v60, %v1899_v25  ;;  %v3533_v6 = vmul.f32 -1.442695, %v2037_v20 }
 0x542   : > { %4071 = vrcp.f32 %v1998_v42  ;;  %v1999_v3 = vadd.f32 1.0, %v4058_v61  ;;  %v3535_v35 = vmul.f32 -1.442695, %v2039_v34  ;;  %v2040_v11 = vadd.f32 %v2032_v24, %v1917_v45  ;;  %v2116_v45 = vpop.permute.xlu1 %2115 }
 0x543   : > { %v4060_v23 = vpop.eup %4059  ;;  %4073 = vpow2.f32 %v3534_v4  ;;  %v1919_v37 = vpop.f32.mrf.mxu0  ;;  %v3530_v25 = vmul.f32 -1.442695, %v2034_v29 }
 0x544   : > { %4075 = vrcp.f32 %v1999_v3  ;;  %v2000_v38 = vadd.f32 1.0, %v4060_v23  ;;  %v3536_v41 = vmul.f32 -1.442695, %v2040_v11  ;;  %v2041_v33 = vadd.f32 %v2032_v24, %v1919_v37  ;;  %v2120_v3 = vpop.permute.xlu0 %2119 }
 0x545   : > { %v4062_v18 = vpop.eup %4061  ;;  %4077 = vpow2.f32 %v3535_v35  ;;  %v1923_v14 = vpop.f32.mrf.mxu0 }
 0x546   : > { %4079 = vrcp.f32 %v2000_v38  ;;  %v2001_v54 = vadd.f32 1.0, %v4062_v18  ;;  %v3537_v42 = vmul.f32 -1.442695, %v2041_v33  ;;  %v2090_v34 = vadd.f32 %v1923_v14, %v4844_v56 }
 0x547   : > { %v4064_v61 = vpop.eup %4063  ;;  %4081 = vpow2.f32 %v3536_v41  ;;  %v1925_v9 = vpop.f32.mrf.mxu0 }
 0x548   : > { %4083 = vrcp.f32 %v2001_v54  ;;  %v2091_v4 = vadd.f32 %v1925_v9, %v4844_v56  ;;  %v2098_v20 = vmul.f32 %v4064_v61, %v2090_v34  ;;  %v2108_v41 = vpop.permute.xlu1 %2107  ;;  %v2112_v54 = vpop.permute.xlu0 %2111 }
 0x549   : > { %v4066_v24 = vpop.eup %4065  ;;  %4085 = vpow2.f32 %v3537_v42  ;;  %v1929_v60 = vpop.f32.mrf.mxu0 }
 0x54a   : > { %4087 = vpow2.f32 %v3533_v6  ;;  %v2092_v35 = vadd.f32 %v1929_v60, %v4838_v59  ;;  %v2099_v23 = vmul.f32 %v4066_v24, %v2091_v4  ;;  %v2122_v18 = vadd.f32 %v2108_v41, %v2098_v20 }
 0x54b   : > { %v4068_v11 = vpop.eup %4067  ;;  %4089 = vpow2.f32 %v3532_v5  ;;  %v1931_v37 = vpop.f32.mrf.mxu0 }
 0x54c   : > { %4091 = vpow2.f32 %v3531_v27  ;;  %v2100_v26 = vmul.f32 %v4068_v11, %v2092_v35  ;;  %v2093_v38 = vadd.f32 %v1931_v37, %v4838_v59  ;;  %v2123_v42 = vadd.f32 %v2108_v41, %v2099_v23 }
 0x54d   : > { %v4070_v62 = vpop.eup %4069  ;;  %4093 = vpow2.f32 %v3530_v25  ;;  %v1935_v33 = vpop.f32.mrf.mxu0 }
 0x54e   : > { %v2101_v29 = vmul.f32 %v4070_v62, %v2093_v38  ;;  %v2094_v14 = vadd.f32 %v1935_v33, %v4836_v49  ;;  %v2124_v5 = vadd.f32 %v2112_v54, %v2100_v26  ;;  %4095 = vtanh.f32 %v2122_v18 }
 0x54f   : > { %v4072_v6 = vpop.eup %4071  ;;  %v1937_v34 = vpop.f32.mrf.mxu0  ;;  %4097 = vtanh.f32 %v2123_v42 }
 0x550   : > { %v4074_v61 = vpop.eup %4073  ;;  %v2102_v9 = vmul.f32 %v4072_v6, %v2094_v14  ;;  %v2095_v27 = vadd.f32 %v1937_v34, %v4836_v49  ;;  %v2125_v24 = vadd.f32 %v2112_v54, %v2101_v29  ;;  %4099 = vtanh.f32 %v2124_v5 }
 0x551   : > { %v4076_v4 = vpop.eup %4075  ;;  %v1941_v60 = vpop.f32.mrf.mxu0  ;;  %v2070_v5 = vadd.f32 1.0, %v4074_v61 }
 0x552   : > { %v4078_v35 = vpop.eup %4077  ;;  %v2103_v25 = vmul.f32 %v4076_v4, %v2095_v27  ;;  %v2096_v20 = vadd.f32 %v1941_v60, %v4834_v46  ;;  %v2126_v37 = vadd.f32 %v2116_v45, %v2102_v9  ;;  %4101 = vtanh.f32 %v2125_v24 }
 0x553   : > { %v4080_v11 = vpop.eup %4079  ;;  %v1943_v38 = vpop.f32.mrf.mxu0  ;;  %v2071_v14 = vadd.f32 1.0, %v4078_v35 }
 0x554   : > { %v4082_v62 = vpop.eup %4081  ;;  %v2127_v23 = vadd.f32 %v2116_v45, %v2103_v25  ;;  %v2104_v41 = vmul.f32 %v4080_v11, %v2096_v20  ;;  %v2097_v26 = vadd.f32 %v1943_v38, %v4834_v46 }
 0x555   : > { %v4084_v33 = vpop.eup %4083  ;;  %v2072_v34 = vadd.f32 1.0, %v4082_v62 }
 0x556   : > { %v4086_v29 = vpop.eup %4085  ;;  %4103 = vtanh.f32 %v2127_v23  ;;  %v2128_v6 = vadd.f32 %v2120_v3, %v2104_v41  ;;  %v2105_v18 = vmul.f32 %v4084_v33, %v2097_v26 }
 0x557   : > { %v4088_v54 = vpop.eup %4087  ;;  %4105 = vtanh.f32 %v2126_v37  ;;  %v2073_v42 = vadd.f32 1.0, %v4086_v29 }
 0x558   : > { %v4090_v27 = vpop.eup %4089  ;;  %4107 = vtanh.f32 %v2128_v6  ;;  %v2129_v9 = vadd.f32 %v2120_v3, %v2105_v18  ;;  %v2069_v60 = vadd.f32 1.0, %v4088_v54 }
 0x559   : > { %v4092_v4 = vpop.eup %4091  ;;  %4109 = vrcp.f32 %v2071_v14  ;;  %v2068_v25 = vadd.f32 1.0, %v4090_v27 }
 0x55a   : > { %v4094_v45 = vpop.eup %4093  ;;  %4111 = vtanh.f32 %v2129_v9  ;;  %v2067_v24 = vadd.f32 1.0, %v4092_v4 }
 0x55b   : > { %4113 = vrcp.f32 %v2072_v34  ;;  %v2066_v35 = vadd.f32 1.0, %v4094_v45  ;;  %v4096_v20 = vpop.eup %4095 }
 0x55c   : > { %4115 = vrcp.f32 %v2073_v42  ;;  %v4098_v11 = vpop.eup %4097 }
 0x55d   : > { %4117 = vrcp.f32 %v2070_v5  ;;  %v4100_v37 = vpop.eup %4099  ;;  %v2139_v5 = vsub.f32 %v5291_v19, %v4098_v11 }
 0x55e   : > { %4119 = vrcp.f32 %v2069_v60  ;;  %v2140_v27 = vsub.f32 %v5296_v15, %v4100_v37 }
 0x55f   : > { %4121 = vrcp.f32 %v2068_v25  ;;  %v4102_v3 = vpop.eup %4101 }
 0x560   : > { %4123 = vrcp.f32 %v2067_v24  ;;  %v2141_v18 = vsub.f32 %v5301_v7, %v4102_v3 }
 0x561   : > { %4125 = vrcp.f32 %v2066_v35 }
 0x563   : > { %v4104_v38 = vpop.eup %4103 }
 0x564   : > { %v4106_v61 = vpop.eup %4105  ;;  %v2143_v26 = vsub.f32 %v5313_v40, %v4104_v38  ;;  %v2138_v40 = vsub.f32 %v5288_v43, %v4096_v20 }
 0x565   : > { %v4108_v62 = vpop.eup %4107  ;;  %v2142_v14 = vsub.f32 %v5307_v10, %v4106_v61 }
 0x566   : > { %v4110_v23 = vpop.eup %4109  ;;  %v2144_v41 = vsub.f32 %v5318_v21, %v4108_v62 }
 0x567   : > { %v4112_v33 = vpop.eup %4111  ;;  %v2151_v4 = vmul.f32 %v4110_v23, %v2143_v26 }
 0x568   : > { %v4114_v29 = vpop.eup %4113  ;;  %v2145_v6 = vsub.f32 %v5323_v55, %v4112_v33 }
 0x569   : > { %v4116_v54 = vpop.eup %4115  ;;  %v2152_v34 = vmul.f32 %v4114_v29, %v2144_v41  ;;  %v5530_v15 = vadd.f32 %v4104_v38, %v2151_v4 }
 0x56a   : > { %v4118_v42 = vpop.eup %4117  ;;  %v2153_v9 = vmul.f32 %v4116_v54, %v2145_v6 }
 0x56b   : > { %v4120_v21 = vpop.eup %4119  ;;  %v2150_v45 = vmul.f32 %v4118_v42, %v2142_v14  ;;  %v5527_v24 = vadd.f32 %v4108_v62, %v2152_v34 }
 0x56c   : > { %v4122_v60 = vpop.eup %4121  ;;  %v5525_v10 = vadd.f32 %v4112_v33, %v2153_v9  ;;  %v2149_v25 = vmul.f32 %v4120_v21, %v2141_v18 }
 0x56d   : > { %v4124_v55 = vpop.eup %4123  ;;  %v2148_v7 = vmul.f32 %v4122_v60, %v2140_v27  ;;  %v5533_v19 = vadd.f32 %v4106_v61, %v2150_v45 }
 0x56e   : > { %v4126_v35 = vpop.eup %4125  ;;  %2194 = vmatprep.subr.mxu1 %v5525_v10  ;;  %v2147_v23 = vmul.f32 %v4124_v55, %v2139_v5  ;;  %v5536_v43 = vadd.f32 %v4102_v3, %v2149_v25 }
 0x56f   : > { %2195 = vmatpush1.msra.mxu1 %v5527_v24  ;;  %v2146_v41 = vmul.f32 %v4126_v35, %v2138_v40  ;;  %v5539_v62 = vadd.f32 %v4100_v37, %v2148_v7 }
 0x570   : > { %2196 = vmatprep.subr.mxu1 %v5530_v15  ;;  %v5542_v26 = vadd.f32 %v4098_v11, %v2147_v23 }
 0x571   : > { %2197 = vmatpush1.msra.mxu1 %v5533_v19  ;;  %v5545_v38 = vadd.f32 %v4096_v20, %v2146_v41 }
 0x572   : > { %2198 = vmatprep.subr.mxu1 %v5536_v43 }
 0x573   : > { %2199 = vmatpush1.msra.mxu1 %v5539_v62 }
 0x574   : > { %2200 = vmatprep.subr.mxu1 %v5542_v26 }
 0x575   : > { %2201 = vmatpush1.msra.mxu1 %v5545_v38 }
 0x576   : > { %3538 = vmatmul.mubr.msk.f32.vlgmr.msra.gmra.mxu1 %vm263_vm0, %v5344_v2  ;;  %v2321_v2 = vpop.permute.xlu0 %2320 }
 0x577   : > { %2240 = vmatprep.mubr.f32.mxu1 %v4517_v0 }
 0x57a   : > { %3539 = vmatmul.mubr.msk.f32.gmra.mxu1 %vm263_vm0, %v5352_v32  ;;  %v2317_v32 = vpop.permute.xlu1 %2316 }
 0x57b   : > { %2246 = vmatprep.mubr.f32.mxu1 %v4517_v0 }
 0x57e   : > { %3540 = vmatmul.mubr.msk.f32.gmra.mxu1 %vm263_vm0, %v5360_v31  ;;  %v4524_v31 = vmov 6  }
 0x57f   : > { %2252 = vmatprep.mubr.f32.mxu1 %v4517_v0  ;;  %3723 = vset.pattern.permute.xlu1 %v4524_v31 }
 0x580   : > { %3724 = vset.pattern.permute.xlu0 %v4524_v31  ;;  %2698 = vperm.xlu1 %3723, %v5446_v36  }
 0x581   : > { %2694 = vperm.xlu0 %3724, %v5440_v47  }
 0x582   : > { %3541 = vmatmul.mubr.msk.f32.gmra.mxu1 %vm263_vm0, %v5368_v48  ;;  %v2309_v48 = vpop.permute.xlu0 %2308 }
 0x583   : > { %2258 = vmatprep.mubr.f32.mxu1 %v4517_v0 }
 0x584   : > { %2690 = vperm.xlu1 %3723, %v5452_v51  }
 0x585   : > { %2770 = vperm.xlu0 %3724, %v5464_v63  }
 0x586   : > { %3542 = vmatmul.mubr.msk.f32.gmra.mxu1 %vm263_vm0, %v5376_v50  ;;  %v2389_v51 = vpop.permute.xlu0 %2388 }
 0x587   : > { %2264 = vmatprep.mubr.f32.mxu1 %v4517_v0 }
 0x588   : > { %2686 = vperm.xlu1 %3723, %v5458_v39  }
 0x589   : > { %2762 = vperm.xlu0 %3724, %v5476_v53  }
 0x58a   : > { %3543 = vmatmul.mubr.msk.f32.gmra.mxu1 %vm263_vm0, %v5384_v52  ;;  %v2381_v27 = vpop.permute.xlu0 %2380 }
 0x58b   : > { %2270 = vmatprep.mubr.f32.mxu1 %v4517_v0 }
 0x58c   : > { %2766 = vperm.xlu1 %3723, %v5470_v16  }
 0x58d   : > { %2858 = vperm.xlu0 %3724, %v5488_v58  }
 0x58e   : > { %3544 = vmatmul.mubr.msk.f32.gmra.mxu1 %vm263_vm0, %v5392_v1 }
 0x58f   : > { %2276 = vmatprep.mubr.f32.mxu1 %v4517_v0 }
 0x590   : > { %2758 = vperm.xlu1 %3723, %v5482_v28  }
 0x591   : > { %2850 = vperm.xlu0 %3724, %v5500_v30  }
 0x592   : > { %3545 = vmatmul.mubr.msk.f32.gmra.mxu1 %vm263_vm0, %v5400_v44 }
 0x593   : > { %2282 = vmatprep.mubr.f32.mxu1 %v4517_v0 }
 0x594   : > { %2854 = vperm.xlu1 %3723, %v5494_v22  }
 0x596   : > { %3546 = vmatmul.mubr.msk.f32.gmra.mxu1 %vm263_vm0, %v5408_v57 }
 0x597   : > { %2288 = vmatprep.mubr.f32.mxu1 %v4517_v0 }
 0x598   : > { %2846 = vperm.xlu1 %3723, %v5506_v8  }
 0x59a   : > { %3547 = vmatmul.mubr.msk.f32.gmra.mxu1 %vm263_vm0, %v5416_v12  ;;  %v2313_v12 = vpop.permute.xlu1 %2312 }
 0x59b   : > { %2294 = vmatprep.mubr.f32.mxu1 %v4517_v0 }
 0x59e   : > { %3548 = vmatmul.mubr.msk.f32.gmra.mxu1 %vm263_vm0, %v5424_v13  ;;  %v2393_v39 = vpop.permute.xlu1 %2392 }
 0x59f   : > { %2300 = vmatprep.mubr.f32.mxu1 %v4517_v0 }
 0x5a2   : > { %3549 = vmatmul.mubr.msk.f32.gmra.mxu1 %vm263_vm0, %v5432_v17  ;;  %v2385_v60 = vpop.permute.xlu1 %2384 }
 0x5a3   : > { %2973 = vmatprep.mubr.f32.mxu1 %v4517_v0 }
 0x636   : > { %v2236_v50 = vpop.f32.mrf.mxu1 }
 0x637   : > { %v2323_v52 = vadd.f32 %v2309_v48, %v2236_v50 }
 0x638   : > { %v2238_v1 = vpop.f32.mrf.mxu1 }
 0x639   : > { %v3550_v44 = vmul.f32 -1.442695, %v2323_v52  ;;  %v2324_v57 = vadd.f32 %v2309_v48, %v2238_v1 }
 0x63a   : > { %v2242_v13 = vpop.f32.mrf.mxu1 }
 0x63b   : > { %4127 = vpow2.f32 %v3550_v44  ;;  %v3551_v17 = vmul.f32 -1.442695, %v2324_v57  ;;  %v2325_v20 = vadd.f32 %v2313_v12, %v2242_v13 }
 0x63c   : > { %v2244_v11 = vpop.f32.mrf.mxu1 }
 0x63d   : > { %4129 = vpow2.f32 %v3551_v17  ;;  %v3552_v36 = vmul.f32 -1.442695, %v2325_v20  ;;  %v2326_v37 = vadd.f32 %v2313_v12, %v2244_v11 }
 0x63e   : > { %v2248_v47 = vpop.f32.mrf.mxu1 }
 0x63f   : > { %4131 = vpow2.f32 %v3552_v36  ;;  %v3553_v3 = vmul.f32 -1.442695, %v2326_v37  ;;  %v2327_v61 = vadd.f32 %v2317_v32, %v2248_v47  ;;  %v5597_v37 = vpop.permute.xlu0 %2476 }
 0x640   : > { %v2250_v33 = vpop.f32.mrf.mxu1 }
 0x641   : > { %4133 = vpow2.f32 %v3553_v3  ;;  %v3554_v63 = vmul.f32 -1.442695, %v2327_v61  ;;  %v2328_v14 = vadd.f32 %v2317_v32, %v2250_v33 }
 0x642   : > { %v2254_v29 = vpop.f32.mrf.mxu1 }
 0x643   : > { %4135 = vpow2.f32 %v3554_v63  ;;  %v3555_v6 = vmul.f32 -1.442695, %v2328_v14  ;;  %v2329_v18 = vadd.f32 %v2321_v2, %v2254_v29 }
 0x644   : > { %v2256_v54 = vpop.f32.mrf.mxu1 }
 0x645   : > { %4137 = vpow2.f32 %v3555_v6  ;;  %v3556_v53 = vmul.f32 -1.442695, %v2329_v18  ;;  %v2330_v34 = vadd.f32 %v2321_v2, %v2256_v54  ;;  %v5600_v54 = vpop.permute.xlu1 %2480 }
 0x646   : > { %v2260_v42 = vpop.f32.mrf.mxu1 }
 0x647   : > { %4139 = vpow2.f32 %v3556_v53  ;;  %v3557_v9 = vmul.f32 -1.442695, %v2330_v34  ;;  %v2395_v16 = vadd.f32 %v2381_v27, %v2260_v42 }
 0x648   : > { %v4128_v4 = vpop.eup %4127  ;;  %v2262_v58 = vpop.f32.mrf.mxu1 }
 0x649   : > { %v2355_v5 = vadd.f32 1.0, %v4128_v4  ;;  %4141 = vpow2.f32 %v3557_v9  ;;  %v3558_v21 = vmul.f32 -1.442695, %v2395_v16  ;;  %v2396_v45 = vadd.f32 %v2381_v27, %v2262_v58 }
 0x64a   : > { %v4130_v40 = vpop.eup %4129  ;;  %v2266_v25 = vpop.f32.mrf.mxu1 }
 0x64b   : > { %4143 = vrcp.f32 %v2355_v5  ;;  %v2356_v28 = vadd.f32 1.0, %v4130_v40  ;;  %v3559_v55 = vmul.f32 -1.442695, %v2396_v45  ;;  %v2397_v30 = vadd.f32 %v2385_v60, %v2266_v25 }
 0x64c   : > { %v4132_v7 = vpop.eup %4131  ;;  %4145 = vpow2.f32 %v3558_v21  ;;  %v2268_v35 = vpop.f32.mrf.mxu1 }
 0x64d   : > { %4147 = vrcp.f32 %v2356_v28  ;;  %v2357_v23 = vadd.f32 1.0, %v4132_v7  ;;  %v3560_v41 = vmul.f32 -1.442695, %v2397_v30  ;;  %v2398_v2 = vadd.f32 %v2385_v60, %v2268_v35 }
 0x64e   : > { %v4134_v32 = vpop.eup %4133  ;;  %4149 = vpow2.f32 %v3559_v55  ;;  %v2272_v31 = vpop.f32.mrf.mxu1 }
 0x64f   : > { %4151 = vrcp.f32 %v2357_v23  ;;  %v2358_v22 = vadd.f32 1.0, %v4134_v32  ;;  %v3561_v48 = vmul.f32 -1.442695, %v2398_v2  ;;  %v2399_v50 = vadd.f32 %v2389_v51, %v2272_v31  ;;  %v2473_v23 = vpop.permute.xlu1 %2472 }
 0x650   : > { %v4136_v52 = vpop.eup %4135  ;;  %4153 = vpow2.f32 %v3560_v41  ;;  %v2274_v1 = vpop.f32.mrf.mxu1 }
 0x651   : > { %4155 = vrcp.f32 %v2358_v22  ;;  %v2359_v44 = vadd.f32 1.0, %v4136_v52  ;;  %v3562_v57 = vmul.f32 -1.442695, %v2399_v50  ;;  %v2400_v12 = vadd.f32 %v2389_v51, %v2274_v1 }
 0x652   : > { %v4138_v13 = vpop.eup %4137  ;;  %4157 = vpow2.f32 %v3561_v48  ;;  %v2278_v17 = vpop.f32.mrf.mxu1 }
 0x653   : > { %4159 = vrcp.f32 %v2359_v44  ;;  %v2360_v20 = vadd.f32 1.0, %v4138_v13  ;;  %v3563_v8 = vmul.f32 -1.442695, %v2400_v12  ;;  %v2401_v11 = vadd.f32 %v2393_v39, %v2278_v17 }
 0x654   : > { %v4140_v36 = vpop.eup %4139  ;;  %4161 = vpow2.f32 %v3562_v57  ;;  %v2280_v47 = vpop.f32.mrf.mxu1 }
 0x655   : > { %4163 = vrcp.f32 %v2360_v20  ;;  %v2361_v3 = vadd.f32 1.0, %v4140_v36  ;;  %v3564_v61 = vmul.f32 -1.442695, %v2401_v11  ;;  %v2402_v33 = vadd.f32 %v2393_v39, %v2280_v47  ;;  %v2469_v39 = vpop.permute.xlu0 %2468 }
 0x656   : > { %v4142_v63 = vpop.eup %4141  ;;  %4165 = vpow2.f32 %v3563_v8  ;;  %v2284_v14 = vpop.f32.mrf.mxu1 }
 0x657   : > { %4167 = vrcp.f32 %v2361_v3  ;;  %v2362_v51 = vadd.f32 1.0, %v4142_v63  ;;  %v3565_v29 = vmul.f32 -1.442695, %v2402_v33  ;;  %v2451_v6 = vadd.f32 %v2284_v14, %v4844_v56 }
 0x658   : > { %v4144_v18 = vpop.eup %4143  ;;  %4169 = vpow2.f32 %v3564_v61  ;;  %v2286_v53 = vpop.f32.mrf.mxu1 }
 0x659   : > { %v4146_v34 = vpop.eup %4145  ;;  %4171 = vrcp.f32 %v2362_v51  ;;  %v2459_v27 = vmul.f32 %v4144_v18, %v2451_v6  ;;  %v2452_v42 = vadd.f32 %v2286_v53, %v4844_v56 }
 0x65a   : > { %v4148_v9 = vpop.eup %4147  ;;  %v2427_v16 = vadd.f32 1.0, %v4146_v34  ;;  %4173 = vpow2.f32 %v3565_v29  ;;  %v2290_v4 = vpop.f32.mrf.mxu1 }
 0x65b   : > { %v4150_v58 = vpop.eup %4149  ;;  %v2483_v5 = vadd.f32 %v2469_v39, %v2459_v27  ;;  %v2460_v21 = vmul.f32 %v4148_v9, %v2452_v42  ;;  %v2453_v45 = vadd.f32 %v2290_v4, %v4838_v59 }
 0x65c   : > { %v4152_v40 = vpop.eup %4151  ;;  %v2428_v60 = vadd.f32 1.0, %v4150_v58  ;;  %v2292_v25 = vpop.f32.mrf.mxu1 }
 0x65d   : > { %v4154_v28 = vpop.eup %4153  ;;  %4175 = vtanh.f32 %v2483_v5  ;;  %v2484_v55 = vadd.f32 %v2469_v39, %v2460_v21  ;;  %v2461_v30 = vmul.f32 %v4152_v40, %v2453_v45  ;;  %v2454_v7 = vadd.f32 %v2292_v25, %v4838_v59 }
 0x65e   : > { %v4156_v35 = vpop.eup %4155  ;;  %4177 = vrcp.f32 %v2427_v16  ;;  %v2429_v41 = vadd.f32 1.0, %v4154_v28  ;;  %v2296_v2 = vpop.f32.mrf.mxu1 }
 0x65f   : > { %v4158_v32 = vpop.eup %4157  ;;  %4179 = vtanh.f32 %v2484_v55  ;;  %v2485_v31 = vadd.f32 %v2473_v23, %v2461_v30  ;;  %v2462_v22 = vmul.f32 %v4156_v35, %v2454_v7  ;;  %v2455_v48 = vadd.f32 %v2296_v2, %v4836_v49 }
 0x660   : > { %v4160_v50 = vpop.eup %4159  ;;  %4181 = vrcp.f32 %v2428_v60  ;;  %v2430_v52 = vadd.f32 1.0, %v4158_v32  ;;  %v2298_v1 = vpop.f32.mrf.mxu1 }
 0x661   : > { %v4162_v44 = vpop.eup %4161  ;;  %4183 = vtanh.f32 %v2485_v31  ;;  %v2486_v57 = vadd.f32 %v2473_v23, %v2462_v22  ;;  %v2463_v12 = vmul.f32 %v4160_v50, %v2455_v48  ;;  %v2456_v13 = vadd.f32 %v2298_v1, %v4836_v49 }
 0x662   : > { %v4164_v17 = vpop.eup %4163  ;;  %4185 = vrcp.f32 %v2429_v41  ;;  %v2431_v20 = vadd.f32 1.0, %v4162_v44  ;;  %v2302_v8 = vpop.f32.mrf.mxu1 }
 0x663   : > { %v4166_v11 = vpop.eup %4165  ;;  %4187 = vtanh.f32 %v2486_v57  ;;  %v2487_v36 = vadd.f32 %v5597_v37, %v2463_v12  ;;  %v2464_v47 = vmul.f32 %v4164_v17, %v2456_v13  ;;  %v2457_v3 = vadd.f32 %v2302_v8, %v4834_v46 }
 0x664   : > { %v4168_v61 = vpop.eup %4167  ;;  %4189 = vrcp.f32 %v2430_v52  ;;  %v2432_v33 = vadd.f32 1.0, %v4166_v11  ;;  %v2304_v63 = vpop.f32.mrf.mxu1 }
 0x665   : > { %v4170_v14 = vpop.eup %4169  ;;  %4191 = vtanh.f32 %v2487_v36  ;;  %v2488_v51 = vadd.f32 %v5597_v37, %v2464_v47  ;;  %v2465_v29 = vmul.f32 %v4168_v61, %v2457_v3  ;;  %v2458_v6 = vadd.f32 %v2304_v63, %v4834_v46 }
 0x666   : > { %v4172_v18 = vpop.eup %4171  ;;  %4193 = vrcp.f32 %v2431_v20  ;;  %v2433_v53 = vadd.f32 1.0, %v4170_v14 }
 0x667   : > { %v4174_v34 = vpop.eup %4173  ;;  %4195 = vtanh.f32 %v2488_v51  ;;  %v2489_v27 = vadd.f32 %v5600_v54, %v2465_v29  ;;  %v2466_v42 = vmul.f32 %v4172_v18, %v2458_v6 }
 0x668   : > { %4197 = vrcp.f32 %v2432_v33  ;;  %v2434_v9 = vadd.f32 1.0, %v4174_v34 }
 0x669   : > { %4199 = vtanh.f32 %v2489_v27  ;;  %v2490_v39 = vadd.f32 %v5600_v54, %v2466_v42 }
 0x66a   : > { %v4176_v16 = vpop.eup %4175  ;;  %4201 = vrcp.f32 %v2433_v53 }
 0x66b   : > { %v4178_v4 = vpop.eup %4177  ;;  %4203 = vtanh.f32 %v2490_v39  ;;  %v2499_v37 = vsub.f32 %v5545_v38, %v4176_v16  ;;  %v5688_v39 = vld [vmem:[%s5965_s2 + $0x10] sm:$0xff] }
 0x66c   : > { %v4180_v58 = vpop.eup %4179  ;;  %4205 = vrcp.f32 %v2434_v9 }
 0x66d   : > { %v4182_v5 = vpop.eup %4181  ;;  %v2500_v21 = vsub.f32 %v5542_v26, %v4180_v58  ;;  %v2507_v45 = vmul.f32 %v4178_v4, %v2499_v37  ;;  %v5704_v4 = vld [vmem:[%s5965_s2 + $0x20] sm:$0xff]  ;;  %v5712_v37 = vld [vmem:[%s5965_s2 + $0x28] sm:$0xff] }
 0x66e   : > { %v4184_v40 = vpop.eup %4183 }
 0x66f   : > { %v4186_v60 = vpop.eup %4185  ;;  %v2501_v25 = vsub.f32 %v5539_v62, %v4184_v40  ;;  %v2508_v28 = vmul.f32 %v4182_v5, %v2500_v21  ;;  %v5616_v55 = vadd.f32 %v4176_v16, %v2507_v45  ;;  %v5696_v16 = vld [vmem:[%s5965_s2 + $0x18] sm:$0xff]  ;;  %v5736_v21 = vld [vmem:[%s5965_s2 + $0x40] sm:$0xff]  ;;  %v5744_v45 = vld [vmem:[%s5965_s2 + $0x48] sm:$0xff] }
 0x670   : > { %v4188_v54 = vpop.eup %4187  ;;  %v5728_v5 = vld [vmem:[%s5965_s2 + $0x38] sm:$0xff] }
 0x671   : > { %v4190_v30 = vpop.eup %4189  ;;  %v2502_v7 = vsub.f32 %v5536_v43, %v4188_v54  ;;  %v2509_v35 = vmul.f32 %v4186_v60, %v2501_v25  ;;  %v5619_v23 = vadd.f32 %v4180_v58, %v2508_v28  ;;  %v2523_v41 = vadd.f32 %v5616_v55, %v5545_v38  ;;  %v5720_v58 = vld [vmem:[%s5965_s2 + $0x30] sm:$0xff]  ;;  %v5760_v60 = vld [vmem:[%s5965_s2 + $0x58] sm:$0xff]  ;;  %v2699_v25 = vpop.permute.xlu1 %2698 }
 0x672   : > { %v4192_v2 = vpop.eup %4191 }
 0x673   : > { %v4194_v32 = vpop.eup %4193  ;;  %v2503_v31 = vsub.f32 %v5533_v19, %v4192_v2  ;;  %v2510_v22 = vmul.f32 %v4190_v30, %v2502_v7  ;;  %v5624_v48 = vadd.f32 %v4184_v40, %v2509_v35  ;;  %v2524_v50 = vadd.f32 %v5619_v23, %v5542_v26  ;;  %v5752_v40 = vld [vmem:[%s5965_s2 + $0x50] sm:$0xff]  ;;  %v4427_v30 = vld [vmem:[%s5964_s1] sm:$0xff]  ;;  %v4428_v7 = vld [vmem:[%s5964_s1 + $0x8] sm:$0xff] }
 0x674   : > { %v4196_v52 = vpop.eup %4195  ;;  %v2531_v1 = vmul.f32 0.5, %v2523_v41 }
 0x675   : > { %v4198_v44 = vpop.eup %4197  ;;  %v2504_v57 = vsub.f32 %v5530_v15, %v4196_v52  ;;  %v2511_v12 = vmul.f32 %v4194_v32, %v2503_v31  ;;  %v5629_v13 = vadd.f32 %v4188_v54, %v2510_v22  ;;  %v2525_v38 = vadd.f32 %v5624_v48, %v5539_v62  ;;  %v2691_v28 = vpop.permute.xlu1 %2690 }
 0x676   : > { %v4200_v17 = vpop.eup %4199  ;;  %v2532_v20 = vmul.f32 0.5, %v2524_v50  ;;  %3566 = vst [vmem:[%s4975_s26 + $0x80] sm:$0xff] %v2531_v1  ;;  %v4525_v54 = vmov 7   ;;  %v4429_v50 = vld [vmem:[%s5964_s1 + $0x10] sm:$0xff] }
 0x677   : > { %v4202_v8 = vpop.eup %4201  ;;  %v2505_v11 = vsub.f32 %v5527_v24, %v4200_v17  ;;  %v2512_v26 = vmul.f32 %v4198_v44, %v2504_v57  ;;  %v5635_v36 = vadd.f32 %v4192_v2, %v2511_v12  ;;  %v2526_v47 = vadd.f32 %v5629_v13, %v5536_v43  ;;  %3725 = vset.pattern.permute.xlu0 %v4525_v54 }
 0x678   : > { %v4204_v3 = vpop.eup %4203  ;;  %v2533_v61 = vmul.f32 0.5, %v2525_v38  ;;  %3567 = vst [vmem:[%s4975_s26 + $0x88] sm:$0xff] %v2532_v20  ;;  %3726 = vset.pattern.permute.xlu1 %v4525_v54  ;;  %3047 = vperm.xlu0 %3725, %v4427_v30   ;;  %v4431_v20 = vld [vmem:[%s5964_s1 + $0x20] sm:$0xff] }
 0x679   : > { %v2506_v62 = vsub.f32 %v5525_v10, %v4204_v3  ;;  %v2513_v33 = vmul.f32 %v4202_v8, %v2505_v11  ;;  %v5641_v63 = vadd.f32 %v4196_v52, %v2512_v26  ;;  %v2527_v14 = vadd.f32 %v5635_v36, %v5533_v19  ;;  %v4206_v51 = vpop.eup %4205  ;;  %3051 = vperm.xlu1 %3726, %v4428_v7   ;;  %v2687_v35 = vpop.permute.xlu1 %2686  ;;  %v4430_v52 = vld [vmem:[%s5964_s1 + $0x18] sm:$0xff]  ;;  %v4432_v8 = vld [vmem:[%s5964_s1 + $0x28] sm:$0xff] }
 0x67a   : > { %v2534_v29 = vmul.f32 0.5, %v2526_v47  ;;  %3568 = vst [vmem:[%s4975_s26 + $0x90] sm:$0xff] %v2533_v61  ;;  %v2695_v11 = vpop.permute.xlu0 %2694 }
 0x67b   : > { %v2514_v6 = vmul.f32 %v4206_v51, %v2506_v62  ;;  %v5646_v18 = vadd.f32 %v4200_v17, %v2513_v33  ;;  %v2528_v43 = vadd.f32 %v5641_v63, %v5530_v15  ;;  %v2535_v53 = vmul.f32 0.5, %v2527_v14  ;;  %v4433_v14 = vld [vmem:[%s5964_s1 + $0x30] sm:$0xff]  ;;  %v4434_v51 = vld [vmem:[%s5964_s1 + $0x38] sm:$0xff] }
 0x67c   : > { %3569 = vst [vmem:[%s4975_s26 + $0x98] sm:$0xff] %v2534_v29  ;;  %3059 = vperm.xlu0 %3725, %v4430_v52  }
 0x67d   : > { %v5651_v34 = vadd.f32 %v4204_v3, %v2514_v6  ;;  %v2529_v27 = vadd.f32 %v5646_v18, %v5527_v24  ;;  %v2536_v19 = vmul.f32 0.5, %v2528_v43  ;;  %3570 = vst [vmem:[%s4975_s26 + $0xa0] sm:$0xff] %v2535_v53  ;;  %v5680_v24 = vld [vmem:[%s5965_s2 + $0x8] sm:$0xff]  ;;  %3055 = vperm.xlu1 %3726, %v4429_v50   ;;  %v2767_v50 = vpop.permute.xlu1 %2766 }
 0x67f   : > { %v2530_v42 = vadd.f32 %v5651_v34, %v5525_v10  ;;  %2572 = vmatprep.subr.mxu0 %v5651_v34  ;;  %v2537_v9 = vmul.f32 0.5, %v2529_v27  ;;  %3571 = vst [vmem:[%s4975_s26 + $0xa8] sm:$0xff] %v2536_v19  ;;  %v5672_v10 = vld [vmem:[%s5965_s2] sm:$0xff] }
 0x680   : > { %2573 = vmatpush1.msra.mxu0 %v5646_v18  ;;  %3123 = vperm.xlu0 %3725, %v4432_v8  }
 0x681   : > { %v2538_v15 = vmul.f32 0.5, %v2530_v42  ;;  %3572 = vst [vmem:[%s4975_s26 + $0xb0] sm:$0xff] %v2537_v9  ;;  %2574 = vmatprep.subr.mxu0 %v5641_v63  ;;  %3119 = vperm.xlu1 %3726, %v4431_v20   ;;  %v4435_v42 = vld [vmem:[%s5964_s1 + $0x40] sm:$0xff]  ;;  %v4436_v9 = vld [vmem:[%s5964_s1 + $0x48] sm:$0xff] }
 0x682   : > { %2575 = vmatpush1.msra.mxu0 %v5635_v36 }
 0x683   : > { %3573 = vst [vmem:[%s4975_s26 + $0xb8] sm:$0xff] %v2538_v15  ;;  %2576 = vmatprep.subr.mxu0 %v5629_v13 }
 0x684   : > { %2577 = vmatpush1.msra.mxu0 %v5624_v48  ;;  %3131 = vperm.xlu0 %3725, %v4434_v51  }
 0x685   : > { %2578 = vmatprep.subr.mxu0 %v5619_v23  ;;  %3127 = vperm.xlu1 %3726, %v4433_v14  }
 0x686   : > { %2579 = vmatpush1.msra.mxu0 %v5616_v55 }
 0x687   : > { %3574 = vmatmul.mubr.msk.f32.vlgmr.msra.gmra.mxu0 %vm263_vm0, %v5672_v10 }
 0x688   : > { %2618 = vmatprep.mubr.f32.mxu0 %v4517_v0  ;;  %3211 = vperm.xlu0 %3725, %v4436_v9  }
 0x689   : > { %3207 = vperm.xlu1 %3726, %v4435_v42  }
 0x68b   : > { %3575 = vmatmul.mubr.msk.f32.gmra.mxu0 %vm263_vm0, %v5680_v24 }
 0x68c   : > { %2624 = vmatprep.mubr.f32.mxu0 %v4517_v0 }
 0x68f   : > { %3576 = vmatmul.mubr.msk.f32.gmra.mxu0 %vm263_vm0, %v5688_v39 }
 0x690   : > { %2630 = vmatprep.mubr.f32.mxu0 %v4517_v0 }
 0x693   : > { %3577 = vmatmul.mubr.msk.f32.gmra.mxu0 %vm263_vm0, %v5696_v16 }
 0x694   : > { %2636 = vmatprep.mubr.f32.mxu0 %v4517_v0 }
 0x697   : > { %3578 = vmatmul.mubr.msk.f32.gmra.mxu0 %vm263_vm0, %v5704_v4 }
 0x698   : > { %2642 = vmatprep.mubr.f32.mxu0 %v4517_v0 }
 0x69b   : > { %3579 = vmatmul.mubr.msk.f32.gmra.mxu0 %vm263_vm0, %v5712_v37 }
 0x69c   : > { %2648 = vmatprep.mubr.f32.mxu0 %v4517_v0 }
 0x69f   : > { %3580 = vmatmul.mubr.msk.f32.gmra.mxu0 %vm263_vm0, %v5720_v58 }
 0x6a0   : > { %2654 = vmatprep.mubr.f32.mxu0 %v4517_v0 }
 0x6a3   : > { %3581 = vmatmul.mubr.msk.f32.gmra.mxu0 %vm263_vm0, %v5728_v5 }
 0x6a4   : > { %2660 = vmatprep.mubr.f32.mxu0 %v4517_v0 }
 0x6a7   : > { %3582 = vmatmul.mubr.msk.f32.gmra.mxu0 %vm263_vm0, %v5736_v21 }
 0x6a8   : > { %2666 = vmatprep.mubr.f32.mxu0 %v4517_v0 }
 0x6ab   : > { %3583 = vmatmul.mubr.msk.f32.gmra.mxu0 %vm263_vm0, %v5744_v45 }
 0x6ac   : > { %2672 = vmatprep.mubr.f32.mxu0 %v4517_v0 }
 0x6af   : > { %3584 = vmatmul.mubr.msk.f32.gmra.mxu0 %vm263_vm0, %v5752_v40 }
 0x6b0   : > { %2678 = vmatprep.mubr.f32.mxu0 %v4517_v0 }
 0x6b3   : > { %3585 = vmatmul.mubr.msk.f32.gmra.mxu0 %vm263_vm0, %v5760_v60 }
 0x747   : > { %v2614_v41 = vpop.f32.mrf.mxu0 }
 0x748   : > { %v2701_v2 = vadd.f32 %v2687_v35, %v2614_v41 }
 0x749   : > { %v2616_v32 = vpop.f32.mrf.mxu0 }
 0x74a   : > { %v3586_v31 = vmul.f32 -1.442695, %v2701_v2  ;;  %v2702_v22 = vadd.f32 %v2687_v35, %v2616_v32  ;;  %v4438_v35 = vld [vmem:[%s5964_s1 + $0x58] sm:$0xff] }
 0x74b   : > { %v2620_v1 = vpop.f32.mrf.mxu0  ;;  %3219 = vperm.xlu0 %3725, %v4438_v35  }
 0x74c   : > { %4207 = vpow2.f32 %v3586_v31  ;;  %v3587_v44 = vmul.f32 -1.442695, %v2702_v22  ;;  %v2703_v57 = vadd.f32 %v2691_v28, %v2620_v1  ;;  %v2771_v31 = vpop.permute.xlu0 %2770 }
 0x74d   : > { %v2622_v12 = vpop.f32.mrf.mxu0 }
 0x74e   : > { %4209 = vpow2.f32 %v3587_v44  ;;  %v3588_v38 = vmul.f32 -1.442695, %v2703_v57  ;;  %v2704_v17 = vadd.f32 %v2691_v28, %v2622_v12 }
 0x74f   : > { %v2626_v26 = vpop.f32.mrf.mxu0 }
 0x750   : > { %4211 = vpow2.f32 %v3588_v38  ;;  %v3589_v47 = vmul.f32 -1.442695, %v2704_v17  ;;  %v2705_v3 = vadd.f32 %v2695_v11, %v2626_v26 }
 0x751   : > { %v2628_v61 = vpop.f32.mrf.mxu0 }
 0x752   : > { %4213 = vpow2.f32 %v3589_v47  ;;  %v3590_v62 = vmul.f32 -1.442695, %v2705_v3  ;;  %v2706_v33 = vadd.f32 %v2695_v11, %v2628_v61  ;;  %v2763_v11 = vpop.permute.xlu0 %2762  ;;  %v2759_v61 = vpop.permute.xlu1 %2758 }
 0x753   : > { %v2632_v29 = vpop.f32.mrf.mxu0 }
 0x754   : > { %4215 = vpow2.f32 %v3590_v62  ;;  %v3591_v6 = vmul.f32 -1.442695, %v2706_v33  ;;  %v2707_v43 = vadd.f32 %v2699_v25, %v2632_v29 }
 0x755   : > { %v2634_v53 = vpop.f32.mrf.mxu0 }
 0x756   : > { %4217 = vpow2.f32 %v3591_v6  ;;  %v3592_v27 = vmul.f32 -1.442695, %v2707_v43  ;;  %v2708_v19 = vadd.f32 %v2699_v25, %v2634_v53  ;;  %v4437_v25 = vld [vmem:[%s5964_s1 + $0x50] sm:$0xff] }
 0x757   : > { %v2638_v15 = vpop.f32.mrf.mxu0  ;;  %3215 = vperm.xlu1 %3726, %v4437_v25  }
 0x758   : > { %4219 = vpow2.f32 %v3592_v27  ;;  %v3593_v28 = vmul.f32 -1.442695, %v2708_v19 }
 0x759   : > { %v4208_v54 = vpop.eup %4207  ;;  %v2640_v30 = vpop.f32.mrf.mxu0 }
 0x75a   : > { %v2733_v7 = vadd.f32 1.0, %v4208_v54  ;;  %4221 = vpow2.f32 %v3593_v28  ;;  %v2774_v43 = vadd.f32 %v2759_v61, %v2640_v30  ;;  %v2773_v54 = vadd.f32 %v2759_v61, %v2638_v15  ;;  %v2859_v15 = vpop.permute.xlu0 %2858 }
 0x75b   : > { %v4210_v41 = vpop.eup %4209  ;;  %v2644_v2 = vpop.f32.mrf.mxu0 }
 0x75c   : > { %4223 = vrcp.f32 %v2733_v7  ;;  %v2734_v32 = vadd.f32 1.0, %v4210_v41  ;;  %v2775_v53 = vadd.f32 %v2763_v11, %v2644_v2 }
 0x75d   : > { %v4212_v22 = vpop.eup %4211  ;;  %v2646_v52 = vpop.f32.mrf.mxu0 }
 0x75e   : > { %4225 = vrcp.f32 %v2734_v32  ;;  %v2735_v1 = vadd.f32 1.0, %v4212_v22  ;;  %v2776_v62 = vadd.f32 %v2763_v11, %v2646_v52  ;;  %v3596_v30 = vmul.f32 -1.442695, %v2775_v53 }
 0x75f   : > { %v4214_v44 = vpop.eup %4213  ;;  %v2650_v57 = vpop.f32.mrf.mxu0  ;;  %v3595_v52 = vmul.f32 -1.442695, %v2774_v43 }
 0x760   : > { %4227 = vrcp.f32 %v2735_v1  ;;  %v2736_v12 = vadd.f32 1.0, %v4214_v44  ;;  %v2777_v38 = vadd.f32 %v2767_v50, %v2650_v57  ;;  %v3597_v7 = vmul.f32 -1.442695, %v2776_v62 }
 0x761   : > { %v4216_v17 = vpop.eup %4215  ;;  %v2652_v20 = vpop.f32.mrf.mxu0  ;;  %v3594_v44 = vmul.f32 -1.442695, %v2773_v54 }
 0x762   : > { %4229 = vrcp.f32 %v2736_v12  ;;  %v2737_v8 = vadd.f32 1.0, %v4216_v17  ;;  %v3598_v26 = vmul.f32 -1.442695, %v2777_v38  ;;  %v2778_v47 = vadd.f32 %v2767_v50, %v2652_v20  ;;  %v2855_v50 = vpop.permute.xlu1 %2854 }
 0x763   : > { %v4218_v3 = vpop.eup %4217  ;;  %v2656_v33 = vpop.f32.mrf.mxu0 }
 0x764   : > { %4231 = vrcp.f32 %v2737_v8  ;;  %v2738_v14 = vadd.f32 1.0, %v4218_v3  ;;  %v3599_v51 = vmul.f32 -1.442695, %v2778_v47  ;;  %v2779_v29 = vadd.f32 %v2771_v31, %v2656_v33 }
 0x765   : > { %v4220_v6 = vpop.eup %4219  ;;  %4233 = vpow2.f32 %v3598_v26  ;;  %v2658_v27 = vpop.f32.mrf.mxu0 }
 0x766   : > { %4235 = vrcp.f32 %v2738_v14  ;;  %v2739_v19 = vadd.f32 1.0, %v4220_v6  ;;  %v3600_v42 = vmul.f32 -1.442695, %v2779_v29  ;;  %v2780_v9 = vadd.f32 %v2771_v31, %v2658_v27  ;;  %v2847_v3 = vpop.permute.xlu1 %2846  ;;  %v2851_v29 = vpop.permute.xlu0 %2850 }
 0x767   : > { %v4222_v28 = vpop.eup %4221  ;;  %4237 = vpow2.f32 %v3599_v51  ;;  %v2662_v25 = vpop.f32.mrf.mxu0 }
 0x768   : > { %4239 = vrcp.f32 %v2739_v19  ;;  %v2740_v35 = vadd.f32 1.0, %v4222_v28  ;;  %v3601_v41 = vmul.f32 -1.442695, %v2780_v9  ;;  %v2829_v32 = vadd.f32 %v2662_v25, %v4844_v56 }
 0x769   : > { %v4224_v22 = vpop.eup %4223  ;;  %4241 = vpow2.f32 %v3600_v42  ;;  %v2664_v2 = vpop.f32.mrf.mxu0 }
 0x76a   : > { %4243 = vrcp.f32 %v2740_v35  ;;  %v2830_v1 = vadd.f32 %v2664_v2, %v4844_v56  ;;  %v2837_v12 = vmul.f32 %v4224_v22, %v2829_v32 }
 0x76b   : > { %v4226_v31 = vpop.eup %4225  ;;  %4245 = vpow2.f32 %v3601_v41  ;;  %v2668_v57 = vpop.f32.mrf.mxu0 }
 0x76c   : > { %4247 = vpow2.f32 %v3597_v7  ;;  %v2831_v38 = vadd.f32 %v2668_v57, %v4838_v59  ;;  %v2838_v20 = vmul.f32 %v4226_v31, %v2830_v1  ;;  %v2861_v62 = vadd.f32 %v2847_v3, %v2837_v12 }
 0x76d   : > { %v4228_v17 = vpop.eup %4227  ;;  %4249 = vpow2.f32 %v3596_v30  ;;  %v2670_v8 = vpop.f32.mrf.mxu0 }
 0x76e   : > { %4251 = vpow2.f32 %v3595_v52  ;;  %v2839_v11 = vmul.f32 %v4228_v17, %v2831_v38  ;;  %v2832_v26 = vadd.f32 %v2670_v8, %v4838_v59  ;;  %v2862_v6 = vadd.f32 %v2847_v3, %v2838_v20 }
 0x76f   : > { %v4230_v47 = vpop.eup %4229  ;;  %4253 = vpow2.f32 %v3594_v44  ;;  %v2674_v61 = vpop.f32.mrf.mxu0 }
 0x770   : > { %v2840_v33 = vmul.f32 %v4230_v47, %v2832_v26  ;;  %v2833_v14 = vadd.f32 %v2674_v61, %v4836_v49  ;;  %v2863_v27 = vadd.f32 %v2851_v29, %v2839_v11  ;;  %4255 = vtanh.f32 %v2861_v62 }
 0x771   : > { %v4232_v51 = vpop.eup %4231  ;;  %v2676_v43 = vpop.f32.mrf.mxu0  ;;  %4257 = vtanh.f32 %v2862_v6 }
 0x772   : > { %v4234_v53 = vpop.eup %4233  ;;  %v2841_v19 = vmul.f32 %v4232_v51, %v2833_v14  ;;  %v2834_v42 = vadd.f32 %v2676_v43, %v4836_v49  ;;  %v2864_v28 = vadd.f32 %v2851_v29, %v2840_v33  ;;  %4259 = vtanh.f32 %v2863_v27 }
 0x773   : > { %v4236_v9 = vpop.eup %4235  ;;  %v2680_v54 = vpop.f32.mrf.mxu0  ;;  %v2809_v3 = vadd.f32 1.0, %v4234_v53 }
 0x774   : > { %v4238_v7 = vpop.eup %4237  ;;  %v2842_v25 = vmul.f32 %v4236_v9, %v2834_v42  ;;  %v2835_v35 = vadd.f32 %v2680_v54, %v4834_v46  ;;  %v2865_v32 = vadd.f32 %v2855_v50, %v2841_v19  ;;  %4261 = vtanh.f32 %v2864_v28 }
 0x775   : > { %v4240_v41 = vpop.eup %4239  ;;  %v2682_v22 = vpop.f32.mrf.mxu0  ;;  %v2810_v44 = vadd.f32 1.0, %v4238_v7 }
 0x776   : > { %v4242_v30 = vpop.eup %4241  ;;  %v2866_v2 = vadd.f32 %v2855_v50, %v2842_v25  ;;  %v2843_v52 = vmul.f32 %v4240_v41, %v2835_v35  ;;  %v2836_v1 = vadd.f32 %v2682_v22, %v4834_v46 }
 0x777   : > { %v4244_v31 = vpop.eup %4243  ;;  %v2811_v20 = vadd.f32 1.0, %v4242_v30 }
 0x778   : > { %v4246_v57 = vpop.eup %4245  ;;  %4263 = vtanh.f32 %v2866_v2  ;;  %v2867_v12 = vadd.f32 %v2859_v15, %v2843_v52  ;;  %v2844_v38 = vmul.f32 %v4244_v31, %v2836_v1 }
 0x779   : > { %v4248_v17 = vpop.eup %4247  ;;  %4265 = vtanh.f32 %v2865_v32  ;;  %v2812_v11 = vadd.f32 1.0, %v4246_v57 }
 0x77a   : > { %v4250_v8 = vpop.eup %4249  ;;  %4267 = vtanh.f32 %v2867_v12  ;;  %v2868_v26 = vadd.f32 %v2859_v15, %v2844_v38  ;;  %v2808_v61 = vadd.f32 1.0, %v4248_v17 }
 0x77b   : > { %v4252_v47 = vpop.eup %4251  ;;  %4269 = vrcp.f32 %v2810_v44  ;;  %v2807_v62 = vadd.f32 1.0, %v4250_v8 }
 0x77c   : > { %v4254_v50 = vpop.eup %4253  ;;  %4271 = vtanh.f32 %v2868_v26  ;;  %v2806_v33 = vadd.f32 1.0, %v4252_v47 }
 0x77d   : > { %4273 = vrcp.f32 %v2811_v20  ;;  %v2805_v14 = vadd.f32 1.0, %v4254_v50  ;;  %v4256_v51 = vpop.eup %4255 }
 0x77e   : > { %4275 = vrcp.f32 %v2812_v11  ;;  %v4258_v29 = vpop.eup %4257 }
 0x77f   : > { %4277 = vrcp.f32 %v2809_v3  ;;  %v4260_v6 = vpop.eup %4259  ;;  %v2878_v1 = vsub.f32 %v5619_v23, %v4258_v29 }
 0x780   : > { %4279 = vrcp.f32 %v2808_v61  ;;  %v2879_v22 = vsub.f32 %v5624_v48, %v4260_v6 }
 0x781   : > { %4281 = vrcp.f32 %v2807_v62  ;;  %v4262_v15 = vpop.eup %4261 }
 0x782   : > { %4283 = vrcp.f32 %v2806_v33  ;;  %v2880_v35 = vsub.f32 %v5629_v13, %v4262_v15 }
 0x783   : > { %4285 = vrcp.f32 %v2805_v14 }
 0x785   : > { %v4264_v43 = vpop.eup %4263 }
 0x786   : > { %v4266_v53 = vpop.eup %4265  ;;  %v2882_v9 = vsub.f32 %v5641_v63, %v4264_v43  ;;  %v2877_v63 = vsub.f32 %v5616_v55, %v4256_v51 }
 0x787   : > { %v4268_v27 = vpop.eup %4267  ;;  %v2881_v54 = vsub.f32 %v5635_v36, %v4266_v53 }
 0x788   : > { %v4270_v19 = vpop.eup %4269  ;;  %v2883_v42 = vsub.f32 %v5646_v18, %v4268_v27 }
 0x789   : > { %v4272_v28 = vpop.eup %4271  ;;  %v2890_v52 = vmul.f32 %v4270_v19, %v2882_v9 }
 0x78a   : > { %v4274_v7 = vpop.eup %4273  ;;  %v2884_v25 = vsub.f32 %v5651_v34, %v4272_v28 }
 0x78b   : > { %v4276_v41 = vpop.eup %4275  ;;  %v2891_v32 = vmul.f32 %v4274_v7, %v2883_v42  ;;  %v5821_v48 = vadd.f32 %v4264_v43, %v2890_v52 }
 0x78c   : > { %v4278_v30 = vpop.eup %4277  ;;  %v2892_v2 = vmul.f32 %v4276_v41, %v2884_v25 }
 0x78d   : > { %v4280_v18 = vpop.eup %4279  ;;  %v2889_v31 = vmul.f32 %v4278_v30, %v2881_v54  ;;  %v5818_v12 = vadd.f32 %v4268_v27, %v2891_v32 }
 0x78e   : > { %v4282_v44 = vpop.eup %4281  ;;  %v5816_v36 = vadd.f32 %v4272_v28, %v2892_v2  ;;  %v2888_v57 = vmul.f32 %v4280_v18, %v2880_v35 }
 0x78f   : > { %v4284_v34 = vpop.eup %4283  ;;  %v2887_v13 = vmul.f32 %v4282_v44, %v2879_v22  ;;  %v5824_v23 = vadd.f32 %v4266_v53, %v2889_v31 }
 0x790   : > { %v4286_v38 = vpop.eup %4285  ;;  %2933 = vmatprep.subr.mxu1 %v5816_v36  ;;  %v2886_v17 = vmul.f32 %v4284_v34, %v2878_v1  ;;  %v5827_v55 = vadd.f32 %v4262_v15, %v2888_v57 }
 0x791   : > { %2934 = vmatpush1.msra.mxu1 %v5818_v12  ;;  %v2885_v20 = vmul.f32 %v4286_v38, %v2877_v63  ;;  %v5830_v8 = vadd.f32 %v4260_v6, %v2887_v13 }
 0x792   : > { %2935 = vmatprep.subr.mxu1 %v5821_v48  ;;  %v5833_v11 = vadd.f32 %v4258_v29, %v2886_v17 }
 0x793   : > { %2936 = vmatpush1.msra.mxu1 %v5824_v23  ;;  %v5836_v26 = vadd.f32 %v4256_v51, %v2885_v20 }
 0x794   : > { %2937 = vmatprep.subr.mxu1 %v5827_v55 }
 0x795   : > { %2938 = vmatpush1.msra.mxu1 %v5830_v8 }
 0x796   : > { %2939 = vmatprep.subr.mxu1 %v5833_v11 }
 0x797   : > { %2940 = vmatpush1.msra.mxu1 %v5836_v26 }
 0x798   : > { %3602 = vmatmul.mubr.msk.f32.vlgmr.msra.gmra.mxu1 %vm263_vm0, %v5672_v10  ;;  %v3048_v10 = vpop.permute.xlu0 %3047 }
 0x799   : > { %2979 = vmatprep.mubr.f32.mxu1 %v4517_v0 }
 0x79c   : > { %3603 = vmatmul.mubr.msk.f32.gmra.mxu1 %vm263_vm0, %v5680_v24  ;;  %v3060_v51 = vpop.permute.xlu0 %3059 }
 0x79d   : > { %2985 = vmatprep.mubr.f32.mxu1 %v4517_v0 }
 0x7a0   : > { %3604 = vmatmul.mubr.msk.f32.gmra.mxu1 %vm263_vm0, %v5688_v39  ;;  %v3124_v30 = vpop.permute.xlu0 %3123 }
 0x7a1   : > { %2991 = vmatprep.mubr.f32.mxu1 %v4517_v0 }
 0x7a4   : > { %3605 = vmatmul.mubr.msk.f32.gmra.mxu1 %vm263_vm0, %v5696_v16 }
 0x7a5   : > { %2997 = vmatprep.mubr.f32.mxu1 %v4517_v0 }
 0x7a8   : > { %3606 = vmatmul.mubr.msk.f32.gmra.mxu1 %vm263_vm0, %v5704_v4  ;;  %v3052_v4 = vpop.permute.xlu1 %3051 }
 0x7a9   : > { %3003 = vmatprep.mubr.f32.mxu1 %v4517_v0 }
 0x7ac   : > { %3607 = vmatmul.mubr.msk.f32.gmra.mxu1 %vm263_vm0, %v5712_v37  ;;  %v3056_v50 = vpop.permute.xlu1 %3055 }
 0x7ad   : > { %3009 = vmatprep.mubr.f32.mxu1 %v4517_v0 }
 0x7b0   : > { %3608 = vmatmul.mubr.msk.f32.gmra.mxu1 %vm263_vm0, %v5720_v58  ;;  %v3120_v42 = vpop.permute.xlu1 %3119 }
 0x7b1   : > { %3015 = vmatprep.mubr.f32.mxu1 %v4517_v0 }
 0x7b4   : > { %3609 = vmatmul.mubr.msk.f32.gmra.mxu1 %vm263_vm0, %v5728_v5  ;;  %v3128_v38 = vpop.permute.xlu1 %3127 }
 0x7b5   : > { %3021 = vmatprep.mubr.f32.mxu1 %v4517_v0 }
 0x7b8   : > { %3610 = vmatmul.mubr.msk.f32.gmra.mxu1 %vm263_vm0, %v5736_v21 }
 0x7b9   : > { %3027 = vmatprep.mubr.f32.mxu1 %v4517_v0 }
 0x7bc   : > { %3611 = vmatmul.mubr.msk.f32.gmra.mxu1 %vm263_vm0, %v5744_v45 }
 0x7bd   : > { %3033 = vmatprep.mubr.f32.mxu1 %v4517_v0 }
 0x7c0   : > { %3612 = vmatmul.mubr.msk.f32.gmra.mxu1 %vm263_vm0, %v5752_v40 }
 0x7c1   : > { %3039 = vmatprep.mubr.f32.mxu1 %v4517_v0 }
 0x7c4   : > { %3613 = vmatmul.mubr.msk.f32.gmra.mxu1 %vm263_vm0, %v5760_v60 }
 0x858   : > { %v2975_v24 = vpop.f32.mrf.mxu1 }
 0x859   : > { %v3062_v39 = vadd.f32 %v3048_v10, %v2975_v24 }
 0x85a   : > { %v2977_v16 = vpop.f32.mrf.mxu1 }
 0x85b   : > { %v3614_v37 = vmul.f32 -1.442695, %v3062_v39  ;;  %v3063_v58 = vadd.f32 %v3048_v10, %v2977_v16 }
 0x85c   : > { %v2981_v5 = vpop.f32.mrf.mxu1 }
 0x85d   : > { %4287 = vpow2.f32 %v3614_v37  ;;  %v3615_v21 = vmul.f32 -1.442695, %v3063_v58  ;;  %v3064_v45 = vadd.f32 %v3052_v4, %v2981_v5 }
 0x85e   : > { %v2983_v47 = vpop.f32.mrf.mxu1 }
 0x85f   : > { %4289 = vpow2.f32 %v3615_v21  ;;  %v3616_v3 = vmul.f32 -1.442695, %v3064_v45  ;;  %v3065_v40 = vadd.f32 %v3052_v4, %v2983_v47  ;;  %v3132_v21 = vpop.permute.xlu0 %3131 }
 0x860   : > { %v2987_v0 = vpop.f32.mrf.mxu1 }
 0x861   : > { %4291 = vpow2.f32 %v3616_v3  ;;  %v3617_v61 = vmul.f32 -1.442695, %v3065_v40  ;;  %v3066_v60 = vadd.f32 %v3056_v50, %v2987_v0 }
 0x862   : > { %v2989_v62 = vpop.f32.mrf.mxu1 }
 0x863   : > { %4293 = vpow2.f32 %v3617_v61  ;;  %v3618_v33 = vmul.f32 -1.442695, %v3066_v60  ;;  %v3067_v14 = vadd.f32 %v3056_v50, %v2989_v62 }
 0x864   : > { %v2993_v29 = vpop.f32.mrf.mxu1 }
 0x865   : > { %4295 = vpow2.f32 %v3618_v33  ;;  %v3619_v6 = vmul.f32 -1.442695, %v3067_v14  ;;  %v3068_v15 = vadd.f32 %v3060_v51, %v2993_v29 }
 0x866   : > { %v2995_v43 = vpop.f32.mrf.mxu1 }
 0x867   : > { %4297 = vpow2.f32 %v3619_v6  ;;  %v3620_v53 = vmul.f32 -1.442695, %v3068_v15  ;;  %v3069_v27 = vadd.f32 %v3060_v51, %v2995_v43 }
 0x868   : > { %v2999_v19 = vpop.f32.mrf.mxu1 }
 0x869   : > { %4299 = vpow2.f32 %v3620_v53  ;;  %v3621_v9 = vmul.f32 -1.442695, %v3069_v27  ;;  %v3134_v28 = vadd.f32 %v3120_v42, %v2999_v19 }
 0x86a   : > { %v4288_v54 = vpop.eup %4287  ;;  %v3001_v7 = vpop.f32.mrf.mxu1 }
 0x86b   : > { %v3094_v25 = vadd.f32 1.0, %v4288_v54  ;;  %4301 = vpow2.f32 %v3621_v9  ;;  %v3135_v35 = vadd.f32 %v3120_v42, %v3001_v7  ;;  %v3622_v41 = vmul.f32 -1.442695, %v3134_v28  ;;  %v3208_v9 = vpop.permute.xlu1 %3207 }
 0x86c   : > { %v4290_v32 = vpop.eup %4289  ;;  %v3005_v22 = vpop.f32.mrf.mxu1 }
 0x86d   : > { %4303 = vrcp.f32 %v3094_v25  ;;  %v3095_v2 = vadd.f32 1.0, %v4290_v32  ;;  %v3623_v52 = vmul.f32 -1.442695, %v3135_v35  ;;  %v3136_v1 = vadd.f32 %v3124_v30, %v3005_v22 }
 0x86e   : > { %v4292_v18 = vpop.eup %4291  ;;  %4305 = vpow2.f32 %v3622_v41  ;;  %v3007_v31 = vpop.f32.mrf.mxu1 }
 0x86f   : > { %4307 = vrcp.f32 %v3095_v2  ;;  %v3096_v63 = vadd.f32 1.0, %v4292_v18  ;;  %v3137_v44 = vadd.f32 %v3124_v30, %v3007_v31  ;;  %v3624_v57 = vmul.f32 -1.442695, %v3136_v1  ;;  %v3212_v31 = vpop.permute.xlu0 %3211 }
 0x870   : > { %v4294_v34 = vpop.eup %4293  ;;  %4309 = vpow2.f32 %v3623_v52  ;;  %v3011_v13 = vpop.f32.mrf.mxu1 }
 0x871   : > { %4311 = vrcp.f32 %v3096_v63  ;;  %v3097_v17 = vadd.f32 1.0, %v4294_v34  ;;  %v3625_v20 = vmul.f32 -1.442695, %v3137_v44  ;;  %v3138_v10 = vadd.f32 %v3128_v38, %v3011_v13 }
 0x872   : > { %v4296_v24 = vpop.eup %4295  ;;  %4313 = vpow2.f32 %v3624_v57  ;;  %v3013_v39 = vpop.f32.mrf.mxu1 }
 0x873   : > { %4315 = vrcp.f32 %v3097_v17  ;;  %v3098_v16 = vadd.f32 1.0, %v4296_v24  ;;  %v3139_v4 = vadd.f32 %v3128_v38, %v3013_v39  ;;  %v3626_v37 = vmul.f32 -1.442695, %v3138_v10 }
 0x874   : > { %v4298_v58 = vpop.eup %4297  ;;  %4317 = vpow2.f32 %v3625_v20  ;;  %v3017_v5 = vpop.f32.mrf.mxu1 }
 0x875   : > { %4319 = vrcp.f32 %v3098_v16  ;;  %v3099_v45 = vadd.f32 1.0, %v4298_v58  ;;  %v3627_v47 = vmul.f32 -1.442695, %v3139_v4  ;;  %v3140_v3 = vadd.f32 %v3132_v21, %v3017_v5 }
 0x876   : > { %v4300_v40 = vpop.eup %4299  ;;  %4321 = vpow2.f32 %v3626_v37  ;;  %v3019_v50 = vpop.f32.mrf.mxu1 }
 0x877   : > { %4323 = vrcp.f32 %v3099_v45  ;;  %v3100_v0 = vadd.f32 1.0, %v4300_v40  ;;  %v3141_v61 = vadd.f32 %v3132_v21, %v3019_v50  ;;  %v3628_v60 = vmul.f32 -1.442695, %v3140_v3  ;;  %v3216_v37 = vpop.permute.xlu1 %3215 }
 0x878   : > { %v4302_v62 = vpop.eup %4301  ;;  %4325 = vpow2.f32 %v3627_v47  ;;  %v3023_v33 = vpop.f32.mrf.mxu1 }
 0x879   : > { %4327 = vrcp.f32 %v3100_v0  ;;  %v3101_v14 = vadd.f32 1.0, %v4302_v62  ;;  %v3629_v51 = vmul.f32 -1.442695, %v3141_v61  ;;  %v3190_v29 = vadd.f32 %v3023_v33, %v4844_v56 }
 0x87a   : > { %v4304_v6 = vpop.eup %4303  ;;  %4329 = vpow2.f32 %v3628_v60  ;;  %v3025_v15 = vpop.f32.mrf.mxu1 }
 0x87b   : > { %v4306_v43 = vpop.eup %4305  ;;  %4331 = vrcp.f32 %v3101_v14  ;;  %v3198_v53 = vmul.f32 %v4304_v6, %v3190_v29  ;;  %v3191_v27 = vadd.f32 %v3025_v15, %v4844_v56  ;;  %v3220_v14 = vpop.permute.xlu0 %3219 }
 0x87c   : > { %v4308_v19 = vpop.eup %4307  ;;  %v3166_v42 = vadd.f32 1.0, %v4306_v43  ;;  %4333 = vpow2.f32 %v3629_v51  ;;  %v3029_v28 = vpop.f32.mrf.mxu1 }
 0x87d   : > { %v4310_v54 = vpop.eup %4309  ;;  %v3199_v7 = vmul.f32 %v4308_v19, %v3191_v27  ;;  %v3222_v25 = vadd.f32 %v3208_v9, %v3198_v53  ;;  %v3192_v35 = vadd.f32 %v3029_v28, %v4838_v59 }
 0x87e   : > { %v4312_v41 = vpop.eup %4311  ;;  %v3167_v32 = vadd.f32 1.0, %v4310_v54  ;;  %v3031_v22 = vpop.f32.mrf.mxu1 }
 0x87f   : > { %v4314_v30 = vpop.eup %4313  ;;  %v3223_v2 = vadd.f32 %v3208_v9, %v3199_v7  ;;  %4335 = vtanh.f32 %v3222_v25  ;;  %v3200_v52 = vmul.f32 %v4312_v41, %v3192_v35  ;;  %v3193_v1 = vadd.f32 %v3031_v22, %v4838_v59 }
 0x880   : > { %v4316_v56 = vpop.eup %4315  ;;  %4337 = vrcp.f32 %v3166_v42  ;;  %v3168_v18 = vadd.f32 1.0, %v4314_v30  ;;  %v3035_v63 = vpop.f32.mrf.mxu1 }
 0x881   : > { %v4318_v44 = vpop.eup %4317  ;;  %4339 = vtanh.f32 %v3223_v2  ;;  %v3201_v57 = vmul.f32 %v4316_v56, %v3193_v1  ;;  %v3224_v34 = vadd.f32 %v3212_v31, %v3200_v52  ;;  %v3194_v13 = vadd.f32 %v3035_v63, %v4836_v49 }
 0x882   : > { %v4320_v38 = vpop.eup %4319  ;;  %4341 = vrcp.f32 %v3167_v32  ;;  %v3169_v17 = vadd.f32 1.0, %v4318_v44  ;;  %v3037_v20 = vpop.f32.mrf.mxu1 }
 0x883   : > { %v4322_v10 = vpop.eup %4321  ;;  %v3225_v24 = vadd.f32 %v3212_v31, %v3201_v57  ;;  %4343 = vtanh.f32 %v3224_v34  ;;  %v3195_v59 = vadd.f32 %v3037_v20, %v4836_v49  ;;  %v3202_v39 = vmul.f32 %v4320_v38, %v3194_v13 }
 0x884   : > { %v4324_v16 = vpop.eup %4323  ;;  %4345 = vrcp.f32 %v3168_v18  ;;  %v3170_v4 = vadd.f32 1.0, %v4322_v10  ;;  %v3041_v58 = vpop.f32.mrf.mxu1 }
 0x885   : > { %v4326_v5 = vpop.eup %4325  ;;  %4347 = vtanh.f32 %v3225_v24  ;;  %v3203_v21 = vmul.f32 %v4324_v16, %v3195_v59  ;;  %v3226_v45 = vadd.f32 %v3216_v37, %v3202_v39  ;;  %v3196_v47 = vadd.f32 %v3041_v58, %v4834_v46 }
 0x886   : > { %v4328_v3 = vpop.eup %4327  ;;  %4349 = vrcp.f32 %v3169_v17  ;;  %v3171_v40 = vadd.f32 1.0, %v4326_v5  ;;  %v3043_v50 = vpop.f32.mrf.mxu1 }
 0x887   : > { %v4330_v0 = vpop.eup %4329  ;;  %v3227_v61 = vadd.f32 %v3216_v37, %v3203_v21  ;;  %4351 = vtanh.f32 %v3226_v45  ;;  %v3197_v49 = vadd.f32 %v3043_v50, %v4834_v46  ;;  %v3204_v60 = vmul.f32 %v4328_v3, %v3196_v47 }
 0x888   : > { %v4332_v62 = vpop.eup %4331  ;;  %4353 = vrcp.f32 %v3170_v4  ;;  %v3172_v33 = vadd.f32 1.0, %v4330_v0 }
 0x889   : > { %v4334_v51 = vpop.eup %4333  ;;  %4355 = vtanh.f32 %v3227_v61  ;;  %v3205_v29 = vmul.f32 %v4332_v62, %v3197_v49  ;;  %v3228_v6 = vadd.f32 %v3220_v14, %v3204_v60 }
 0x88a   : > { %4357 = vrcp.f32 %v3171_v40  ;;  %v3173_v15 = vadd.f32 1.0, %v4334_v51 }
 0x88b   : > { %v3229_v43 = vadd.f32 %v3220_v14, %v3205_v29  ;;  %4359 = vtanh.f32 %v3228_v6 }
 0x88c   : > { %v4336_v53 = vpop.eup %4335  ;;  %4361 = vrcp.f32 %v3172_v33 }
 0x88d   : > { %v4338_v27 = vpop.eup %4337  ;;  %v3238_v19 = vsub.f32 %v5836_v26, %v4336_v53  ;;  %4363 = vtanh.f32 %v3229_v43 }
 0x88e   : > { %v4340_v46 = vpop.eup %4339  ;;  %4365 = vrcp.f32 %v3173_v15 }
 0x88f   : > { %v4342_v42 = vpop.eup %4341  ;;  %v3239_v9 = vsub.f32 %v5833_v11, %v4340_v46  ;;  %v3246_v28 = vmul.f32 %v4338_v27, %v3238_v19 }
 0x890   : > { %v4344_v54 = vpop.eup %4343 }
 0x891   : > { %v4346_v7 = vpop.eup %4345  ;;  %v3247_v25 = vmul.f32 %v4342_v42, %v3239_v9  ;;  %v3254_v35 = vadd.f32 %v4336_v53, %v3246_v28  ;;  %v3240_v41 = vsub.f32 %v5830_v8, %v4344_v54 }
 0x892   : > { %v4348_v32 = vpop.eup %4347 }
 0x893   : > { %v4350_v22 = vpop.eup %4349  ;;  %v3255_v30 = vadd.f32 %v4340_v46, %v3247_v25  ;;  %v3262_v2 = vadd.f32 %v3254_v35, %v5836_v26  ;;  %v3241_v52 = vsub.f32 %v5827_v55, %v4348_v32  ;;  %v3248_v1 = vmul.f32 %v4346_v7, %v3240_v41 }
 0x894   : > { %v4352_v56 = vpop.eup %4351 }
 0x895   : > { %v4354_v18 = vpop.eup %4353  ;;  %v3263_v31 = vadd.f32 %v3255_v30, %v5833_v11  ;;  %v3270_v63 = vmul.f32 0.5, %v3262_v2  ;;  %v3249_v44 = vmul.f32 %v4350_v22, %v3241_v52  ;;  %v3256_v57 = vadd.f32 %v4344_v54, %v3248_v1 }
 0x896   : > { %v4356_v34 = vpop.eup %4355  ;;  %v3242_v13 = vsub.f32 %v5824_v23, %v4352_v56 }
 0x897   : > { %v4358_v38 = vpop.eup %4357  ;;  %v3271_v17 = vmul.f32 0.5, %v3263_v31  ;;  %3630 = vst [vmem:[%s4975_s26 + $0xc0] sm:$0xff] %v3270_v63  ;;  %v3257_v20 = vadd.f32 %v4348_v32, %v3249_v44  ;;  %v3264_v26 = vadd.f32 %v3256_v57, %v5830_v8  ;;  %v3243_v10 = vsub.f32 %v5821_v48, %v4356_v34 }
 0x898   : > { %v4360_v24 = vpop.eup %4359  ;;  %v3250_v59 = vmul.f32 %v4354_v18, %v3242_v13 }
 0x899   : > { %v4362_v39 = vpop.eup %4361  ;;  %3631 = vst [vmem:[%s4975_s26 + $0xc8] sm:$0xff] %v3271_v17  ;;  %v3265_v11 = vadd.f32 %v3257_v20, %v5827_v55  ;;  %v3272_v16 = vmul.f32 0.5, %v3264_v26  ;;  %v3251_v4 = vmul.f32 %v4358_v38, %v3243_v10  ;;  %v3244_v37 = vsub.f32 %v5818_v12, %v4360_v24 }
 0x89a   : > { %v4364_v58 = vpop.eup %4363  ;;  %v3258_v5 = vadd.f32 %v4352_v56, %v3250_v59 }
 0x89b   : > { %v3273_v21 = vmul.f32 0.5, %v3265_v11  ;;  %3632 = vst [vmem:[%s4975_s26 + $0xd0] sm:$0xff] %v3272_v16  ;;  %v3259_v8 = vadd.f32 %v4356_v34, %v3251_v4  ;;  %v3245_v45 = vsub.f32 %v5816_v36, %v4364_v58  ;;  %v3252_v47 = vmul.f32 %v4362_v39, %v3244_v37  ;;  %v4366_v3 = vpop.eup %4365 }
 0x89c   : > { %v3266_v40 = vadd.f32 %v3258_v5, %v5824_v23 }
 0x89d   : > { %3633 = vst [vmem:[%s4975_s26 + $0xd8] sm:$0xff] %v3273_v21  ;;  %v3267_v55 = vadd.f32 %v3259_v8, %v5821_v48  ;;  %v3253_v50 = vmul.f32 %v4366_v3, %v3245_v45  ;;  %v3260_v0 = vadd.f32 %v4360_v24, %v3252_v47 }
 0x89e   : > { %v3274_v61 = vmul.f32 0.5, %v3266_v40 }
 0x89f   : > { %v3275_v49 = vmul.f32 0.5, %v3267_v55  ;;  %v3261_v60 = vadd.f32 %v4364_v58, %v3253_v50  ;;  %v3268_v62 = vadd.f32 %v3260_v0, %v5818_v12 }
 0x8a0   : > { %3634 = vst [vmem:[%s4975_s26 + $0xe0] sm:$0xff] %v3274_v61 }
 0x8a1   : > { %3635 = vst [vmem:[%s4975_s26 + $0xe8] sm:$0xff] %v3275_v49  ;;  %v3269_v23 = vadd.f32 %v3261_v60, %v5816_v36  ;;  %v3276_v33 = vmul.f32 0.5, %v3268_v62 }
 0x8a3   : > { %v3277_v48 = vmul.f32 0.5, %v3269_v23  ;;  %3636 = vst [vmem:[%s4975_s26 + $0xf0] sm:$0xff] %v3276_v33 }
 0x8a5   : > { %3637 = vst [vmem:[%s4975_s26 + $0xf8] sm:$0xff] %v3277_v48 }
 0x8a6   : > { %4452 = shalt.err (!%p4449_p5)
}
 0x8a7   : > { %s4453_s22 = scalar_lea.hbm %s5910_s11, 4096  ;;  %s4457_s29 = scalar_lea.hbm %s5967_s4, 8192 }
 0x8a8   : > { %p4454_p6 = scmp.ne.s32.totalorder %s5910_s11, %s4453_s22  ;;  %p4458_p10 = scmp.lt.s32.totalorder %s5910_s11, %s5967_s4 }
 0x8a9   : > { %p4459_p11 = scmp.lt.s32.totalorder %s4457_s29, %s4453_s22 }
 0x8aa   : > { %p4455_p7 = pnand %p4454_p6, %p4594_p4 }
 0x8ab   : > { %p4460_p12 = por %p4459_p11, %p4458_p10 }
 0x8ac   : > { %p4456_p9 = pneg %p4455_p7 }
 0x8ae   : > { %p4461_p13 = pnand %p4460_p12, %p4456_p9 }
 0x8b0   : > { %4464 = shalt.err (!%p4461_p13)
}
 0x8b1   : > { %s4527_s6 = smov 256   ;;  %s4528_s7 = smov 16  }
 0x8b2   : > { %3645 = dma.vmem_to_hbm [thread:$0]  (%p4594_p4), %s5912_s8, 4096, %s5910_s11, %s5918_s18, %s4527_s6, %s4527_s6, %s4528_s7  }
 0x8b3 PF: > { %p3651_p0 = scmp.ge.s32.totalorder %s4515_s20, 2  ;;  %s3318_s9 = sand.u32 1, %s4495_s15  }
 0x8b4   : > { %s3319_s10 = scalar_lea.sflag [#allocation3], %s3318_s9 }
 0x8b5   : > { %p3648_p1 = pnand %p3651_p0, %p4601_p8 }
 0x8b7   : > { %p3649_p2 = pneg %p3648_p1 }
 0x8b9   : > { %4490 = dma.done.wait (%p3649_p2), %s3319_s10, 4096  }
 0x8ba   : > { %4492 = vsyncadd (%p3649_p2), %s3319_s10, 4294963200  ;;  %s17_s20 = sadd.s32 1, %s4515_s20   ;;  %s5970_s15 = smov %s4499_s16 }
 0x8bb   : > { %p14_p3 = scmp.ge.s32.totalorder %s17_s20, 4   ;;  %s5971_s16 = smov %s4503_s17 }
 0x8bc   : > { %s5972_s17 = smov %s4607_s28  ;;  %s5973_s18 = smov %s4511_s19 }
 0x8bd   : > { %s5974_s19 = smov %s5976_s23  ;;  %16 = sbr.rel (!%p14_p3) target bundleno = 4 (0x4), region = 74 }
 0x8c2   :  { %3324 = vsyncpa [#allocation3], 1 }
 0x8c3   :  { %3326 = vsyncpa [#allocation3 + $0x1], 1 }

</bundles_post_ra>
